<compile_context>
chip_gen: v6e
topology: v6e:2x2x1
jax: 0.10.0
libtpu: 0.0.40
codegen_flags: <defaults>
</compile_context>

<pallas_src>
import functools

import jax
import jax.numpy as jnp
from jax.experimental import pallas as pl
from jax.experimental.pallas import tpu as pltpu

H = 128          # LSTM hidden size / conv channels
NUM_CLASSES = 2
FS = 8
KSIZE = 8


# ----------------------------------------------------------------------------
# Fused kernel: conv1 -> pool1 -> conv2/3/4 -> pool2 -> LSTM -> fc
# ----------------------------------------------------------------------------
def _fused_kernel(p1_ref, w1_ref, b1_ref,
                  w2_ref, b2_ref, w3_ref, b3_ref, w4_ref, b4_ref,
                  wih_ref, whh_ref, blstm_ref, fcw_ref, fcb_ref,
                  h0_ref, c0_ref,
                  logits_ref, h_out_ref, c_out_ref,
                  act_a, act_b, xw_ref,
                  *, BT, T, lp1, pk2):
    K = w2_ref.shape[0]
    M = BT * lp1                      # rows in the stacked activation slab
    PAD = act_a.shape[0] - M          # over-read pad rows for shifted taps
    bf16 = jnp.bfloat16

    # Hoisted weight / bias loads (constant block across grid steps).
    w1 = w1_ref[...]
    b1 = b1_ref[...]
    b2 = b2_ref[...]
    b3 = b3_ref[...]
    b4 = b4_ref[...]
    wih = wih_ref[...]
    whh = whh_ref[...]
    blstm = blstm_ref[...]
    fcw = fcw_ref[...]
    fcb = fcb_ref[...]

    # Zero the pad rows once: tap loads for the last sample touch them, but the
    # resulting output rows are never consumed; this just keeps them finite.
    zpad = jnp.zeros((PAD, H), jnp.float32)
    act_a[pl.ds(M, PAD), :] = zpad
    act_b[pl.ds(M, PAD), :] = zpad

    # conv1: one batched (BT*l1_used, k1) x (k1, 128) matmul; then maxpool1
    # reduces each group of 8 rows (sublane reduction, lanes stay dense).
    h1 = jnp.dot(p1_ref[...], w1, preferred_element_type=jnp.float32) + b1
    a1 = jnp.max(h1.reshape(M, KSIZE, H), axis=1)          # (M, 128)
    act_a[pl.ds(0, M), :] = a1

    # conv2/3/4: per-tap (M,128)x(128,128) bf16 MXU matmuls over the stacked
    # slab; full M-row (8-aligned) stores; ping-pong scratch buffers.
    # Valid output rows only ever read valid rows of the same sample's stripe;
    # the padded tail rows (l >= lout) are garbage but never consumed.
    def conv_layer(src_ref, w_ref, bias):
        acc = bias + jnp.dot(src_ref[pl.ds(0, M), :].astype(bf16), w_ref[0],
                             preferred_element_type=jnp.float32)
        for k in range(1, K):
            acc = acc + jnp.dot(src_ref[pl.ds(k, M), :].astype(bf16), w_ref[k],
                                preferred_element_type=jnp.float32)
        return acc

    act_b[pl.ds(0, M), :] = conv_layer(act_a, w2_ref, b2)   # conv2
    act_a[pl.ds(0, M), :] = conv_layer(act_b, w3_ref, b3)   # conv3
    act_b[pl.ds(0, M), :] = conv_layer(act_a, w4_ref, b4)   # conv4

    # maxpool2 for the whole sequence (time-major rows t*BT + b), then the
    # hoisted LSTM input projection as ONE (T*BT,128)x(128,512) matmul with
    # both LSTM biases folded in.
    chunks = [act_b[pl.ds(b * lp1 + t * pk2, pk2), :]
              for t in range(T) for b in range(BT)]
    xs = jnp.max(jnp.concatenate(chunks, axis=0).reshape(T * BT, pk2, H),
                 axis=1)                                     # (T*BT, 128)
    xw_ref[...] = blstm + jnp.dot(xs.astype(bf16), wih,
                                  preferred_element_type=jnp.float32)

    # LSTM recurrence: only h @ W_hh + gate nonlinearities stay on the serial
    # chain.  PyTorch gate order (i, f, g, o); f32 h/c state.
    def step(t, carry):
        h, c = carry
        gates = (xw_ref[pl.ds(t * BT, BT), :]
                 + jnp.dot(h.astype(bf16), whh,
                           preferred_element_type=jnp.float32))
        i_g = jax.nn.sigmoid(gates[:, 0 * H:1 * H])
        f_g = jax.nn.sigmoid(gates[:, 1 * H:2 * H])
        g_g = jnp.tanh(gates[:, 2 * H:3 * H])
        o_g = jax.nn.sigmoid(gates[:, 3 * H:4 * H])
        c = f_g * c + i_g * g_g
        h = o_g * jnp.tanh(c)
        return h, c

    h, c = jax.lax.fori_loop(0, T, step, (h0_ref[...], c0_ref[...]),
                             unroll=True)

    # fc epilogue; output lane-padded to 128 (wrapper slices the real classes).
    logits_ref[...] = jnp.dot(h, fcw, preferred_element_type=jnp.float32) + fcb
    h_out_ref[...] = h
    c_out_ref[...] = c


# ----------------------------------------------------------------------------
# Forward pass (mirrors TinySleepNet.forward)
# ----------------------------------------------------------------------------
def tiny_sleep_net_forward(params, features, hc):
    h0, c0 = hc                       # each (1, B, H)
    B, cin, L = features.shape
    assert cin == 1

    k1 = FS // 2                      # conv1 kernel = 4
    s1 = FS // 4                      # conv1 stride = 2
    lout1 = (L - k1) // s1 + 1        # conv1 output length
    lp1 = lout1 // KSIZE              # after maxpool1 (floor, matches PyTorch)
    l1_used = lp1 * KSIZE             # conv1 rows actually consumed by pool1
    lout4 = lp1 - 3 * (KSIZE - 1)     # after conv2/3/4
    pk2 = KSIZE // 2
    T = lout4 // pk2                  # LSTM sequence length (floor pooling)
    assert lout4 >= pk2, "signal too short for TinySleepNet geometry"

    # Batch tile: whole batch if small, else 8-sample stripes on a parallel
    # grid axis (both TensorCores on v7x; pipelined patch DMA elsewhere).
    BT = B if B <= 8 else 8
    assert B % BT == 0, "batch size must be divisible by the batch tile"
    n_tiles = B // BT
    M = BT * lp1

    f32 = jnp.float32
    bf16 = jnp.bfloat16

    # conv1 patch extraction (Cin=1, K=4): tiny strided re-index, done in XLA.
    x2 = features[:, 0, :].astype(f32)                             # (B, L)
    cols = [x2[:, k: k + s1 * l1_used: s1] for k in range(k1)]     # (B, l1_used)
    patches1 = jnp.stack(cols, axis=-1).reshape(B * l1_used, k1)

    # Weight prep: channels-last tap matrices; bf16 MXU operands for the big
    # matmuls, biases / fc kept in f32.
    w1 = params["conv1_w"][:, 0, :].T.astype(f32)                  # (k1, 128)
    b1 = params["conv1_b"].reshape(1, H).astype(f32)
    w2 = params["conv2_w"].transpose(2, 1, 0).astype(bf16)         # (K, Cin, Cout)
    b2 = params["conv2_b"].reshape(1, H).astype(f32)
    w3 = params["conv3_w"].transpose(2, 1, 0).astype(bf16)
    b3 = params["conv3_b"].reshape(1, H).astype(f32)
    w4 = params["conv4_w"].transpose(2, 1, 0).astype(bf16)
    b4 = params["conv4_b"].reshape(1, H).astype(f32)

    wih = params["lstm_w_ih"].T.astype(bf16)                       # (128, 512)
    whh = params["lstm_w_hh"].T.astype(bf16)                       # (128, 512)
    blstm = (params["lstm_b_ih"]
             + params["lstm_b_hh"]).reshape(1, 4 * H).astype(f32)

    # fc weight padded to 128 output lanes so the kernel store is lane-dense.
    fcw = jnp.zeros((H, H), f32).at[:, :NUM_CLASSES].set(
        params["fc_w"].T.astype(f32))
    fcb = jnp.zeros((1, H), f32).at[:, :NUM_CLASSES].set(
        params["fc_b"].reshape(1, NUM_CLASSES).astype(f32))

    inputs = (patches1, w1, b1, w2, b2, w3, b3, w4, b4,
              wih, whh, blstm, fcw, fcb,
              h0[0].astype(f32), c0[0].astype(f32))

    def resident(shape):              # weights: same block every grid step
        nd = len(shape)
        return pl.BlockSpec(shape, lambda i, _n=nd: (0,) * _n)

    def batch_tiled(tile):            # per-batch-tile slices
        nd = len(tile)
        return pl.BlockSpec(tile, lambda i, _n=nd: (i,) + (0,) * (_n - 1))

    in_specs = [
        batch_tiled((BT * l1_used, k1)),                           # patches1
        resident(w1.shape), resident(b1.shape),
        resident(w2.shape), resident(b2.shape),
        resident(w3.shape), resident(b3.shape),
        resident(w4.shape), resident(b4.shape),
        resident(wih.shape), resident(whh.shape), resident(blstm.shape),
        resident(fcw.shape), resident(fcb.shape),
        batch_tiled((BT, H)),                                      # h0
        batch_tiled((BT, H)),                                      # c0
    ]

    out_shapes = (
        jax.ShapeDtypeStruct((B, H), f32),   # lane-padded logits
        jax.ShapeDtypeStruct((B, H), f32),   # h_n
        jax.ShapeDtypeStruct((B, H), f32),   # c_n
    )
    out_specs = (batch_tiled((BT, H)),) * 3

    kernel = functools.partial(_fused_kernel, BT=BT, T=T, lp1=lp1, pk2=pk2)

    logits_pad, h_n, c_n = pl.pallas_call(
        kernel,
        out_shape=out_shapes,
        grid=(n_tiles,),
        in_specs=in_specs,
        out_specs=out_specs,
        scratch_shapes=[
            pltpu.VMEM((M + 8, H), jnp.float32),        # ping slab (+pad rows)
            pltpu.VMEM((M + 8, H), jnp.float32),        # pong slab (+pad rows)
            pltpu.VMEM((T * BT, 4 * H), jnp.float32),   # hoisted X @ W_ih
        ],
        compiler_params=pltpu.CompilerParams(
            dimension_semantics=("parallel",)),
    )(*inputs)

    logits = logits_pad[:, :NUM_CLASSES]
    return logits, (h_n[None, :, :], c_n[None, :, :])


# ----------------------------------------------------------------------------
# Deterministic parameter init (PyTorch-style uniform(-1/sqrt(fan_in), ...))
# ----------------------------------------------------------------------------
def init_params(key):
    keys = jax.random.split(key, 16)

    def u(k, shape, fan_in):
        bound = 1.0 / jnp.sqrt(float(fan_in))
        return jax.random.uniform(
            k, shape, dtype=jnp.float32, minval=-bound, maxval=bound)

    p = {}
    p["conv1_w"] = u(keys[0], (128, 1, FS // 2), 1 * (FS // 2))
    p["conv1_b"] = u(keys[1], (128,), 1 * (FS // 2))
    p["conv2_w"] = u(keys[2], (128, 128, KSIZE), 128 * KSIZE)
    p["conv2_b"] = u(keys[3], (128,), 128 * KSIZE)
    p["conv3_w"] = u(keys[4], (128, 128, KSIZE), 128 * KSIZE)
    p["conv3_b"] = u(keys[5], (128,), 128 * KSIZE)
    p["conv4_w"] = u(keys[6], (128, 128, KSIZE), 128 * KSIZE)
    p["conv4_b"] = u(keys[7], (128,), 128 * KSIZE)
    p["lstm_w_ih"] = u(keys[8], (4 * H, H), H)
    p["lstm_w_hh"] = u(keys[9], (4 * H, H), H)
    p["lstm_b_ih"] = u(keys[10], (4 * H,), H)
    p["lstm_b_hh"] = u(keys[11], (4 * H,), H)
    p["fc_w"] = u(keys[12], (NUM_CLASSES, H), H)
    p["fc_b"] = u(keys[13], (NUM_CLASSES,), H)
    return p


if __name__ == "__main__":
    key = jax.random.PRNGKey(0)
    k_x, k_p = jax.random.split(key)

    B, L = 2, 528  # conv1->263, pool->32, conv2/3/4->25/18/11, pool->T=2
    x = jax.random.normal(k_x, (B, 1, L), dtype=jnp.float32)
    h0 = jnp.zeros((1, B, H), dtype=jnp.float32)
    c0 = jnp.zeros((1, B, H), dtype=jnp.float32)

    params = init_params(k_p)

    fwd = jax.jit(tiny_sleep_net_forward)
    logits, (h_n, c_n) = fwd(params, x, (h0, c0))
    jax.block_until_ready((logits, h_n, c_n))

    assert logits.shape == (B, NUM_CLASSES)
    assert h_n.shape == (1, B, H) and c_n.shape == (1, B, H)
    assert bool(jnp.all(jnp.isfinite(logits)))
    assert bool(jnp.all(jnp.isfinite(h_n))) and bool(jnp.all(jnp.isfinite(c_n)))
    print("KERNEL_OK")
</pallas_src>

<mosaic_0001>
module attributes {stable_mosaic.version = 11 : i64} {
  func.func @_fused_kernel(%arg0: i32, %arg1: memref<512x4xf32, #tpu.memory_space<vmem>>, %arg2: memref<4x128xf32, #tpu.memory_space<vmem>>, %arg3: memref<1x128xf32, #tpu.memory_space<vmem>>, %arg4: memref<8x128x128xbf16, #tpu.memory_space<vmem>>, %arg5: memref<1x128xf32, #tpu.memory_space<vmem>>, %arg6: memref<8x128x128xbf16, #tpu.memory_space<vmem>>, %arg7: memref<1x128xf32, #tpu.memory_space<vmem>>, %arg8: memref<8x128x128xbf16, #tpu.memory_space<vmem>>, %arg9: memref<1x128xf32, #tpu.memory_space<vmem>>, %arg10: memref<128x512xbf16, #tpu.memory_space<vmem>>, %arg11: memref<128x512xbf16, #tpu.memory_space<vmem>>, %arg12: memref<1x512xf32, #tpu.memory_space<vmem>>, %arg13: memref<128x128xf32, #tpu.memory_space<vmem>>, %arg14: memref<1x128xf32, #tpu.memory_space<vmem>>, %arg15: memref<2x128xf32, #tpu.memory_space<vmem>>, %arg16: memref<2x128xf32, #tpu.memory_space<vmem>>, %arg17: memref<2x128xf32, #tpu.memory_space<vmem>>, %arg18: memref<2x128xf32, #tpu.memory_space<vmem>>, %arg19: memref<2x128xf32, #tpu.memory_space<vmem>>, %arg20: memref<72x128xf32, #tpu.memory_space<vmem>>, %arg21: memref<72x128xf32, #tpu.memory_space<vmem>>, %arg22: memref<4x512xf32, #tpu.memory_space<vmem>>) attributes {dimension_semantics = [#tpu.dimension_semantics<parallel>], iteration_bounds = array<i64: 1>, scalar_prefetch = 0 : i64, scratch_operands = 3 : i64, tpu.core_type = #tpu.core_type<tc>, window_params = [{transform_indices = @transform_0, window_bounds = array<i64: 512, 4>}, {pipeline_mode = #tpu.pipeline_mode<synchronous>, transform_indices = @transform_1, window_bounds = array<i64: 4, 128>}, {pipeline_mode = #tpu.pipeline_mode<synchronous>, transform_indices = @transform_2, window_bounds = array<i64: 1, 128>}, {pipeline_mode = #tpu.pipeline_mode<synchronous>, transform_indices = @transform_3, window_bounds = array<i64: 8, 128, 128>}, {pipeline_mode = #tpu.pipeline_mode<synchronous>, transform_indices = @transform_4, window_bounds = array<i64: 1, 128>}, {pipeline_mode = #tpu.pipeline_mode<synchronous>, transform_indices = @transform_5, window_bounds = array<i64: 8, 128, 128>}, {pipeline_mode = #tpu.pipeline_mode<synchronous>, transform_indices = @transform_6, window_bounds = array<i64: 1, 128>}, {pipeline_mode = #tpu.pipeline_mode<synchronous>, transform_indices = @transform_7, window_bounds = array<i64: 8, 128, 128>}, {pipeline_mode = #tpu.pipeline_mode<synchronous>, transform_indices = @transform_8, window_bounds = array<i64: 1, 128>}, {pipeline_mode = #tpu.pipeline_mode<synchronous>, transform_indices = @transform_9, window_bounds = array<i64: 128, 512>}, {pipeline_mode = #tpu.pipeline_mode<synchronous>, transform_indices = @transform_10, window_bounds = array<i64: 128, 512>}, {pipeline_mode = #tpu.pipeline_mode<synchronous>, transform_indices = @transform_11, window_bounds = array<i64: 1, 512>}, {pipeline_mode = #tpu.pipeline_mode<synchronous>, transform_indices = @transform_12, window_bounds = array<i64: 128, 128>}, {pipeline_mode = #tpu.pipeline_mode<synchronous>, transform_indices = @transform_13, window_bounds = array<i64: 1, 128>}, {transform_indices = @transform_14, window_bounds = array<i64: 2, 128>}, {transform_indices = @transform_15, window_bounds = array<i64: 2, 128>}, {transform_indices = @transform_16, window_bounds = array<i64: 2, 128>}, {transform_indices = @transform_17, window_bounds = array<i64: 2, 128>}, {transform_indices = @transform_18, window_bounds = array<i64: 2, 128>}]} {
    %c0 = arith.constant 0 : index
    %c0_0 = arith.constant 0 : index
    %0 = vector.load %arg2[%c0, %c0_0] : memref<4x128xf32, #tpu.memory_space<vmem>>, vector<4x128xf32>
    %c0_1 = arith.constant 0 : index
    %c0_2 = arith.constant 0 : index
    %1 = vector.load %arg3[%c0_1, %c0_2] : memref<1x128xf32, #tpu.memory_space<vmem>>, vector<1x128xf32>
    %c0_3 = arith.constant 0 : index
    %c0_4 = arith.constant 0 : index
    %2 = vector.load %arg5[%c0_3, %c0_4] : memref<1x128xf32, #tpu.memory_space<vmem>>, vector<1x128xf32>
    %c0_5 = arith.constant 0 : index
    %c0_6 = arith.constant 0 : index
    %3 = vector.load %arg7[%c0_5, %c0_6] : memref<1x128xf32, #tpu.memory_space<vmem>>, vector<1x128xf32>
    %c0_7 = arith.constant 0 : index
    %c0_8 = arith.constant 0 : index
    %4 = vector.load %arg9[%c0_7, %c0_8] : memref<1x128xf32, #tpu.memory_space<vmem>>, vector<1x128xf32>
    %c0_9 = arith.constant 0 : index
    %c0_10 = arith.constant 0 : index
    %5 = vector.load %arg10[%c0_9, %c0_10] : memref<128x512xbf16, #tpu.memory_space<vmem>>, vector<128x512xbf16>
    %c0_11 = arith.constant 0 : index
    %c0_12 = arith.constant 0 : index
    %6 = vector.load %arg11[%c0_11, %c0_12] : memref<128x512xbf16, #tpu.memory_space<vmem>>, vector<128x512xbf16>
    %c0_13 = arith.constant 0 : index
    %c0_14 = arith.constant 0 : index
    %7 = vector.load %arg12[%c0_13, %c0_14] : memref<1x512xf32, #tpu.memory_space<vmem>>, vector<1x512xf32>
    %c0_15 = arith.constant 0 : index
    %c0_16 = arith.constant 0 : index
    %8 = vector.load %arg13[%c0_15, %c0_16] : memref<128x128xf32, #tpu.memory_space<vmem>>, vector<128x128xf32>
    %c0_17 = arith.constant 0 : index
    %c0_18 = arith.constant 0 : index
    %9 = vector.load %arg14[%c0_17, %c0_18] : memref<1x128xf32, #tpu.memory_space<vmem>>, vector<1x128xf32>
    %cst = arith.constant 0.000000e+00 : f32
    %10 = vector.broadcast %cst : f32 to vector<8x128xf32>
    %c64 = arith.constant 64 : index
    %c0_19 = arith.constant 0 : index
    %11 = vector.load %arg20[%c64, %c0_19] : memref<72x128xf32, #tpu.memory_space<vmem>>, vector<8x128xf32>
    tpu.vector_store %arg20[%c64, %c0_19], %10 {strides = array<i32>} : memref<72x128xf32, #tpu.memory_space<vmem>>, vector<8x128xf32>,
    %c64_20 = arith.constant 64 : index
    %c0_21 = arith.constant 0 : index
    %12 = vector.load %arg21[%c64_20, %c0_21] : memref<72x128xf32, #tpu.memory_space<vmem>>, vector<8x128xf32>
    tpu.vector_store %arg21[%c64_20, %c0_21], %10 {strides = array<i32>} : memref<72x128xf32, #tpu.memory_space<vmem>>, vector<8x128xf32>,
    %c0_22 = arith.constant 0 : index
    %c0_23 = arith.constant 0 : index
    %13 = vector.load %arg1[%c0_22, %c0_23] : memref<512x4xf32, #tpu.memory_space<vmem>>, vector<512x4xf32>
    %cst_24 = arith.constant dense<0.000000e+00> : vector<512x128xf32>
    %14 = tpu.matmul %13, %0, %cst_24 {dimension_numbers = #tpu.dot_dimension_numbers<[1], [0], [0], [1], [0, 0, 1, 1], [], []>} : vector<512x4xf32>, vector<4x128xf32>, vector<512x128xf32> -> vector<512x128xf32>
    %15 = vector.broadcast %1 : vector<1x128xf32> to vector<512x128xf32>
    %16 = arith.addf %14, %15 : vector<512x128xf32>
    %17 = vector.shape_cast %16 : vector<512x128xf32> to vector<64x8x128xf32>
    %cst_25 = arith.constant dense<0xFF800000> : vector<64x128xf32>
    %18 = vector.multi_reduction <maximumf>, %17, %cst_25 [1] : vector<64x8x128xf32> to vector<64x128xf32>
    %c0_26 = arith.constant 0 : index
    %c0_27 = arith.constant 0 : index
    %19 = vector.load %arg20[%c0_26, %c0_27] : memref<72x128xf32, #tpu.memory_space<vmem>>, vector<64x128xf32>
    tpu.vector_store %arg20[%c0_26, %c0_27], %18 {strides = array<i32>} : memref<72x128xf32, #tpu.memory_space<vmem>>, vector<64x128xf32>,
    %c0_28 = arith.constant 0 : index
    %c0_29 = arith.constant 0 : index
    %20 = vector.load %arg20[%c0_28, %c0_29] : memref<72x128xf32, #tpu.memory_space<vmem>>, vector<64x128xf32>
    %21 = arith.truncf %20 : vector<64x128xf32> to vector<64x128xbf16>
    %c0_30 = arith.constant 0 : index
    %c0_31 = arith.constant 0 : index
    %c0_32 = arith.constant 0 : index
    %22 = vector.load %arg4[%c0_30, %c0_31, %c0_32] : memref<8x128x128xbf16, #tpu.memory_space<vmem>>, vector<1x128x128xbf16>
    %23 = vector.shape_cast %22 : vector<1x128x128xbf16> to vector<128x128xbf16>
    %cst_33 = arith.constant dense<0.000000e+00> : vector<64x128xf32>
    %24 = tpu.matmul %21, %23, %cst_33 {dimension_numbers = #tpu.dot_dimension_numbers<[1], [0], [0], [1], [0, 0, 1, 1], [], []>} : vector<64x128xbf16>, vector<128x128xbf16>, vector<64x128xf32> -> vector<64x128xf32>
    %25 = vector.broadcast %2 : vector<1x128xf32> to vector<64x128xf32>
    %26 = arith.addf %25, %24 : vector<64x128xf32>
    %c1 = arith.constant 1 : index
    %c0_34 = arith.constant 0 : index
    %27 = vector.load %arg20[%c1, %c0_34] : memref<72x128xf32, #tpu.memory_space<vmem>>, vector<64x128xf32>
    %28 = arith.truncf %27 : vector<64x128xf32> to vector<64x128xbf16>
    %c1_35 = arith.constant 1 : index
    %c0_36 = arith.constant 0 : index
    %c0_37 = arith.constant 0 : index
    %29 = vector.load %arg4[%c1_35, %c0_36, %c0_37] : memref<8x128x128xbf16, #tpu.memory_space<vmem>>, vector<1x128x128xbf16>
    %30 = vector.shape_cast %29 : vector<1x128x128xbf16> to vector<128x128xbf16>
    %cst_38 = arith.constant dense<0.000000e+00> : vector<64x128xf32>
    %31 = tpu.matmul %28, %30, %cst_38 {dimension_numbers = #tpu.dot_dimension_numbers<[1], [0], [0], [1], [0, 0, 1, 1], [], []>} : vector<64x128xbf16>, vector<128x128xbf16>, vector<64x128xf32> -> vector<64x128xf32>
    %32 = arith.addf %26, %31 : vector<64x128xf32>
    %c2 = arith.constant 2 : index
    %c0_39 = arith.constant 0 : index
    %33 = vector.load %arg20[%c2, %c0_39] : memref<72x128xf32, #tpu.memory_space<vmem>>, vector<64x128xf32>
    %34 = arith.truncf %33 : vector<64x128xf32> to vector<64x128xbf16>
    %c2_40 = arith.constant 2 : index
    %c0_41 = arith.constant 0 : index
    %c0_42 = arith.constant 0 : index
    %35 = vector.load %arg4[%c2_40, %c0_41, %c0_42] : memref<8x128x128xbf16, #tpu.memory_space<vmem>>, vector<1x128x128xbf16>
    %36 = vector.shape_cast %35 : vector<1x128x128xbf16> to vector<128x128xbf16>
    %cst_43 = arith.constant dense<0.000000e+00> : vector<64x128xf32>
    %37 = tpu.matmul %34, %36, %cst_43 {dimension_numbers = #tpu.dot_dimension_numbers<[1], [0], [0], [1], [0, 0, 1, 1], [], []>} : vector<64x128xbf16>, vector<128x128xbf16>, vector<64x128xf32> -> vector<64x128xf32>
    %38 = arith.addf %32, %37 : vector<64x128xf32>
    %c3 = arith.constant 3 : index
    %c0_44 = arith.constant 0 : index
    %39 = vector.load %arg20[%c3, %c0_44] : memref<72x128xf32, #tpu.memory_space<vmem>>, vector<64x128xf32>
    %40 = arith.truncf %39 : vector<64x128xf32> to vector<64x128xbf16>
    %c3_45 = arith.constant 3 : index
    %c0_46 = arith.constant 0 : index
    %c0_47 = arith.constant 0 : index
    %41 = vector.load %arg4[%c3_45, %c0_46, %c0_47] : memref<8x128x128xbf16, #tpu.memory_space<vmem>>, vector<1x128x128xbf16>
    %42 = vector.shape_cast %41 : vector<1x128x128xbf16> to vector<128x128xbf16>
    %cst_48 = arith.constant dense<0.000000e+00> : vector<64x128xf32>
    %43 = tpu.matmul %40, %42, %cst_48 {dimension_numbers = #tpu.dot_dimension_numbers<[1], [0], [0], [1], [0, 0, 1, 1], [], []>} : vector<64x128xbf16>, vector<128x128xbf16>, vector<64x128xf32> -> vector<64x128xf32>
    %44 = arith.addf %38, %43 : vector<64x128xf32>
    %c4 = arith.constant 4 : index
    %c0_49 = arith.constant 0 : index
    %45 = vector.load %arg20[%c4, %c0_49] : memref<72x128xf32, #tpu.memory_space<vmem>>, vector<64x128xf32>
    %46 = arith.truncf %45 : vector<64x128xf32> to vector<64x128xbf16>
    %c4_50 = arith.constant 4 : index
    %c0_51 = arith.constant 0 : index
    %c0_52 = arith.constant 0 : index
    %47 = vector.load %arg4[%c4_50, %c0_51, %c0_52] : memref<8x128x128xbf16, #tpu.memory_space<vmem>>, vector<1x128x128xbf16>
    %48 = vector.shape_cast %47 : vector<1x128x128xbf16> to vector<128x128xbf16>
    %cst_53 = arith.constant dense<0.000000e+00> : vector<64x128xf32>
    %49 = tpu.matmul %46, %48, %cst_53 {dimension_numbers = #tpu.dot_dimension_numbers<[1], [0], [0], [1], [0, 0, 1, 1], [], []>} : vector<64x128xbf16>, vector<128x128xbf16>, vector<64x128xf32> -> vector<64x128xf32>
    %50 = arith.addf %44, %49 : vector<64x128xf32>
    %c5 = arith.constant 5 : index
    %c0_54 = arith.constant 0 : index
    %51 = vector.load %arg20[%c5, %c0_54] : memref<72x128xf32, #tpu.memory_space<vmem>>, vector<64x128xf32>
    %52 = arith.truncf %51 : vector<64x128xf32> to vector<64x128xbf16>
    %c5_55 = arith.constant 5 : index
    %c0_56 = arith.constant 0 : index
    %c0_57 = arith.constant 0 : index
    %53 = vector.load %arg4[%c5_55, %c0_56, %c0_57] : memref<8x128x128xbf16, #tpu.memory_space<vmem>>, vector<1x128x128xbf16>
    %54 = vector.shape_cast %53 : vector<1x128x128xbf16> to vector<128x128xbf16>
    %cst_58 = arith.constant dense<0.000000e+00> : vector<64x128xf32>
    %55 = tpu.matmul %52, %54, %cst_58 {dimension_numbers = #tpu.dot_dimension_numbers<[1], [0], [0], [1], [0, 0, 1, 1], [], []>} : vector<64x128xbf16>, vector<128x128xbf16>, vector<64x128xf32> -> vector<64x128xf32>
    %56 = arith.addf %50, %55 : vector<64x128xf32>
    %c6 = arith.constant 6 : index
    %c0_59 = arith.constant 0 : index
    %57 = vector.load %arg20[%c6, %c0_59] : memref<72x128xf32, #tpu.memory_space<vmem>>, vector<64x128xf32>
    %58 = arith.truncf %57 : vector<64x128xf32> to vector<64x128xbf16>
    %c6_60 = arith.constant 6 : index
    %c0_61 = arith.constant 0 : index
    %c0_62 = arith.constant 0 : index
    %59 = vector.load %arg4[%c6_60, %c0_61, %c0_62] : memref<8x128x128xbf16, #tpu.memory_space<vmem>>, vector<1x128x128xbf16>
    %60 = vector.shape_cast %59 : vector<1x128x128xbf16> to vector<128x128xbf16>
    %cst_63 = arith.constant dense<0.000000e+00> : vector<64x128xf32>
    %61 = tpu.matmul %58, %60, %cst_63 {dimension_numbers = #tpu.dot_dimension_numbers<[1], [0], [0], [1], [0, 0, 1, 1], [], []>} : vector<64x128xbf16>, vector<128x128xbf16>, vector<64x128xf32> -> vector<64x128xf32>
    %62 = arith.addf %56, %61 : vector<64x128xf32>
    %c7 = arith.constant 7 : index
    %c0_64 = arith.constant 0 : index
    %63 = vector.load %arg20[%c7, %c0_64] : memref<72x128xf32, #tpu.memory_space<vmem>>, vector<64x128xf32>
    %64 = arith.truncf %63 : vector<64x128xf32> to vector<64x128xbf16>
    %c7_65 = arith.constant 7 : index
    %c0_66 = arith.constant 0 : index
    %c0_67 = arith.constant 0 : index
    %65 = vector.load %arg4[%c7_65, %c0_66, %c0_67] : memref<8x128x128xbf16, #tpu.memory_space<vmem>>, vector<1x128x128xbf16>
    %66 = vector.shape_cast %65 : vector<1x128x128xbf16> to vector<128x128xbf16>
    %cst_68 = arith.constant dense<0.000000e+00> : vector<64x128xf32>
    %67 = tpu.matmul %64, %66, %cst_68 {dimension_numbers = #tpu.dot_dimension_numbers<[1], [0], [0], [1], [0, 0, 1, 1], [], []>} : vector<64x128xbf16>, vector<128x128xbf16>, vector<64x128xf32> -> vector<64x128xf32>
    %68 = arith.addf %62, %67 : vector<64x128xf32>
    %c0_69 = arith.constant 0 : index
    %c0_70 = arith.constant 0 : index
    %69 = vector.load %arg21[%c0_69, %c0_70] : memref<72x128xf32, #tpu.memory_space<vmem>>, vector<64x128xf32>
    tpu.vector_store %arg21[%c0_69, %c0_70], %68 {strides = array<i32>} : memref<72x128xf32, #tpu.memory_space<vmem>>, vector<64x128xf32>,
    %c0_71 = arith.constant 0 : index
    %c0_72 = arith.constant 0 : index
    %70 = vector.load %arg21[%c0_71, %c0_72] : memref<72x128xf32, #tpu.memory_space<vmem>>, vector<64x128xf32>
    %71 = arith.truncf %70 : vector<64x128xf32> to vector<64x128xbf16>
    %c0_73 = arith.constant 0 : index
    %c0_74 = arith.constant 0 : index
    %c0_75 = arith.constant 0 : index
    %72 = vector.load %arg6[%c0_73, %c0_74, %c0_75] : memref<8x128x128xbf16, #tpu.memory_space<vmem>>, vector<1x128x128xbf16>
    %73 = vector.shape_cast %72 : vector<1x128x128xbf16> to vector<128x128xbf16>
    %cst_76 = arith.constant dense<0.000000e+00> : vector<64x128xf32>
    %74 = tpu.matmul %71, %73, %cst_76 {dimension_numbers = #tpu.dot_dimension_numbers<[1], [0], [0], [1], [0, 0, 1, 1], [], []>} : vector<64x128xbf16>, vector<128x128xbf16>, vector<64x128xf32> -> vector<64x128xf32>
    %75 = vector.broadcast %3 : vector<1x128xf32> to vector<64x128xf32>
    %76 = arith.addf %75, %74 : vector<64x128xf32>
    %c1_77 = arith.constant 1 : index
    %c0_78 = arith.constant 0 : index
    %77 = vector.load %arg21[%c1_77, %c0_78] : memref<72x128xf32, #tpu.memory_space<vmem>>, vector<64x128xf32>
    %78 = arith.truncf %77 : vector<64x128xf32> to vector<64x128xbf16>
    %c1_79 = arith.constant 1 : index
    %c0_80 = arith.constant 0 : index
    %c0_81 = arith.constant 0 : index
    %79 = vector.load %arg6[%c1_79, %c0_80, %c0_81] : memref<8x128x128xbf16, #tpu.memory_space<vmem>>, vector<1x128x128xbf16>
    %80 = vector.shape_cast %79 : vector<1x128x128xbf16> to vector<128x128xbf16>
    %cst_82 = arith.constant dense<0.000000e+00> : vector<64x128xf32>
    %81 = tpu.matmul %78, %80, %cst_82 {dimension_numbers = #tpu.dot_dimension_numbers<[1], [0], [0], [1], [0, 0, 1, 1], [], []>} : vector<64x128xbf16>, vector<128x128xbf16>, vector<64x128xf32> -> vector<64x128xf32>
    %82 = arith.addf %76, %81 : vector<64x128xf32>
    %c2_83 = arith.constant 2 : index
    %c0_84 = arith.constant 0 : index
    %83 = vector.load %arg21[%c2_83, %c0_84] : memref<72x128xf32, #tpu.memory_space<vmem>>, vector<64x128xf32>
    %84 = arith.truncf %83 : vector<64x128xf32> to vector<64x128xbf16>
    %c2_85 = arith.constant 2 : index
    %c0_86 = arith.constant 0 : index
    %c0_87 = arith.constant 0 : index
    %85 = vector.load %arg6[%c2_85, %c0_86, %c0_87] : memref<8x128x128xbf16, #tpu.memory_space<vmem>>, vector<1x128x128xbf16>
    %86 = vector.shape_cast %85 : vector<1x128x128xbf16> to vector<128x128xbf16>
    %cst_88 = arith.constant dense<0.000000e+00> : vector<64x128xf32>
    %87 = tpu.matmul %84, %86, %cst_88 {dimension_numbers = #tpu.dot_dimension_numbers<[1], [0], [0], [1], [0, 0, 1, 1], [], []>} : vector<64x128xbf16>, vector<128x128xbf16>, vector<64x128xf32> -> vector<64x128xf32>
    %88 = arith.addf %82, %87 : vector<64x128xf32>
    %c3_89 = arith.constant 3 : index
    %c0_90 = arith.constant 0 : index
    %89 = vector.load %arg21[%c3_89, %c0_90] : memref<72x128xf32, #tpu.memory_space<vmem>>, vector<64x128xf32>
    %90 = arith.truncf %89 : vector<64x128xf32> to vector<64x128xbf16>
    %c3_91 = arith.constant 3 : index
    %c0_92 = arith.constant 0 : index
    %c0_93 = arith.constant 0 : index
    %91 = vector.load %arg6[%c3_91, %c0_92, %c0_93] : memref<8x128x128xbf16, #tpu.memory_space<vmem>>, vector<1x128x128xbf16>
    %92 = vector.shape_cast %91 : vector<1x128x128xbf16> to vector<128x128xbf16>
    %cst_94 = arith.constant dense<0.000000e+00> : vector<64x128xf32>
    %93 = tpu.matmul %90, %92, %cst_94 {dimension_numbers = #tpu.dot_dimension_numbers<[1], [0], [0], [1], [0, 0, 1, 1], [], []>} : vector<64x128xbf16>, vector<128x128xbf16>, vector<64x128xf32> -> vector<64x128xf32>
    %94 = arith.addf %88, %93 : vector<64x128xf32>
    %c4_95 = arith.constant 4 : index
    %c0_96 = arith.constant 0 : index
    %95 = vector.load %arg21[%c4_95, %c0_96] : memref<72x128xf32, #tpu.memory_space<vmem>>, vector<64x128xf32>
    %96 = arith.truncf %95 : vector<64x128xf32> to vector<64x128xbf16>
    %c4_97 = arith.constant 4 : index
    %c0_98 = arith.constant 0 : index
    %c0_99 = arith.constant 0 : index
    %97 = vector.load %arg6[%c4_97, %c0_98, %c0_99] : memref<8x128x128xbf16, #tpu.memory_space<vmem>>, vector<1x128x128xbf16>
    %98 = vector.shape_cast %97 : vector<1x128x128xbf16> to vector<128x128xbf16>
    %cst_100 = arith.constant dense<0.000000e+00> : vector<64x128xf32>
    %99 = tpu.matmul %96, %98, %cst_100 {dimension_numbers = #tpu.dot_dimension_numbers<[1], [0], [0], [1], [0, 0, 1, 1], [], []>} : vector<64x128xbf16>, vector<128x128xbf16>, vector<64x128xf32> -> vector<64x128xf32>
    %100 = arith.addf %94, %99 : vector<64x128xf32>
    %c5_101 = arith.constant 5 : index
    %c0_102 = arith.constant 0 : index
    %101 = vector.load %arg21[%c5_101, %c0_102] : memref<72x128xf32, #tpu.memory_space<vmem>>, vector<64x128xf32>
    %102 = arith.truncf %101 : vector<64x128xf32> to vector<64x128xbf16>
    %c5_103 = arith.constant 5 : index
    %c0_104 = arith.constant 0 : index
    %c0_105 = arith.constant 0 : index
    %103 = vector.load %arg6[%c5_103, %c0_104, %c0_105] : memref<8x128x128xbf16, #tpu.memory_space<vmem>>, vector<1x128x128xbf16>
    %104 = vector.shape_cast %103 : vector<1x128x128xbf16> to vector<128x128xbf16>
    %cst_106 = arith.constant dense<0.000000e+00> : vector<64x128xf32>
    %105 = tpu.matmul %102, %104, %cst_106 {dimension_numbers = #tpu.dot_dimension_numbers<[1], [0], [0], [1], [0, 0, 1, 1], [], []>} : vector<64x128xbf16>, vector<128x128xbf16>, vector<64x128xf32> -> vector<64x128xf32>
    %106 = arith.addf %100, %105 : vector<64x128xf32>
    %c6_107 = arith.constant 6 : index
    %c0_108 = arith.constant 0 : index
    %107 = vector.load %arg21[%c6_107, %c0_108] : memref<72x128xf32, #tpu.memory_space<vmem>>, vector<64x128xf32>
    %108 = arith.truncf %107 : vector<64x128xf32> to vector<64x128xbf16>
    %c6_109 = arith.constant 6 : index
    %c0_110 = arith.constant 0 : index
    %c0_111 = arith.constant 0 : index
    %109 = vector.load %arg6[%c6_109, %c0_110, %c0_111] : memref<8x128x128xbf16, #tpu.memory_space<vmem>>, vector<1x128x128xbf16>
    %110 = vector.shape_cast %109 : vector<1x128x128xbf16> to vector<128x128xbf16>
    %cst_112 = arith.constant dense<0.000000e+00> : vector<64x128xf32>
    %111 = tpu.matmul %108, %110, %cst_112 {dimension_numbers = #tpu.dot_dimension_numbers<[1], [0], [0], [1], [0, 0, 1, 1], [], []>} : vector<64x128xbf16>, vector<128x128xbf16>, vector<64x128xf32> -> vector<64x128xf32>
    %112 = arith.addf %106, %111 : vector<64x128xf32>
    %c7_113 = arith.constant 7 : index
    %c0_114 = arith.constant 0 : index
    %113 = vector.load %arg21[%c7_113, %c0_114] : memref<72x128xf32, #tpu.memory_space<vmem>>, vector<64x128xf32>
    %114 = arith.truncf %113 : vector<64x128xf32> to vector<64x128xbf16>
    %c7_115 = arith.constant 7 : index
    %c0_116 = arith.constant 0 : index
    %c0_117 = arith.constant 0 : index
    %115 = vector.load %arg6[%c7_115, %c0_116, %c0_117] : memref<8x128x128xbf16, #tpu.memory_space<vmem>>, vector<1x128x128xbf16>
    %116 = vector.shape_cast %115 : vector<1x128x128xbf16> to vector<128x128xbf16>
    %cst_118 = arith.constant dense<0.000000e+00> : vector<64x128xf32>
    %117 = tpu.matmul %114, %116, %cst_118 {dimension_numbers = #tpu.dot_dimension_numbers<[1], [0], [0], [1], [0, 0, 1, 1], [], []>} : vector<64x128xbf16>, vector<128x128xbf16>, vector<64x128xf32> -> vector<64x128xf32>
    %118 = arith.addf %112, %117 : vector<64x128xf32>
    %c0_119 = arith.constant 0 : index
    %c0_120 = arith.constant 0 : index
    %119 = vector.load %arg20[%c0_119, %c0_120] : memref<72x128xf32, #tpu.memory_space<vmem>>, vector<64x128xf32>
    tpu.vector_store %arg20[%c0_119, %c0_120], %118 {strides = array<i32>} : memref<72x128xf32, #tpu.memory_space<vmem>>, vector<64x128xf32>,
    %c0_121 = arith.constant 0 : index
    %c0_122 = arith.constant 0 : index
    %120 = vector.load %arg20[%c0_121, %c0_122] : memref<72x128xf32, #tpu.memory_space<vmem>>, vector<64x128xf32>
    %121 = arith.truncf %120 : vector<64x128xf32> to vector<64x128xbf16>
    %c0_123 = arith.constant 0 : index
    %c0_124 = arith.constant 0 : index
    %c0_125 = arith.constant 0 : index
    %122 = vector.load %arg8[%c0_123, %c0_124, %c0_125] : memref<8x128x128xbf16, #tpu.memory_space<vmem>>, vector<1x128x128xbf16>
    %123 = vector.shape_cast %122 : vector<1x128x128xbf16> to vector<128x128xbf16>
    %cst_126 = arith.constant dense<0.000000e+00> : vector<64x128xf32>
    %124 = tpu.matmul %121, %123, %cst_126 {dimension_numbers = #tpu.dot_dimension_numbers<[1], [0], [0], [1], [0, 0, 1, 1], [], []>} : vector<64x128xbf16>, vector<128x128xbf16>, vector<64x128xf32> -> vector<64x128xf32>
    %125 = vector.broadcast %4 : vector<1x128xf32> to vector<64x128xf32>
    %126 = arith.addf %125, %124 : vector<64x128xf32>
    %c1_127 = arith.constant 1 : index
    %c0_128 = arith.constant 0 : index
    %127 = vector.load %arg20[%c1_127, %c0_128] : memref<72x128xf32, #tpu.memory_space<vmem>>, vector<64x128xf32>
    %128 = arith.truncf %127 : vector<64x128xf32> to vector<64x128xbf16>
    %c1_129 = arith.constant 1 : index
    %c0_130 = arith.constant 0 : index
    %c0_131 = arith.constant 0 : index
    %129 = vector.load %arg8[%c1_129, %c0_130, %c0_131] : memref<8x128x128xbf16, #tpu.memory_space<vmem>>, vector<1x128x128xbf16>
    %130 = vector.shape_cast %129 : vector<1x128x128xbf16> to vector<128x128xbf16>
    %cst_132 = arith.constant dense<0.000000e+00> : vector<64x128xf32>
    %131 = tpu.matmul %128, %130, %cst_132 {dimension_numbers = #tpu.dot_dimension_numbers<[1], [0], [0], [1], [0, 0, 1, 1], [], []>} : vector<64x128xbf16>, vector<128x128xbf16>, vector<64x128xf32> -> vector<64x128xf32>
    %132 = arith.addf %126, %131 : vector<64x128xf32>
    %c2_133 = arith.constant 2 : index
    %c0_134 = arith.constant 0 : index
    %133 = vector.load %arg20[%c2_133, %c0_134] : memref<72x128xf32, #tpu.memory_space<vmem>>, vector<64x128xf32>
    %134 = arith.truncf %133 : vector<64x128xf32> to vector<64x128xbf16>
    %c2_135 = arith.constant 2 : index
    %c0_136 = arith.constant 0 : index
    %c0_137 = arith.constant 0 : index
    %135 = vector.load %arg8[%c2_135, %c0_136, %c0_137] : memref<8x128x128xbf16, #tpu.memory_space<vmem>>, vector<1x128x128xbf16>
    %136 = vector.shape_cast %135 : vector<1x128x128xbf16> to vector<128x128xbf16>
    %cst_138 = arith.constant dense<0.000000e+00> : vector<64x128xf32>
    %137 = tpu.matmul %134, %136, %cst_138 {dimension_numbers = #tpu.dot_dimension_numbers<[1], [0], [0], [1], [0, 0, 1, 1], [], []>} : vector<64x128xbf16>, vector<128x128xbf16>, vector<64x128xf32> -> vector<64x128xf32>
    %138 = arith.addf %132, %137 : vector<64x128xf32>
    %c3_139 = arith.constant 3 : index
    %c0_140 = arith.constant 0 : index
    %139 = vector.load %arg20[%c3_139, %c0_140] : memref<72x128xf32, #tpu.memory_space<vmem>>, vector<64x128xf32>
    %140 = arith.truncf %139 : vector<64x128xf32> to vector<64x128xbf16>
    %c3_141 = arith.constant 3 : index
    %c0_142 = arith.constant 0 : index
    %c0_143 = arith.constant 0 : index
    %141 = vector.load %arg8[%c3_141, %c0_142, %c0_143] : memref<8x128x128xbf16, #tpu.memory_space<vmem>>, vector<1x128x128xbf16>
    %142 = vector.shape_cast %141 : vector<1x128x128xbf16> to vector<128x128xbf16>
    %cst_144 = arith.constant dense<0.000000e+00> : vector<64x128xf32>
    %143 = tpu.matmul %140, %142, %cst_144 {dimension_numbers = #tpu.dot_dimension_numbers<[1], [0], [0], [1], [0, 0, 1, 1], [], []>} : vector<64x128xbf16>, vector<128x128xbf16>, vector<64x128xf32> -> vector<64x128xf32>
    %144 = arith.addf %138, %143 : vector<64x128xf32>
    %c4_145 = arith.constant 4 : index
    %c0_146 = arith.constant 0 : index
    %145 = vector.load %arg20[%c4_145, %c0_146] : memref<72x128xf32, #tpu.memory_space<vmem>>, vector<64x128xf32>
    %146 = arith.truncf %145 : vector<64x128xf32> to vector<64x128xbf16>
    %c4_147 = arith.constant 4 : index
    %c0_148 = arith.constant 0 : index
    %c0_149 = arith.constant 0 : index
    %147 = vector.load %arg8[%c4_147, %c0_148, %c0_149] : memref<8x128x128xbf16, #tpu.memory_space<vmem>>, vector<1x128x128xbf16>
    %148 = vector.shape_cast %147 : vector<1x128x128xbf16> to vector<128x128xbf16>
    %cst_150 = arith.constant dense<0.000000e+00> : vector<64x128xf32>
    %149 = tpu.matmul %146, %148, %cst_150 {dimension_numbers = #tpu.dot_dimension_numbers<[1], [0], [0], [1], [0, 0, 1, 1], [], []>} : vector<64x128xbf16>, vector<128x128xbf16>, vector<64x128xf32> -> vector<64x128xf32>
    %150 = arith.addf %144, %149 : vector<64x128xf32>
    %c5_151 = arith.constant 5 : index
    %c0_152 = arith.constant 0 : index
    %151 = vector.load %arg20[%c5_151, %c0_152] : memref<72x128xf32, #tpu.memory_space<vmem>>, vector<64x128xf32>
    %152 = arith.truncf %151 : vector<64x128xf32> to vector<64x128xbf16>
    %c5_153 = arith.constant 5 : index
    %c0_154 = arith.constant 0 : index
    %c0_155 = arith.constant 0 : index
    %153 = vector.load %arg8[%c5_153, %c0_154, %c0_155] : memref<8x128x128xbf16, #tpu.memory_space<vmem>>, vector<1x128x128xbf16>
    %154 = vector.shape_cast %153 : vector<1x128x128xbf16> to vector<128x128xbf16>
    %cst_156 = arith.constant dense<0.000000e+00> : vector<64x128xf32>
    %155 = tpu.matmul %152, %154, %cst_156 {dimension_numbers = #tpu.dot_dimension_numbers<[1], [0], [0], [1], [0, 0, 1, 1], [], []>} : vector<64x128xbf16>, vector<128x128xbf16>, vector<64x128xf32> -> vector<64x128xf32>
    %156 = arith.addf %150, %155 : vector<64x128xf32>
    %c6_157 = arith.constant 6 : index
    %c0_158 = arith.constant 0 : index
    %157 = vector.load %arg20[%c6_157, %c0_158] : memref<72x128xf32, #tpu.memory_space<vmem>>, vector<64x128xf32>
    %158 = arith.truncf %157 : vector<64x128xf32> to vector<64x128xbf16>
    %c6_159 = arith.constant 6 : index
    %c0_160 = arith.constant 0 : index
    %c0_161 = arith.constant 0 : index
    %159 = vector.load %arg8[%c6_159, %c0_160, %c0_161] : memref<8x128x128xbf16, #tpu.memory_space<vmem>>, vector<1x128x128xbf16>
    %160 = vector.shape_cast %159 : vector<1x128x128xbf16> to vector<128x128xbf16>
    %cst_162 = arith.constant dense<0.000000e+00> : vector<64x128xf32>
    %161 = tpu.matmul %158, %160, %cst_162 {dimension_numbers = #tpu.dot_dimension_numbers<[1], [0], [0], [1], [0, 0, 1, 1], [], []>} : vector<64x128xbf16>, vector<128x128xbf16>, vector<64x128xf32> -> vector<64x128xf32>
    %162 = arith.addf %156, %161 : vector<64x128xf32>
    %c7_163 = arith.constant 7 : index
    %c0_164 = arith.constant 0 : index
    %163 = vector.load %arg20[%c7_163, %c0_164] : memref<72x128xf32, #tpu.memory_space<vmem>>, vector<64x128xf32>
    %164 = arith.truncf %163 : vector<64x128xf32> to vector<64x128xbf16>
    %c7_165 = arith.constant 7 : index
    %c0_166 = arith.constant 0 : index
    %c0_167 = arith.constant 0 : index
    %165 = vector.load %arg8[%c7_165, %c0_166, %c0_167] : memref<8x128x128xbf16, #tpu.memory_space<vmem>>, vector<1x128x128xbf16>
    %166 = vector.shape_cast %165 : vector<1x128x128xbf16> to vector<128x128xbf16>
    %cst_168 = arith.constant dense<0.000000e+00> : vector<64x128xf32>
    %167 = tpu.matmul %164, %166, %cst_168 {dimension_numbers = #tpu.dot_dimension_numbers<[1], [0], [0], [1], [0, 0, 1, 1], [], []>} : vector<64x128xbf16>, vector<128x128xbf16>, vector<64x128xf32> -> vector<64x128xf32>
    %168 = arith.addf %162, %167 : vector<64x128xf32>
    %c0_169 = arith.constant 0 : index
    %c0_170 = arith.constant 0 : index
    %169 = vector.load %arg21[%c0_169, %c0_170] : memref<72x128xf32, #tpu.memory_space<vmem>>, vector<64x128xf32>
    tpu.vector_store %arg21[%c0_169, %c0_170], %168 {strides = array<i32>} : memref<72x128xf32, #tpu.memory_space<vmem>>, vector<64x128xf32>,
    %c0_171 = arith.constant 0 : index
    %c0_172 = arith.constant 0 : index
    %170 = vector.load %arg21[%c0_171, %c0_172] : memref<72x128xf32, #tpu.memory_space<vmem>>, vector<4x128xf32>
    %c32 = arith.constant 32 : index
    %c0_173 = arith.constant 0 : index
    %171 = vector.load %arg21[%c32, %c0_173] : memref<72x128xf32, #tpu.memory_space<vmem>>, vector<4x128xf32>
    %c4_174 = arith.constant 4 : index
    %c0_175 = arith.constant 0 : index
    %172 = vector.load %arg21[%c4_174, %c0_175] : memref<72x128xf32, #tpu.memory_space<vmem>>, vector<4x128xf32>
    %c36 = arith.constant 36 : index
    %c0_176 = arith.constant 0 : index
    %173 = vector.load %arg21[%c36, %c0_176] : memref<72x128xf32, #tpu.memory_space<vmem>>, vector<4x128xf32>
    %174 = tpu.concatenate %170, %171, %172, %173 in 0 : vector<4x128xf32>, vector<4x128xf32>, vector<4x128xf32>, vector<4x128xf32> -> vector<16x128xf32>
    %175 = vector.shape_cast %174 : vector<16x128xf32> to vector<4x4x128xf32>
    %cst_177 = arith.constant dense<0xFF800000> : vector<4x128xf32>
    %176 = vector.multi_reduction <maximumf>, %175, %cst_177 [1] : vector<4x4x128xf32> to vector<4x128xf32>
    %177 = arith.truncf %176 : vector<4x128xf32> to vector<4x128xbf16>
    %cst_178 = arith.constant dense<0.000000e+00> : vector<4x512xf32>
    %178 = tpu.matmul %177, %5, %cst_178 {dimension_numbers = #tpu.dot_dimension_numbers<[1], [0], [0], [1], [0, 0, 1, 1], [], []>} : vector<4x128xbf16>, vector<128x512xbf16>, vector<4x512xf32> -> vector<4x512xf32>
    %179 = vector.broadcast %7 : vector<1x512xf32> to vector<4x512xf32>
    %180 = arith.addf %179, %178 : vector<4x512xf32>
    %c0_179 = arith.constant 0 : index
    %c0_180 = arith.constant 0 : index
    %181 = vector.load %arg22[%c0_179, %c0_180] : memref<4x512xf32, #tpu.memory_space<vmem>>, vector<4x512xf32>
    tpu.vector_store %arg22[%c0_179, %c0_180], %180 {strides = array<i32>} : memref<4x512xf32, #tpu.memory_space<vmem>>, vector<4x512xf32>,
    %c0_181 = arith.constant 0 : index
    %c0_182 = arith.constant 0 : index
    %182 = vector.load %arg15[%c0_181, %c0_182] : memref<2x128xf32, #tpu.memory_space<vmem>>, vector<2x128xf32>
    %c0_183 = arith.constant 0 : index
    %c0_184 = arith.constant 0 : index
    %183 = vector.load %arg16[%c0_183, %c0_184] : memref<2x128xf32, #tpu.memory_space<vmem>>, vector<2x128xf32>
    %c0_i32 = arith.constant 0 : i32
    %c2_i32 = arith.constant 2 : i32
    %184 = arith.muli %c0_i32, %c2_i32 : i32
    %185 = arith.index_cast %184 : i32 to index
    %c0_185 = arith.constant 0 : index
    %186 = vector.load %arg22[%185, %c0_185] : memref<4x512xf32, #tpu.memory_space<vmem>>, vector<2x512xf32>
    %187 = arith.truncf %182 : vector<2x128xf32> to vector<2x128xbf16>
    %cst_186 = arith.constant dense<0.000000e+00> : vector<2x512xf32>
    %188 = tpu.matmul %187, %6, %cst_186 {dimension_numbers = #tpu.dot_dimension_numbers<[1], [0], [0], [1], [0, 0, 1, 1], [], []>} : vector<2x128xbf16>, vector<128x512xbf16>, vector<2x512xf32> -> vector<2x512xf32>
    %189 = arith.addf %186, %188 : vector<2x512xf32>
    %190 = vector.extract_strided_slice %189 {offsets = [0, 0], sizes = [2, 128], strides = [1, 1]} : vector<2x512xf32> to vector<2x128xf32>
    %191 = arith.negf %190 : vector<2x128xf32>
    %192 = math.exp %191 : vector<2x128xf32>
    %cst_187 = arith.constant 1.000000e+00 : f32
    %193 = vector.broadcast %cst_187 : f32 to vector<2x128xf32>
    %194 = arith.addf %193, %192 : vector<2x128xf32>
    %195 = arith.divf %193, %194 : vector<2x128xf32>
    %196 = vector.extract_strided_slice %189 {offsets = [0, 128], sizes = [2, 128], strides = [1, 1]} : vector<2x512xf32> to vector<2x128xf32>
    %197 = arith.negf %196 : vector<2x128xf32>
    %198 = math.exp %197 : vector<2x128xf32>
    %cst_188 = arith.constant 1.000000e+00 : f32
    %199 = vector.broadcast %cst_188 : f32 to vector<2x128xf32>
    %200 = arith.addf %199, %198 : vector<2x128xf32>
    %201 = arith.divf %199, %200 : vector<2x128xf32>
    %202 = vector.extract_strided_slice %189 {offsets = [0, 256], sizes = [2, 128], strides = [1, 1]} : vector<2x512xf32> to vector<2x128xf32>
    %203 = math.tanh %202 : vector<2x128xf32>
    %204 = vector.extract_strided_slice %189 {offsets = [0, 384], sizes = [2, 128], strides = [1, 1]} : vector<2x512xf32> to vector<2x128xf32>
    %205 = arith.negf %204 : vector<2x128xf32>
    %206 = math.exp %205 : vector<2x128xf32>
    %cst_189 = arith.constant 1.000000e+00 : f32
    %207 = vector.broadcast %cst_189 : f32 to vector<2x128xf32>
    %208 = arith.addf %207, %206 : vector<2x128xf32>
    %209 = arith.divf %207, %208 : vector<2x128xf32>
    %210 = arith.mulf %201, %183 : vector<2x128xf32>
    %211 = arith.mulf %195, %203 : vector<2x128xf32>
    %212 = arith.addf %210, %211 : vector<2x128xf32>
    %213 = math.tanh %212 : vector<2x128xf32>
    %214 = arith.mulf %209, %213 : vector<2x128xf32>
    %c1_i32 = arith.constant 1 : i32
    %c2_i32_190 = arith.constant 2 : i32
    %215 = arith.muli %c1_i32, %c2_i32_190 : i32
    %216 = arith.index_cast %215 : i32 to index
    %c0_191 = arith.constant 0 : index
    %217 = vector.load %arg22[%216, %c0_191] : memref<4x512xf32, #tpu.memory_space<vmem>>, vector<2x512xf32>
    %218 = arith.truncf %214 : vector<2x128xf32> to vector<2x128xbf16>
    %cst_192 = arith.constant dense<0.000000e+00> : vector<2x512xf32>
    %219 = tpu.matmul %218, %6, %cst_192 {dimension_numbers = #tpu.dot_dimension_numbers<[1], [0], [0], [1], [0, 0, 1, 1], [], []>} : vector<2x128xbf16>, vector<128x512xbf16>, vector<2x512xf32> -> vector<2x512xf32>
    %220 = arith.addf %217, %219 : vector<2x512xf32>
    %221 = vector.extract_strided_slice %220 {offsets = [0, 0], sizes = [2, 128], strides = [1, 1]} : vector<2x512xf32> to vector<2x128xf32>
    %222 = arith.negf %221 : vector<2x128xf32>
    %223 = math.exp %222 : vector<2x128xf32>
    %cst_193 = arith.constant 1.000000e+00 : f32
    %224 = vector.broadcast %cst_193 : f32 to vector<2x128xf32>
    %225 = arith.addf %224, %223 : vector<2x128xf32>
    %226 = arith.divf %224, %225 : vector<2x128xf32>
    %227 = vector.extract_strided_slice %220 {offsets = [0, 128], sizes = [2, 128], strides = [1, 1]} : vector<2x512xf32> to vector<2x128xf32>
    %228 = arith.negf %227 : vector<2x128xf32>
    %229 = math.exp %228 : vector<2x128xf32>
    %cst_194 = arith.constant 1.000000e+00 : f32
    %230 = vector.broadcast %cst_194 : f32 to vector<2x128xf32>
    %231 = arith.addf %230, %229 : vector<2x128xf32>
    %232 = arith.divf %230, %231 : vector<2x128xf32>
    %233 = vector.extract_strided_slice %220 {offsets = [0, 256], sizes = [2, 128], strides = [1, 1]} : vector<2x512xf32> to vector<2x128xf32>
    %234 = math.tanh %233 : vector<2x128xf32>
    %235 = vector.extract_strided_slice %220 {offsets = [0, 384], sizes = [2, 128], strides = [1, 1]} : vector<2x512xf32> to vector<2x128xf32>
    %236 = arith.negf %235 : vector<2x128xf32>
    %237 = math.exp %236 : vector<2x128xf32>
    %cst_195 = arith.constant 1.000000e+00 : f32
    %238 = vector.broadcast %cst_195 : f32 to vector<2x128xf32>
    %239 = arith.addf %238, %237 : vector<2x128xf32>
    %240 = arith.divf %238, %239 : vector<2x128xf32>
    %241 = arith.mulf %232, %212 : vector<2x128xf32>
    %242 = arith.mulf %226, %234 : vector<2x128xf32>
    %243 = arith.addf %241, %242 : vector<2x128xf32>
    %244 = math.tanh %243 : vector<2x128xf32>
    %245 = arith.mulf %240, %244 : vector<2x128xf32>
    %c2_i32_196 = arith.constant 2 : i32
    %cst_197 = arith.constant dense<0.000000e+00> : vector<2x128xf32>
    %246 = tpu.matmul %245, %8, %cst_197 {dimension_numbers = #tpu.dot_dimension_numbers<[1], [0], [0], [1], [0, 0, 1, 1], [], []>} : vector<2x128xf32>, vector<128x128xf32>, vector<2x128xf32> -> vector<2x128xf32>
    %247 = vector.broadcast %9 : vector<1x128xf32> to vector<2x128xf32>
    %248 = arith.addf %246, %247 : vector<2x128xf32>
    %c0_198 = arith.constant 0 : index
    %c0_199 = arith.constant 0 : index
    %249 = vector.load %arg17[%c0_198, %c0_199] : memref<2x128xf32, #tpu.memory_space<vmem>>, vector<2x128xf32>
    tpu.vector_store %arg17[%c0_198, %c0_199], %248 {strides = array<i32>} : memref<2x128xf32, #tpu.memory_space<vmem>>, vector<2x128xf32>,
    %c0_200 = arith.constant 0 : index
    %c0_201 = arith.constant 0 : index
    %250 = vector.load %arg18[%c0_200, %c0_201] : memref<2x128xf32, #tpu.memory_space<vmem>>, vector<2x128xf32>
    tpu.vector_store %arg18[%c0_200, %c0_201], %245 {strides = array<i32>} : memref<2x128xf32, #tpu.memory_space<vmem>>, vector<2x128xf32>,
    %c0_202 = arith.constant 0 : index
    %c0_203 = arith.constant 0 : index
    %251 = vector.load %arg19[%c0_202, %c0_203] : memref<2x128xf32, #tpu.memory_space<vmem>>, vector<2x128xf32>
    tpu.vector_store %arg19[%c0_202, %c0_203], %243 {strides = array<i32>} : memref<2x128xf32, #tpu.memory_space<vmem>>, vector<2x128xf32>,
    return
  }
  func.func @transform_0(%arg0: i32) -> (i32, i32) {
    %c0_i32 = arith.constant 0 : i32
    %c0_i32_0 = arith.constant 0 : i32
    return %arg0, %c0_i32 : i32, i32
  }
  func.func @transform_1(%arg0: i32) -> (i32, i32) {
    %c0_i32 = arith.constant 0 : i32
    %c0_i32_0 = arith.constant 0 : i32
    %c0_i32_1 = arith.constant 0 : i32
    return %c0_i32, %c0_i32_0 : i32, i32
  }
  func.func @transform_2(%arg0: i32) -> (i32, i32) {
    %c0_i32 = arith.constant 0 : i32
    %c0_i32_0 = arith.constant 0 : i32
    %c0_i32_1 = arith.constant 0 : i32
    return %c0_i32, %c0_i32_0 : i32, i32
  }
  func.func @transform_3(%arg0: i32) -> (i32, i32, i32) {
    %c0_i32 = arith.constant 0 : i32
    %c0_i32_0 = arith.constant 0 : i32
    %c0_i32_1 = arith.constant 0 : i32
    %c0_i32_2 = arith.constant 0 : i32
    return %c0_i32, %c0_i32_0, %c0_i32_1 : i32, i32, i32
  }
  func.func @transform_4(%arg0: i32) -> (i32, i32) {
    %c0_i32 = arith.constant 0 : i32
    %c0_i32_0 = arith.constant 0 : i32
    %c0_i32_1 = arith.constant 0 : i32
    return %c0_i32, %c0_i32_0 : i32, i32
  }
  func.func @transform_5(%arg0: i32) -> (i32, i32, i32) {
    %c0_i32 = arith.constant 0 : i32
    %c0_i32_0 = arith.constant 0 : i32
    %c0_i32_1 = arith.constant 0 : i32
    %c0_i32_2 = arith.constant 0 : i32
    return %c0_i32, %c0_i32_0, %c0_i32_1 : i32, i32, i32
  }
  func.func @transform_6(%arg0: i32) -> (i32, i32) {
    %c0_i32 = arith.constant 0 : i32
    %c0_i32_0 = arith.constant 0 : i32
    %c0_i32_1 = arith.constant 0 : i32
    return %c0_i32, %c0_i32_0 : i32, i32
  }
  func.func @transform_7(%arg0: i32) -> (i32, i32, i32) {
    %c0_i32 = arith.constant 0 : i32
    %c0_i32_0 = arith.constant 0 : i32
    %c0_i32_1 = arith.constant 0 : i32
    %c0_i32_2 = arith.constant 0 : i32
    return %c0_i32, %c0_i32_0, %c0_i32_1 : i32, i32, i32
  }
  func.func @transform_8(%arg0: i32) -> (i32, i32) {
    %c0_i32 = arith.constant 0 : i32
    %c0_i32_0 = arith.constant 0 : i32
    %c0_i32_1 = arith.constant 0 : i32
    return %c0_i32, %c0_i32_0 : i32, i32
  }
  func.func @transform_9(%arg0: i32) -> (i32, i32) {
    %c0_i32 = arith.constant 0 : i32
    %c0_i32_0 = arith.constant 0 : i32
    %c0_i32_1 = arith.constant 0 : i32
    return %c0_i32, %c0_i32_0 : i32, i32
  }
  func.func @transform_10(%arg0: i32) -> (i32, i32) {
    %c0_i32 = arith.constant 0 : i32
    %c0_i32_0 = arith.constant 0 : i32
    %c0_i32_1 = arith.constant 0 : i32
    return %c0_i32, %c0_i32_0 : i32, i32
  }
  func.func @transform_11(%arg0: i32) -> (i32, i32) {
    %c0_i32 = arith.constant 0 : i32
    %c0_i32_0 = arith.constant 0 : i32
    %c0_i32_1 = arith.constant 0 : i32
    return %c0_i32, %c0_i32_0 : i32, i32
  }
  func.func @transform_12(%arg0: i32) -> (i32, i32) {
    %c0_i32 = arith.constant 0 : i32
    %c0_i32_0 = arith.constant 0 : i32
    %c0_i32_1 = arith.constant 0 : i32
    return %c0_i32, %c0_i32_0 : i32, i32
  }
  func.func @transform_13(%arg0: i32) -> (i32, i32) {
    %c0_i32 = arith.constant 0 : i32
    %c0_i32_0 = arith.constant 0 : i32
    %c0_i32_1 = arith.constant 0 : i32
    return %c0_i32, %c0_i32_0 : i32, i32
  }
  func.func @transform_14(%arg0: i32) -> (i32, i32) {
    %c0_i32 = arith.constant 0 : i32
    %c0_i32_0 = arith.constant 0 : i32
    return %arg0, %c0_i32 : i32, i32
  }
  func.func @transform_15(%arg0: i32) -> (i32, i32) {
    %c0_i32 = arith.constant 0 : i32
    %c0_i32_0 = arith.constant 0 : i32
    return %arg0, %c0_i32 : i32, i32
  }
  func.func @transform_16(%arg0: i32) -> (i32, i32) {
    %c0_i32 = arith.constant 0 : i32
    %c0_i32_0 = arith.constant 0 : i32
    return %arg0, %c0_i32 : i32, i32
  }
  func.func @transform_17(%arg0: i32) -> (i32, i32) {
    %c0_i32 = arith.constant 0 : i32
    %c0_i32_0 = arith.constant 0 : i32
    return %arg0, %c0_i32 : i32, i32
  }
  func.func @transform_18(%arg0: i32) -> (i32, i32) {
    %c0_i32 = arith.constant 0 : i32
    %c0_i32_0 = arith.constant 0 : i32
    return %arg0, %c0_i32 : i32, i32
  }
}

</mosaic_0001>

<bundles_post_ra>
// kernel: tiny_sleep_net_forward.1
= control target key start
LH: loop header
LB: loop body
LE: loop exit
PB: predicated region body
PF: predicated region fallthrough
CT: control target
= control target key end

     0   :  { %s9589_s0 = inlined_call_operand.vmem [shape: f32[512,4], index: 0, kind: input, shape index: {}]   ;;  %s9590_s1 = inlined_call_operand.vmem [shape: f32[4,128], index: 1, kind: input, shape index: {}]   ;;  %s9591_s2 = inlined_call_operand.vmem [shape: f32[1,128], index: 2, kind: input, shape index: {}]   ;;  %s9592_s3 = inlined_call_operand.vmem [shape: bf16[8,128,128], index: 3, kind: input, shape index: {}]   ;;  %s9593_s4 = inlined_call_operand.vmem [shape: f32[1,128], index: 4, kind: input, shape index: {}]   ;;  %s9594_s5 = inlined_call_operand.vmem [shape: bf16[8,128,128], index: 5, kind: input, shape index: {}]   ;;  %s9595_s6 = inlined_call_operand.vmem [shape: f32[1,128], index: 6, kind: input, shape index: {}]   ;;  %s9596_s7 = inlined_call_operand.vmem [shape: bf16[8,128,128], index: 7, kind: input, shape index: {}]   ;;  %s9597_s8 = inlined_call_operand.vmem [shape: f32[1,128], index: 8, kind: input, shape index: {}]   ;;  %s9598_s9 = inlined_call_operand.vmem [shape: bf16[128,512], index: 9, kind: input, shape index: {}]   ;;  %s9599_s10 = inlined_call_operand.vmem [shape: bf16[128,512], index: 10, kind: input, shape index: {}]   ;;  %s9600_s11 = inlined_call_operand.vmem [shape: f32[1,512], index: 11, kind: input, shape index: {}]   ;;  %s9601_s12 = inlined_call_operand.vmem [shape: f32[128,128], index: 12, kind: input, shape index: {}]   ;;  %s9602_s13 = inlined_call_operand.vmem [shape: f32[1,128], index: 13, kind: input, shape index: {}]   ;;  %s9603_s14 = inlined_call_operand.vmem [shape: f32[2,128], index: 14, kind: input, shape index: {}]   ;;  %s9604_s15 = inlined_call_operand.vmem [shape: f32[2,128], index: 15, kind: input, shape index: {}]   ;;  %s9605_s16 = inlined_call_operand.hbm [shape: f32[2,128], index: 16, kind: output, shape index: {0}]   ;;  %s9606_s17 = inlined_call_operand.hbm [shape: f32[2,128], index: 17, kind: output, shape index: {1}]   ;;  %s9607_s18 = inlined_call_operand.hbm [shape: f32[2,128], index: 18, kind: output, shape index: {2}]  }
   0x1   :  { %9617 = sst [smem:[#allocation17_spill]] %s9589_s0 }
   0x2   :  { %9618 = sst [smem:[#allocation18_spill]] %s9590_s1 }
   0x3   :  { %9619 = sst [smem:[#allocation19_spill]] %s9591_s2 }
   0x4   :  { %24 = vsyncpa [#allocation6], 0  ;;  %s9620_s29 = sld [smem:[#allocation18_spill]]  ;;  %vm411_vm0 = vcmask 1043456   ;;  %vm218_vm1 = vcmask 31744   ;;  %v7599_v62 = vld [vmem:[%s9592_s3 + $0x38] sm:$0xff]  }
   0x5   :  { %s9621_s19 = sld [smem:[#allocation17_spill]]  ;;  %6982 = vmatprep.subr.bf16.mxu1 %v7599_v62 }
   0x6   :  { %6983 = vmatpush3.bf16.msra.mxu1 %v7599_v62 }
   0xa   :  { %v59_v0 = vld [vmem:[%s9620_s29] sm:$0xf] }
   0xb   :  { %v148_v1 = vld [vmem:[%s9621_s19] sm:$0xff]  ;;  %v149_v2 = vld [vmem:[%s9621_s19 + $0x8] sm:$0xff]  ;;  %6884 = vmatprep.subr.msk.mxu0 %vm411_vm0, %v59_v0  ;;  %v150_v3 = vld [vmem:[%s9621_s19 + $0x10] sm:$0xff] }
   0xc   :  { %6886 = vmatprep.mubr.msk.f32.mxu0 %vm218_vm1, %v148_v1  ;;  %6885 = vmatpush3.msk.msra.mxu0 %vm411_vm0, %v59_v0  ;;  %v151_v4 = vld [vmem:[%s9621_s19 + $0x18] sm:$0xff]  ;;  %v152_v5 = vld [vmem:[%s9621_s19 + $0x20] sm:$0xff]  ;;  %v153_v6 = vld [vmem:[%s9621_s19 + $0x28] sm:$0xff] }
   0xd   :  { %6887 = vmatmul.mubr.msk.f32.vlgmr.msra.gmra.mxu0 %vm218_vm1, %v149_v2  ;;  %v154_v7 = vld [vmem:[%s9621_s19 + $0x30] sm:$0xff]  ;;  %v155_v8 = vld [vmem:[%s9621_s19 + $0x38] sm:$0xff]  ;;  %v156_v9 = vld [vmem:[%s9621_s19 + $0x40] sm:$0xff] }
   0xe   :  { %6889 = vmatprep.mubr.msk.f32.mxu0 %vm218_vm1, %v150_v3  ;;  %v157_v10 = vld [vmem:[%s9621_s19 + $0x48] sm:$0xff]  ;;  %v158_v11 = vld [vmem:[%s9621_s19 + $0x50] sm:$0xff]  ;;  %v159_v12 = vld [vmem:[%s9621_s19 + $0x58] sm:$0xff] }
   0xf   :  { %v160_v13 = vld [vmem:[%s9621_s19 + $0x60] sm:$0xff]  ;;  %v161_v14 = vld [vmem:[%s9621_s19 + $0x68] sm:$0xff]  ;;  %v162_v15 = vld [vmem:[%s9621_s19 + $0x70] sm:$0xff] }
  0x10   :  { %v163_v16 = vld [vmem:[%s9621_s19 + $0x78] sm:$0xff]  ;;  %v164_v17 = vld [vmem:[%s9621_s19 + $0x80] sm:$0xff]  ;;  %v165_v18 = vld [vmem:[%s9621_s19 + $0x88] sm:$0xff] }
  0x11   :  { %6890 = vmatmul.mubr.msk.f32.gmra.mxu0 %vm218_vm1, %v151_v4  ;;  %v166_v19 = vld [vmem:[%s9621_s19 + $0x90] sm:$0xff]  ;;  %v167_v20 = vld [vmem:[%s9621_s19 + $0x98] sm:$0xff]  ;;  %v168_v21 = vld [vmem:[%s9621_s19 + $0xa0] sm:$0xff] }
  0x12   :  { %6892 = vmatprep.mubr.msk.f32.mxu0 %vm218_vm1, %v152_v5  ;;  %v169_v22 = vld [vmem:[%s9621_s19 + $0xa8] sm:$0xff]  ;;  %v170_v23 = vld [vmem:[%s9621_s19 + $0xb0] sm:$0xff]  ;;  %v171_v24 = vld [vmem:[%s9621_s19 + $0xb8] sm:$0xff] }
  0x13   :  { %v172_v25 = vld [vmem:[%s9621_s19 + $0xc0] sm:$0xff]  ;;  %v173_v26 = vld [vmem:[%s9621_s19 + $0xc8] sm:$0xff]  ;;  %v174_v27 = vld [vmem:[%s9621_s19 + $0xd0] sm:$0xff] }
  0x14   :  { %v175_v28 = vld [vmem:[%s9621_s19 + $0xd8] sm:$0xff]  ;;  %v176_v29 = vld [vmem:[%s9621_s19 + $0xe0] sm:$0xff]  ;;  %v177_v30 = vld [vmem:[%s9621_s19 + $0xe8] sm:$0xff] }
  0x15   :  { %6893 = vmatmul.mubr.msk.f32.gmra.mxu0 %vm218_vm1, %v153_v6  ;;  %v178_v31 = vld [vmem:[%s9621_s19 + $0xf0] sm:$0xff]  ;;  %v179_v32 = vld [vmem:[%s9621_s19 + $0xf8] sm:$0xff]  ;;  %v180_v33 = vld [vmem:[%s9621_s19 + $0x100] sm:$0xff] }
  0x16   :  { %6895 = vmatprep.mubr.msk.f32.mxu0 %vm218_vm1, %v154_v7  ;;  %v181_v34 = vld [vmem:[%s9621_s19 + $0x108] sm:$0xff]  ;;  %v182_v35 = vld [vmem:[%s9621_s19 + $0x110] sm:$0xff]  ;;  %v183_v36 = vld [vmem:[%s9621_s19 + $0x118] sm:$0xff] }
  0x17   :  { %v184_v37 = vld [vmem:[%s9621_s19 + $0x120] sm:$0xff]  ;;  %v185_v38 = vld [vmem:[%s9621_s19 + $0x128] sm:$0xff]  ;;  %v186_v39 = vld [vmem:[%s9621_s19 + $0x130] sm:$0xff] }
  0x18   :  { %v187_v40 = vld [vmem:[%s9621_s19 + $0x138] sm:$0xff]  ;;  %v188_v41 = vld [vmem:[%s9621_s19 + $0x140] sm:$0xff]  ;;  %v189_v42 = vld [vmem:[%s9621_s19 + $0x148] sm:$0xff] }
  0x19   :  { %6896 = vmatmul.mubr.msk.f32.gmra.mxu0 %vm218_vm1, %v155_v8  ;;  %v190_v43 = vld [vmem:[%s9621_s19 + $0x150] sm:$0xff]  ;;  %v191_v44 = vld [vmem:[%s9621_s19 + $0x158] sm:$0xff]  ;;  %v192_v45 = vld [vmem:[%s9621_s19 + $0x160] sm:$0xff] }
  0x1a   :  { %6898 = vmatprep.mubr.msk.f32.mxu0 %vm218_vm1, %v156_v9  ;;  %v193_v46 = vld [vmem:[%s9621_s19 + $0x168] sm:$0xff]  ;;  %v194_v47 = vld [vmem:[%s9621_s19 + $0x170] sm:$0xff]  ;;  %v195_v48 = vld [vmem:[%s9621_s19 + $0x178] sm:$0xff] }
  0x1b   :  { %v196_v49 = vld [vmem:[%s9621_s19 + $0x180] sm:$0xff]  ;;  %v197_v50 = vld [vmem:[%s9621_s19 + $0x188] sm:$0xff]  ;;  %v198_v51 = vld [vmem:[%s9621_s19 + $0x190] sm:$0xff] }
  0x1c   :  { %v199_v52 = vld [vmem:[%s9621_s19 + $0x198] sm:$0xff]  ;;  %v200_v53 = vld [vmem:[%s9621_s19 + $0x1a0] sm:$0xff]  ;;  %v201_v54 = vld [vmem:[%s9621_s19 + $0x1a8] sm:$0xff] }
  0x1d   :  { %6899 = vmatmul.mubr.msk.f32.gmra.mxu0 %vm218_vm1, %v157_v10  ;;  %v202_v55 = vld [vmem:[%s9621_s19 + $0x1b0] sm:$0xff]  ;;  %v203_v56 = vld [vmem:[%s9621_s19 + $0x1b8] sm:$0xff]  ;;  %v204_v57 = vld [vmem:[%s9621_s19 + $0x1c0] sm:$0xff] }
  0x1e   :  { %6901 = vmatprep.mubr.msk.f32.mxu0 %vm218_vm1, %v158_v11  ;;  %v205_v58 = vld [vmem:[%s9621_s19 + $0x1c8] sm:$0xff]  ;;  %v206_v59 = vld [vmem:[%s9621_s19 + $0x1d0] sm:$0xff]  ;;  %v207_v60 = vld [vmem:[%s9621_s19 + $0x1d8] sm:$0xff] }
  0x1f   :  { %v208_v61 = vld [vmem:[%s9621_s19 + $0x1e0] sm:$0xff]  ;;  %v209_v63 = vld [vmem:[%s9621_s19 + $0x1e8] sm:$0xff]  ;;  %v210_v0 = vld [vmem:[%s9621_s19 + $0x1f0] sm:$0xff] }
  0x20   :  { %v211_v1 = vld [vmem:[%s9621_s19 + $0x1f8] sm:$0xff]  ;;  %v7600_v2 = vld [vmem:[%s9592_s3 + $0x30] sm:$0xff]   ;;  %v7601_v3 = vld [vmem:[%s9592_s3 + $0x28] sm:$0xff]  }
  0x21   :  { %6902 = vmatmul.mubr.msk.f32.gmra.mxu0 %vm218_vm1, %v159_v12  ;;  %6984 = vmatprep.subr.bf16.mxu1 %v7600_v2  ;;  %v7602_v4 = vld [vmem:[%s9592_s3 + $0x20] sm:$0xff]   ;;  %v7603_v5 = vld [vmem:[%s9592_s3 + $0x18] sm:$0xff]   ;;  %v7605_v6 = vld [vmem:[%s9592_s3 + $0x10] sm:$0xff]  }
  0x22   :  { %6904 = vmatprep.mubr.msk.f32.mxu0 %vm218_vm1, %v160_v13  ;;  %6985 = vmatpush3.bf16.msra.mxu1 %v7600_v2  ;;  %v7604_v7 = vld [vmem:[%s9592_s3 + $0x138] sm:$0xff]   ;;  %v7607_v8 = vld [vmem:[%s9592_s3 + $0x8] sm:$0xff]   ;;  %v7606_v9 = vld [vmem:[%s9592_s3 + $0x130] sm:$0xff]  }
  0x23   :  { %6986 = vmatprep.subr.bf16.mxu1 %v7601_v3  ;;  %7078 = vmatprep.subr.bf16.mxu0 %v7604_v7  ;;  %v7609_v10 = vld [vmem:[%s9592_s3] sm:$0xff]   ;;  %v7608_v11 = vld [vmem:[%s9592_s3 + $0x128] sm:$0xff]   ;;  %v7611_v13 = vld [vmem:[%s9592_s3 + $0x118] sm:$0xff]  }
  0x24   :  { %7079 = vmatpush3.bf16.msra.mxu0 %v7604_v7  ;;  %v7610_v12 = vld [vmem:[%s9592_s3 + $0x120] sm:$0xff]  }
  0x25   :  { %6905 = vmatmul.mubr.msk.f32.gmra.mxu0 %vm218_vm1, %v161_v14  ;;  %7080 = vmatprep.subr.bf16.mxu0 %v7606_v9  ;;  %v7612_v14 = vld [vmem:[%s9592_s3 + $0x110] sm:$0xff]  }
  0x26   :  { %6907 = vmatprep.mubr.msk.f32.mxu0 %vm218_vm1, %v162_v15  ;;  %6987 = vmatpush3.bf16.msra.mxu1 %v7601_v3  ;;  %v7613_v15 = vld [vmem:[%s9592_s3 + $0x108] sm:$0xff]  }
  0x27   :  { %6988 = vmatprep.subr.bf16.mxu1 %v7602_v4 }
  0x28   :  { %7081 = vmatpush3.bf16.msra.mxu0 %v7606_v9 }
  0x29   :  { %6908 = vmatmul.mubr.msk.f32.gmra.mxu0 %vm218_vm1, %v163_v16  ;;  %7082 = vmatprep.subr.bf16.mxu0 %v7608_v11 }
  0x2a   :  { %6910 = vmatprep.mubr.msk.f32.mxu0 %vm218_vm1, %v164_v17  ;;  %6989 = vmatpush3.bf16.msra.mxu1 %v7602_v4 }
  0x2b   :  { %6990 = vmatprep.subr.bf16.mxu1 %v7603_v5 }
  0x2c   :  { %7083 = vmatpush3.bf16.msra.mxu0 %v7608_v11 }
  0x2d   :  { %6911 = vmatmul.mubr.msk.f32.gmra.mxu0 %vm218_vm1, %v165_v18  ;;  %7084 = vmatprep.subr.bf16.mxu0 %v7610_v12 }
  0x2e   :  { %6913 = vmatprep.mubr.msk.f32.mxu0 %vm218_vm1, %v166_v19  ;;  %6991 = vmatpush3.bf16.msra.mxu1 %v7603_v5 }
  0x2f   :  { %6992 = vmatprep.subr.bf16.mxu1 %v7605_v6 }
  0x30   :  { %7085 = vmatpush3.bf16.msra.mxu0 %v7610_v12 }
  0x31   :  { %6914 = vmatmul.mubr.msk.f32.gmra.mxu0 %vm218_vm1, %v167_v20  ;;  %7086 = vmatprep.subr.bf16.mxu0 %v7611_v13 }
  0x32   :  { %6916 = vmatprep.mubr.msk.f32.mxu0 %vm218_vm1, %v168_v21  ;;  %6993 = vmatpush3.bf16.msra.mxu1 %v7605_v6 }
  0x33   :  { %6994 = vmatprep.subr.bf16.mxu1 %v7607_v8 }
  0x34   :  { %7087 = vmatpush3.bf16.msra.mxu0 %v7611_v13 }
  0x35   :  { %6917 = vmatmul.mubr.msk.f32.gmra.mxu0 %vm218_vm1, %v169_v22  ;;  %7088 = vmatprep.subr.bf16.mxu0 %v7612_v14 }
  0x36   :  { %6919 = vmatprep.mubr.msk.f32.mxu0 %vm218_vm1, %v170_v23  ;;  %6995 = vmatpush3.bf16.msra.mxu1 %v7607_v8 }
  0x37   :  { %6996 = vmatprep.subr.bf16.mxu1 %v7609_v10 }
  0x38   :  { %7089 = vmatpush3.bf16.msra.mxu0 %v7612_v14 }
  0x39   :  { %6920 = vmatmul.mubr.msk.f32.gmra.mxu0 %vm218_vm1, %v171_v24 }
  0x3a   :  { %6922 = vmatprep.mubr.msk.f32.mxu0 %vm218_vm1, %v172_v25  ;;  %6997 = vmatpush3.bf16.msra.mxu1 %v7609_v10 }
  0x3d   :  { %6923 = vmatmul.mubr.msk.f32.gmra.mxu0 %vm218_vm1, %v173_v26 }
  0x3e   :  { %6925 = vmatprep.mubr.msk.f32.mxu0 %vm218_vm1, %v174_v27 }
  0x41   :  { %6926 = vmatmul.mubr.msk.f32.gmra.mxu0 %vm218_vm1, %v175_v28 }
  0x42   :  { %6928 = vmatprep.mubr.msk.f32.mxu0 %vm218_vm1, %v176_v29 }
  0x45   :  { %6929 = vmatmul.mubr.msk.f32.gmra.mxu0 %vm218_vm1, %v177_v30 }
  0x46   :  { %6931 = vmatprep.mubr.msk.f32.mxu0 %vm218_vm1, %v178_v31 }
  0x49   :  { %6932 = vmatmul.mubr.msk.f32.gmra.mxu0 %vm218_vm1, %v179_v32 }
  0x4a   :  { %6934 = vmatprep.mubr.msk.f32.mxu0 %vm218_vm1, %v180_v33 }
  0x4d   :  { %6935 = vmatmul.mubr.msk.f32.gmra.mxu0 %vm218_vm1, %v181_v34 }
  0x4e   :  { %6937 = vmatprep.mubr.msk.f32.mxu0 %vm218_vm1, %v182_v35 }
  0x51   :  { %6938 = vmatmul.mubr.msk.f32.gmra.mxu0 %vm218_vm1, %v183_v36 }
  0x52   :  { %6940 = vmatprep.mubr.msk.f32.mxu0 %vm218_vm1, %v184_v37 }
  0x55   :  { %6941 = vmatmul.mubr.msk.f32.gmra.mxu0 %vm218_vm1, %v185_v38 }
  0x56   :  { %6943 = vmatprep.mubr.msk.f32.mxu0 %vm218_vm1, %v186_v39 }
  0x59   :  { %6944 = vmatmul.mubr.msk.f32.gmra.mxu0 %vm218_vm1, %v187_v40 }
  0x5a   :  { %6946 = vmatprep.mubr.msk.f32.mxu0 %vm218_vm1, %v188_v41 }
  0x5d   :  { %6947 = vmatmul.mubr.msk.f32.gmra.mxu0 %vm218_vm1, %v189_v42 }
  0x5e   :  { %6949 = vmatprep.mubr.msk.f32.mxu0 %vm218_vm1, %v190_v43 }
  0x61   :  { %6950 = vmatmul.mubr.msk.f32.gmra.mxu0 %vm218_vm1, %v191_v44 }
  0x62   :  { %6952 = vmatprep.mubr.msk.f32.mxu0 %vm218_vm1, %v192_v45 }
  0x65   :  { %6953 = vmatmul.mubr.msk.f32.gmra.mxu0 %vm218_vm1, %v193_v46 }
  0x66   :  { %6955 = vmatprep.mubr.msk.f32.mxu0 %vm218_vm1, %v194_v47 }
  0x69   :  { %6956 = vmatmul.mubr.msk.f32.gmra.mxu0 %vm218_vm1, %v195_v48 }
  0x6a   :  { %6958 = vmatprep.mubr.msk.f32.mxu0 %vm218_vm1, %v196_v49 }
  0x6d   :  { %6959 = vmatmul.mubr.msk.f32.gmra.mxu0 %vm218_vm1, %v197_v50 }
  0x6e   :  { %6961 = vmatprep.mubr.msk.f32.mxu0 %vm218_vm1, %v198_v51 }
  0x71   :  { %6962 = vmatmul.mubr.msk.f32.gmra.mxu0 %vm218_vm1, %v199_v52 }
  0x72   :  { %6964 = vmatprep.mubr.msk.f32.mxu0 %vm218_vm1, %v200_v53 }
  0x75   :  { %6965 = vmatmul.mubr.msk.f32.gmra.mxu0 %vm218_vm1, %v201_v54 }
  0x76   :  { %6967 = vmatprep.mubr.msk.f32.mxu0 %vm218_vm1, %v202_v55 }
  0x79   :  { %6968 = vmatmul.mubr.msk.f32.gmra.mxu0 %vm218_vm1, %v203_v56 }
  0x7a   :  { %6970 = vmatprep.mubr.msk.f32.mxu0 %vm218_vm1, %v204_v57 }
  0x7d   :  { %6971 = vmatmul.mubr.msk.f32.gmra.mxu0 %vm218_vm1, %v205_v58 }
  0x7e   :  { %6973 = vmatprep.mubr.msk.f32.mxu0 %vm218_vm1, %v206_v59 }
  0x81   :  { %6974 = vmatmul.mubr.msk.f32.gmra.mxu0 %vm218_vm1, %v207_v60 }
  0x82   :  { %6976 = vmatprep.mubr.msk.f32.mxu0 %vm218_vm1, %v208_v61 }
  0x85   :  { %6977 = vmatmul.mubr.msk.f32.gmra.mxu0 %vm218_vm1, %v209_v63 }
  0x86   :  { %6979 = vmatprep.mubr.msk.f32.mxu0 %vm218_vm1, %v210_v0 }
  0x89   :  { %6980 = vmatmul.mubr.msk.f32.gmra.mxu0 %vm218_vm1, %v211_v1 }
  0x8a   :  { %25 = vsyncpa [#allocation8], 0  ;;  %7090 = vmatprep.subr.bf16.mxu0 %v7613_v15  ;;  %v7614_v16 = vld [vmem:[%s9592_s3 + $0x100] sm:$0xff]   ;;  %s9622_s2 = sld [smem:[#allocation19_spill]]  ;;  %v8405_v24 = vld [vmem:[%s9592_s3 + $0x78] sm:$0xff]   ;;  %vm1248_vm2 = vcmask 1041409  }
  0x8b   :  { %7091 = vmatpush3.bf16.msra.mxu0 %v7613_v15  ;;  %7006 = vmatprep.subr.bf16.mxu1 %v8405_v24  ;;  %vm1250_vm3 = vcmask 1042434   ;;  %v8415_v50 = vld [vmem:[%s9592_s3 + $0x1b8] sm:$0xff]   ;;  %vm1252_vm4 = vcmask 1043459   ;;  %vm1254_vm5 = vcmask 1044484   ;;  %vm1256_vm6 = vcmask 1045509  }
  0x8c   :  { %7092 = vmatprep.subr.bf16.mxu0 %v7614_v16  ;;  %vm1258_vm7 = vcmask 1046534   ;;  %vm1260_vm8 = vcmask 1047559   ;;  %vm7987_vm9 = vmmov 0  }
  0x8f   :  { %7093 = vmatpush3.bf16.msra.mxu0 %v7614_v16  ;;  %v7985_v16 = vmov 0.0  }
  0x90   :  { %v8398_v17 = vld [vmem:[%s9622_s2] ss:$0 sm:$0xff]  ;;  %7126 = vmatprep.subr.bf16.mxu0 %v8415_v50  ;;  %146 = vst [vmem:[#allocation2 + $0x40] sm:$0xff] %v7985_v16  ;;  %147 = vst [vmem:[#allocation3 + $0x40] sm:$0xff] %v7985_v16 }
  0xcd   :  { %v6888_v18 = vpop.f32.mrf.mxu0 }
  0xce   :  { %v487_v19 = vadd.f32 %v6888_v18, %v8398_v17 }
  0xcf   :  { %v481_v20 = vpop.f32.mrf.mxu0 }
  0xd0   :  { %v806_v21 = vrot.slane %v487_v19, 4  ;;  %v482_v22 = vadd.f32 %v8398_v17, %v481_v20 }
  0xd1   :  { %v6891_v23 = vpop.f32.mrf.mxu0 }
  0xd2   :  { %v807_v25 = vmax.f32 %v487_v19, %v806_v21  ;;  %v800_v26 = vrot.slane %v482_v22, 4  ;;  %v497_v27 = vadd.f32 %v6891_v23, %v8398_v17 }
  0xd3   :  { %v491_v28 = vpop.f32.mrf.mxu0 }
  0xd4   :  { %v808_v29 = vrot.slane %v807_v25, 2  ;;  %v801_v30 = vmax.f32 %v482_v22, %v800_v26  ;;  %v818_v31 = vrot.slane %v497_v27, 4  ;;  %v492_v32 = vadd.f32 %v8398_v17, %v491_v28 }
  0xd5   :  { %v6894_v33 = vpop.f32.mrf.mxu0 }
  0xd6   :  { %v809_v34 = vmax.f32 %v807_v25, %v808_v29  ;;  %v802_v35 = vrot.slane %v801_v30, 2  ;;  %v819_v36 = vmax.f32 %v497_v27, %v818_v31  ;;  %v812_v37 = vrot.slane %v492_v32, 4 }
  0xd7   :  { %v507_v38 = vadd.f32 %v6894_v33, %v8398_v17  ;;  %v501_v39 = vpop.f32.mrf.mxu0 }
  0xd8   :  { %v810_v40 = vrot.slane %v809_v34, 1  ;;  %v803_v41 = vmax.f32 %v801_v30, %v802_v35  ;;  %v820_v42 = vrot.slane %v819_v36, 2  ;;  %v813_v43 = vmax.f32 %v492_v32, %v812_v37 }
  0xd9   :  { %v830_v44 = vrot.slane %v507_v38, 4  ;;  %v502_v45 = vadd.f32 %v8398_v17, %v501_v39  ;;  %v6897_v46 = vpop.f32.mrf.mxu0 }
  0xda   :  { %v804_v47 = vrot.slane %v803_v41, 1  ;;  %v821_v48 = vmax.f32 %v819_v36, %v820_v42  ;;  %v814_v49 = vrot.slane %v813_v43, 2  ;;  %v517_v53 = vadd.f32 %v6897_v46, %v8398_v17 }
  0xdb   :  { %v831_v51 = vmax.f32 %v507_v38, %v830_v44  ;;  %v824_v52 = vrot.slane %v502_v45, 4  ;;  %v511_v54 = vpop.f32.mrf.mxu0  ;;  %v811_v55 = vmax.f32 %v809_v34, %v810_v40 }
  0xdc   :  { %v805_v56 = vmax.f32 %v803_v41, %v804_v47  ;;  %v815_v57 = vmax.f32 %v813_v43, %v814_v49  ;;  %v512_v58 = vadd.f32 %v8398_v17, %v511_v54  ;;  %v842_v61 = vrot.slane %v517_v53, 4 }
  0xdd   :  { %v832_v59 = vrot.slane %v831_v51, 2  ;;  %v825_v60 = vmax.f32 %v502_v45, %v824_v52  ;;  %v6900_v62 = vpop.f32.mrf.mxu0  ;;  %v822_v0 = vrot.slane %v821_v48, 1 }
  0xde   :  { %v1249_v63 = vsel %vm1248_vm2, %v811_v55, %v805_v56  ;;  %v816_v1 = vrot.slane %v815_v57, 1  ;;  %v836_v2 = vrot.slane %v512_v58, 4  ;;  %v843_v5 = vmax.f32 %v517_v53, %v842_v61 }
  0xdf   :  { %v833_v3 = vmax.f32 %v831_v51, %v832_v59  ;;  %v826_v4 = vrot.slane %v825_v60, 2  ;;  %v527_v6 = vadd.f32 %v6900_v62, %v8398_v17  ;;  %v521_v7 = vpop.f32.mrf.mxu0  ;;  %v823_v22 = vmax.f32 %v821_v48, %v822_v0 }
  0xe0   :  { %v817_v8 = vmax.f32 %v815_v57, %v816_v1  ;;  %v837_v9 = vmax.f32 %v512_v58, %v836_v2  ;;  %v522_v10 = vadd.f32 %v8398_v17, %v521_v7  ;;  %v844_v13 = vrot.slane %v843_v5, 2 }
  0xe1   :  { %v834_v11 = vrot.slane %v833_v3, 1  ;;  %v827_v12 = vmax.f32 %v825_v60, %v826_v4  ;;  %v854_v14 = vrot.slane %v527_v6, 4  ;;  %v6903_v15 = vpop.f32.mrf.mxu0 }
  0xe2   :  { %v1251_v18 = vsel %vm1250_vm3, %v817_v8, %v1249_v63  ;;  %v838_v19 = vrot.slane %v837_v9, 2  ;;  %v848_v20 = vrot.slane %v522_v10, 4  ;;  %v537_v21 = vadd.f32 %v6903_v15, %v8398_v17 }
  0xe3   :  { %v835_v23 = vmax.f32 %v833_v3, %v834_v11  ;;  %v828_v25 = vrot.slane %v827_v12, 1  ;;  %v845_v26 = vmax.f32 %v843_v5, %v844_v13  ;;  %v531_v27 = vpop.f32.mrf.mxu0  ;;  %v855_v29 = vmax.f32 %v527_v6, %v854_v14 }
  0xe4   :  { %v839_v28 = vmax.f32 %v837_v9, %v838_v19  ;;  %v849_v30 = vmax.f32 %v522_v10, %v848_v20  ;;  %v866_v31 = vrot.slane %v537_v21, 4  ;;  %v1253_v33 = vsel %vm1252_vm4, %v823_v22, %v1251_v18 }
  0xe5   :  { %v829_v32 = vmax.f32 %v827_v12, %v828_v25  ;;  %v846_v34 = vrot.slane %v845_v26, 1  ;;  %v532_v35 = vadd.f32 %v8398_v17, %v531_v27  ;;  %v6906_v36 = vpop.f32.mrf.mxu0  ;;  %v856_v38 = vrot.slane %v855_v29, 2 }
  0xe6   :  { %v840_v37 = vrot.slane %v839_v28, 1  ;;  %v850_v39 = vrot.slane %v849_v30, 2  ;;  %v867_v40 = vmax.f32 %v537_v21, %v866_v31  ;;  %v547_v44 = vadd.f32 %v6906_v36, %v8398_v17 }
  0xe7   :  { %v1255_v41 = vsel %vm1254_vm5, %v829_v32, %v1253_v33  ;;  %v847_v42 = vmax.f32 %v845_v26, %v846_v34  ;;  %v860_v43 = vrot.slane %v532_v35, 4  ;;  %v541_v45 = vpop.f32.mrf.mxu0  ;;  %v857_v48 = vmax.f32 %v855_v29, %v856_v38 }
  0xe8   :  { %v1257_v46 = vsel %vm1256_vm6, %v835_v23, %v1255_v41  ;;  %v841_v47 = vmax.f32 %v839_v28, %v840_v37  ;;  %v851_v49 = vmax.f32 %v849_v30, %v850_v39  ;;  %v868_v51 = vrot.slane %v867_v40, 2 }
  0xe9   :  { %v861_v52 = vmax.f32 %v532_v35, %v860_v43  ;;  %v878_v53 = vrot.slane %v547_v44, 4  ;;  %v542_v54 = vadd.f32 %v8398_v17, %v541_v45  ;;  %v6909_v55 = vpop.f32.mrf.mxu0  ;;  %v858_v57 = vrot.slane %v857_v48, 1 }
  0xea   :  { %v1259_v56 = vsel %vm1258_vm7, %v841_v47, %v1257_v46  ;;  %v852_v58 = vrot.slane %v851_v49, 1  ;;  %v557_v59 = vadd.f32 %v6909_v55, %v8398_v17  ;;  %v869_v61 = vmax.f32 %v867_v40, %v868_v51 }
  0xeb   :  { %v8434_v60 = vsel %vm1260_vm8, %v847_v42, %v1259_v56  ;;  %v862_v62 = vrot.slane %v861_v52, 2  ;;  %v879_v63 = vmax.f32 %v547_v44, %v878_v53  ;;  %v551_v0 = vpop.f32.mrf.mxu0  ;;  %v859_v1 = vmax.f32 %v857_v48, %v858_v57 }
  0xec   :  { %1319 = vst [vmem:[#allocation2] sm:$0xff] %v8434_v60  ;;  %v853_v2 = vmax.f32 %v851_v49, %v852_v58  ;;  %v872_v3 = vrot.slane %v542_v54, 4  ;;  %v890_v4 = vrot.slane %v557_v59, 4  ;;  %v870_v5 = vrot.slane %v869_v61, 1 }
  0xed   :  { %v863_v6 = vmax.f32 %v861_v52, %v862_v62  ;;  %v880_v7 = vrot.slane %v879_v63, 2  ;;  %v552_v8 = vadd.f32 %v8398_v17, %v551_v0  ;;  %v6912_v9 = vpop.f32.mrf.mxu0 }
  0xee   :  { %v873_v10 = vmax.f32 %v542_v54, %v872_v3  ;;  %v891_v11 = vmax.f32 %v557_v59, %v890_v4  ;;  %v567_v12 = vadd.f32 %v6912_v9, %v8398_v17  ;;  %v1262_v13 = vsel %vm1248_vm2, %v859_v1, %v853_v2 }
  0xef   :  { %v864_v14 = vrot.slane %v863_v6, 1  ;;  %v881_v15 = vmax.f32 %v879_v63, %v880_v7  ;;  %v884_v16 = vrot.slane %v552_v8, 4  ;;  %v561_v18 = vpop.f32.mrf.mxu0  ;;  %v871_v23 = vmax.f32 %v869_v61, %v870_v5 }
  0xf0   :  { %v874_v19 = vrot.slane %v873_v10, 2  ;;  %v892_v20 = vrot.slane %v891_v11, 2  ;;  %v902_v21 = vrot.slane %v567_v12, 4  ;;  %v562_v22 = vadd.f32 %v8398_v17, %v561_v18 }
  0xf1   :  { %v865_v25 = vmax.f32 %v863_v6, %v864_v14  ;;  %v882_v26 = vrot.slane %v881_v15, 1  ;;  %v885_v27 = vmax.f32 %v552_v8, %v884_v16  ;;  %v6915_v28 = vpop.f32.mrf.mxu0 }
  0xf2   :  { %v875_v29 = vmax.f32 %v873_v10, %v874_v19  ;;  %v893_v30 = vmax.f32 %v891_v11, %v892_v20  ;;  %v903_v31 = vmax.f32 %v567_v12, %v902_v21  ;;  %v896_v32 = vrot.slane %v562_v22, 4 }
  0xf3   :  { %v1263_v33 = vsel %vm1250_vm3, %v865_v25, %v1262_v13  ;;  %v883_v34 = vmax.f32 %v881_v15, %v882_v26  ;;  %v886_v35 = vrot.slane %v885_v27, 2  ;;  %v577_v36 = vadd.f32 %v6915_v28, %v8398_v17  ;;  %v571_v37 = vpop.f32.mrf.mxu0 }
  0xf4   :  { %v876_v38 = vrot.slane %v875_v29, 1  ;;  %v1264_v39 = vsel %vm1252_vm4, %v871_v23, %v1263_v33  ;;  %v894_v40 = vrot.slane %v893_v30, 1  ;;  %v904_v41 = vrot.slane %v903_v31, 2 }
  0xf5   :  { %v887_v42 = vmax.f32 %v885_v27, %v886_v35  ;;  %v897_v43 = vmax.f32 %v562_v22, %v896_v32  ;;  %v914_v44 = vrot.slane %v577_v36, 4  ;;  %v572_v45 = vadd.f32 %v8398_v17, %v571_v37  ;;  %v6918_v46 = vpop.f32.mrf.mxu0 }
  0xf6   :  { %v877_v47 = vmax.f32 %v875_v29, %v876_v38  ;;  %v895_v48 = vmax.f32 %v893_v30, %v894_v40  ;;  %v905_v49 = vmax.f32 %v903_v31, %v904_v41  ;;  %v587_v51 = vadd.f32 %v6918_v46, %v8398_v17 }
  0xf7   :  { %v888_v52 = vrot.slane %v887_v42, 1  ;;  %v898_v53 = vrot.slane %v897_v43, 2  ;;  %v915_v54 = vmax.f32 %v577_v36, %v914_v44  ;;  %v908_v55 = vrot.slane %v572_v45, 4  ;;  %v581_v56 = vpop.f32.mrf.mxu0 }
  0xf8   :  { %v1265_v57 = vsel %vm1254_vm5, %v877_v47, %v1264_v39  ;;  %v906_v58 = vrot.slane %v905_v49, 1  ;;  %v926_v59 = vrot.slane %v587_v51, 4  ;;  %v582_v61 = vadd.f32 %v8398_v17, %v581_v56 }
  0xf9   :  { %v1266_v62 = vsel %vm1256_vm6, %v883_v34, %v1265_v57  ;;  %v889_v63 = vmax.f32 %v887_v42, %v888_v52  ;;  %v899_v0 = vmax.f32 %v897_v43, %v898_v53  ;;  %v916_v1 = vrot.slane %v915_v54, 2  ;;  %v6921_v2 = vpop.f32.mrf.mxu0 }
  0xfa   :  { %v907_v3 = vmax.f32 %v905_v49, %v906_v58  ;;  %v909_v4 = vmax.f32 %v572_v45, %v908_v55  ;;  %v927_v5 = vmax.f32 %v587_v51, %v926_v59  ;;  %v920_v6 = vrot.slane %v582_v61, 4 }
  0xfb   :  { %v1267_v7 = vsel %vm1258_vm7, %v889_v63, %v1266_v62  ;;  %v900_v8 = vrot.slane %v899_v0, 1  ;;  %v917_v9 = vmax.f32 %v915_v54, %v916_v1  ;;  %v597_v10 = vadd.f32 %v6921_v2, %v8398_v17  ;;  %v591_v11 = vpop.f32.mrf.mxu0 }
  0xfc   :  { %v1268_v12 = vsel %vm1260_vm8, %v895_v48, %v1267_v7  ;;  %v910_v13 = vrot.slane %v909_v4, 2  ;;  %v928_v14 = vrot.slane %v927_v5, 2  ;;  %v921_v15 = vmax.f32 %v582_v61, %v920_v6 }
  0xfd   :  { %1320 = vst [vmem:[#allocation2 + $0x8] sm:$0xff] %v1268_v12  ;;  %v901_v16 = vmax.f32 %v899_v0, %v900_v8  ;;  %v918_v18 = vrot.slane %v917_v9, 1  ;;  %v938_v19 = vrot.slane %v597_v10, 4  ;;  %v592_v20 = vadd.f32 %v8398_v17, %v591_v11  ;;  %v6924_v21 = vpop.f32.mrf.mxu0 }
  0xfe   :  { %v911_v22 = vmax.f32 %v909_v4, %v910_v13  ;;  %v929_v23 = vmax.f32 %v927_v5, %v928_v14  ;;  %v922_v25 = vrot.slane %v921_v15, 2  ;;  %v607_v26 = vadd.f32 %v6924_v21, %v8398_v17 }
  0xff   :  { %v1269_v27 = vsel %vm1248_vm2, %v907_v3, %v901_v16  ;;  %v919_v28 = vmax.f32 %v917_v9, %v918_v18  ;;  %v939_v29 = vmax.f32 %v597_v10, %v938_v19  ;;  %v932_v30 = vrot.slane %v592_v20, 4  ;;  %v601_v31 = vpop.f32.mrf.mxu0 }
 0x100   :  { %v912_v32 = vrot.slane %v911_v22, 1  ;;  %v930_v33 = vrot.slane %v929_v23, 1  ;;  %v923_v34 = vmax.f32 %v921_v15, %v922_v25  ;;  %v950_v35 = vrot.slane %v607_v26, 4 }
 0x101   :  { %v940_v36 = vrot.slane %v939_v29, 2  ;;  %v933_v37 = vmax.f32 %v592_v20, %v932_v30  ;;  %v602_v38 = vadd.f32 %v8398_v17, %v601_v31  ;;  %v6927_v39 = vpop.f32.mrf.mxu0  ;;  %v1335_v40 = vpack.c.bf16 %v1268_v12, %v8434_v60 }
 0x102   :  { %v913_v41 = vmax.f32 %v911_v22, %v912_v32  ;;  %v931_v42 = vmax.f32 %v929_v23, %v930_v33  ;;  %v924_v43 = vrot.slane %v923_v34, 1  ;;  %v951_v44 = vmax.f32 %v607_v26, %v950_v35 }
 0x103   :  { %v941_v45 = vmax.f32 %v939_v29, %v940_v36  ;;  %v934_v46 = vrot.slane %v933_v37, 2  ;;  %v944_v47 = vrot.slane %v602_v38, 4  ;;  %v617_v48 = vadd.f32 %v6927_v39, %v8398_v17  ;;  %v611_v49 = vpop.f32.mrf.mxu0  ;;  %6998 = vmatprep.mubr.bf16.mxu1 %v1335_v40 }
 0x104   :  { %v1270_v51 = vsel %vm1250_vm3, %v913_v41, %v1269_v27  ;;  %v925_v52 = vmax.f32 %v923_v34, %v924_v43  ;;  %v952_v53 = vrot.slane %v951_v44, 2  ;;  %v612_v54 = vadd.f32 %v8398_v17, %v611_v49 }
 0x105   :  { %v1271_v55 = vsel %vm1252_vm4, %v919_v28, %v1270_v51  ;;  %v942_v60 = vrot.slane %v941_v45, 1  ;;  %v935_v56 = vmax.f32 %v933_v37, %v934_v46  ;;  %v945_v57 = vmax.f32 %v602_v38, %v944_v47  ;;  %v6930_v58 = vpop.f32.mrf.mxu0 }
 0x106   :  { %v1272_v59 = vsel %vm1254_vm5, %v925_v52, %v1271_v55  ;;  %v953_v61 = vmax.f32 %v951_v44, %v952_v53  ;;  %v962_v62 = vrot.slane %v617_v48, 4  ;;  %v956_v63 = vrot.slane %v612_v54, 4 }
 0x107   :  { %v1273_v0 = vsel %vm1256_vm6, %v931_v42, %v1272_v59  ;;  %v936_v1 = vrot.slane %v935_v56, 1  ;;  %v946_v2 = vrot.slane %v945_v57, 2  ;;  %v621_v3 = vpop.f32.mrf.mxu0  ;;  %v627_v7 = vadd.f32 %v6930_v58, %v8398_v17 }
 0x108   :  { %v954_v4 = vrot.slane %v953_v61, 1  ;;  %v963_v5 = vmax.f32 %v617_v48, %v962_v62  ;;  %v957_v6 = vmax.f32 %v612_v54, %v956_v63  ;;  %v943_v8 = vmax.f32 %v941_v45, %v942_v60 }
 0x109   :  { %v937_v9 = vmax.f32 %v935_v56, %v936_v1  ;;  %v947_v10 = vmax.f32 %v945_v57, %v946_v2  ;;  %v622_v11 = vadd.f32 %v8398_v17, %v621_v3  ;;  %v6933_v12 = vpop.f32.mrf.mxu0  ;;  %v974_v16 = vrot.slane %v627_v7, 4 }
 0x10a   :  { %v955_v13 = vmax.f32 %v953_v61, %v954_v4  ;;  %v964_v14 = vrot.slane %v963_v5, 2  ;;  %v958_v15 = vrot.slane %v957_v6, 2  ;;  %v637_v21 = vadd.f32 %v6933_v12, %v8398_v17 }
 0x10b   :  { %v1274_v18 = vsel %vm1258_vm7, %v937_v9, %v1273_v0  ;;  %v948_v19 = vrot.slane %v947_v10, 1  ;;  %v968_v20 = vrot.slane %v622_v11, 4  ;;  %v631_v22 = vpop.f32.mrf.mxu0  ;;  %v975_v27 = vmax.f32 %v627_v7, %v974_v16 }
 0x10c   :  { %v8468_v23 = vsel %vm1260_vm8, %v943_v8, %v1274_v18  ;;  %v965_v25 = vmax.f32 %v963_v5, %v964_v14  ;;  %v959_v26 = vmax.f32 %v957_v6, %v958_v15  ;;  %v986_v30 = vrot.slane %v637_v21, 4 }
 0x10d   :  { %1321 = vst [vmem:[#allocation2 + $0x10] sm:$0xff] %v8468_v23  ;;  %v949_v28 = vmax.f32 %v947_v10, %v948_v19  ;;  %v969_v29 = vmax.f32 %v622_v11, %v968_v20  ;;  %v632_v31 = vadd.f32 %v8398_v17, %v631_v22  ;;  %v6936_v32 = vpop.f32.mrf.mxu0  ;;  %v976_v35 = vrot.slane %v975_v27, 2  ;;  %v1932_v20 = vld [vmem:[#allocation2 + $0x4] sm:$0xff] }
 0x10e   :  { %v966_v33 = vrot.slane %v965_v25, 1  ;;  %v960_v34 = vrot.slane %v959_v26, 1  ;;  %v647_v36 = vadd.f32 %v6936_v32, %v8398_v17  ;;  %v987_v38 = vmax.f32 %v637_v21, %v986_v30 }
 0x10f   :  { %v970_v37 = vrot.slane %v969_v29, 2  ;;  %v980_v39 = vrot.slane %v632_v31, 4  ;;  %v641_v40 = vpop.f32.mrf.mxu0  ;;  %v1276_v41 = vsel %vm1248_vm2, %v955_v13, %v949_v28  ;;  %v977_v43 = vmax.f32 %v975_v27, %v976_v35 }
 0x110   :  { %v961_v42 = vmax.f32 %v959_v26, %v960_v34  ;;  %v998_v44 = vrot.slane %v647_v36, 4  ;;  %v988_v46 = vrot.slane %v987_v38, 2  ;;  %v642_v48 = vadd.f32 %v8398_v17, %v641_v40 }
 0x111   :  { %v971_v45 = vmax.f32 %v969_v29, %v970_v37  ;;  %v981_v47 = vmax.f32 %v632_v31, %v980_v39  ;;  %v6939_v49 = vpop.f32.mrf.mxu0  ;;  %v967_v51 = vmax.f32 %v965_v25, %v966_v33  ;;  %v978_v55 = vrot.slane %v977_v43, 1 }
 0x112   :  { %v1277_v52 = vsel %vm1250_vm3, %v961_v42, %v1276_v41  ;;  %v999_v53 = vmax.f32 %v647_v36, %v998_v44  ;;  %v657_v54 = vadd.f32 %v6939_v49, %v8398_v17  ;;  %v989_v56 = vmax.f32 %v987_v38, %v988_v46 }
 0x113   :  { %v972_v60 = vrot.slane %v971_v45, 1  ;;  %v982_v57 = vrot.slane %v981_v47, 2  ;;  %v651_v58 = vpop.f32.mrf.mxu0  ;;  %v1278_v59 = vsel %vm1252_vm4, %v967_v51, %v1277_v52  ;;  %v992_v62 = vrot.slane %v642_v48, 4 }
 0x114   :  { %v1000_v61 = vrot.slane %v999_v53, 2  ;;  %v1010_v63 = vrot.slane %v657_v54, 4  ;;  %v990_v1 = vrot.slane %v989_v56, 1  ;;  %v652_v3 = vadd.f32 %v8398_v17, %v651_v58  ;;  %v1933_v9 = vld [vmem:[#allocation2 + $0xc] sm:$0xff] }
 0x115   :  { %v973_v0 = vmax.f32 %v971_v45, %v972_v60  ;;  %v983_v2 = vmax.f32 %v981_v47, %v982_v57  ;;  %v6942_v4 = vpop.f32.mrf.mxu0  ;;  %v993_v6 = vmax.f32 %v642_v48, %v992_v62  ;;  %v979_v10 = vmax.f32 %v977_v43, %v978_v55 }
 0x116   :  { %v1001_v5 = vmax.f32 %v999_v53, %v1000_v61  ;;  %v1011_v7 = vmax.f32 %v657_v54, %v1010_v63  ;;  %v667_v8 = vadd.f32 %v6942_v4, %v8398_v17  ;;  %v1004_v13 = vrot.slane %v652_v3, 4 }
 0x117   :  { %v1279_v11 = vsel %vm1254_vm5, %v973_v0, %v1278_v59  ;;  %v984_v12 = vrot.slane %v983_v2, 1  ;;  %v661_v14 = vpop.f32.mrf.mxu0  ;;  %v991_v15 = vmax.f32 %v989_v56, %v990_v1  ;;  %v994_v18 = vrot.slane %v993_v6, 2 }
 0x118   :  { %v1002_v16 = vrot.slane %v1001_v5, 1  ;;  %v1012_v19 = vrot.slane %v1011_v7, 2  ;;  %v1005_v22 = vmax.f32 %v652_v3, %v1004_v13  ;;  %v1022_v25 = vrot.slane %v667_v8, 4 }
 0x119   :  { %v985_v21 = vmax.f32 %v983_v2, %v984_v12  ;;  %v1940_v26 = vpack.c.bf16 %v1933_v9, %v1932_v20  ;;  %v6945_v27 = vpop.f32.mrf.mxu0  ;;  %v1280_v28 = vsel %vm1256_vm6, %v979_v10, %v1279_v11  ;;  %v995_v29 = vmax.f32 %v993_v6, %v994_v18 }
 0x11a   :  { %v1013_v30 = vmax.f32 %v1011_v7, %v1012_v19  ;;  %v662_v31 = vadd.f32 %v8398_v17, %v661_v14  ;;  %v1006_v33 = vrot.slane %v1005_v22, 2  ;;  %v1023_v34 = vmax.f32 %v667_v8, %v1022_v25 }
 0x11b   :  { %v1281_v32 = vsel %vm1258_vm7, %v985_v21, %v1280_v28  ;;  %7094 = vmatprep.mubr.bf16.mxu0 %v1940_v26  ;;  %v677_v35 = vadd.f32 %v6945_v27, %v8398_v17  ;;  %v671_v36 = vpop.f32.mrf.mxu0  ;;  %v1003_v38 = vmax.f32 %v1001_v5, %v1002_v16  ;;  %v996_v39 = vrot.slane %v995_v29, 1 }
 0x11c   :  { %v8486_v37 = vsel %vm1260_vm8, %v991_v15, %v1281_v32  ;;  %v1016_v40 = vrot.slane %v662_v31, 4  ;;  %v1007_v41 = vmax.f32 %v1005_v22, %v1006_v33  ;;  %v1024_v42 = vrot.slane %v1023_v34, 2 }
 0x11d   :  { %1322 = vst [vmem:[#allocation2 + $0x18] sm:$0xff] %v8486_v37  ;;  %v1034_v43 = vrot.slane %v677_v35, 4  ;;  %v672_v44 = vadd.f32 %v8398_v17, %v671_v36  ;;  %v6948_v45 = vpop.f32.mrf.mxu0  ;;  %v997_v46 = vmax.f32 %v995_v29, %v996_v39  ;;  %v1014_v47 = vrot.slane %v1013_v30, 1 }
 0x11e   :  { %v1017_v48 = vmax.f32 %v662_v31, %v1016_v40  ;;  %v687_v49 = vadd.f32 %v6948_v45, %v8398_v17  ;;  %v1008_v51 = vrot.slane %v1007_v41, 1  ;;  %v1025_v52 = vmax.f32 %v1023_v34, %v1024_v42  ;;  %v7617_v45 = vld [vmem:[%s9592_s3 + $0x70] sm:$0xff]  }
 0x11f   :  { %v1035_v53 = vmax.f32 %v677_v35, %v1034_v43  ;;  %v1028_v54 = vrot.slane %v672_v44, 4  ;;  %v681_v55 = vpop.f32.mrf.mxu0  ;;  %v1283_v60 = vsel %vm1248_vm2, %v1003_v38, %v997_v46  ;;  %v1015_v5 = vmax.f32 %v1013_v30, %v1014_v47 }
 0x120   :  { %v1018_v56 = vrot.slane %v1017_v48, 2  ;;  %v1046_v57 = vrot.slane %v687_v49, 4  ;;  %v682_v58 = vadd.f32 %v8398_v17, %v681_v55  ;;  %v1009_v59 = vmax.f32 %v1007_v41, %v1008_v51 }
 0x121   :  { %v1026_v61 = vrot.slane %v1025_v52, 1  ;;  %v1036_v62 = vrot.slane %v1035_v53, 2  ;;  %v1029_v63 = vmax.f32 %v672_v44, %v1028_v54  ;;  %v6951_v0 = vpop.f32.mrf.mxu0  ;;  %v1336_v44 = vpack.c.bf16 %v8486_v37, %v8468_v23 }
 0x122   :  { %v1019_v1 = vmax.f32 %v1017_v48, %v1018_v56  ;;  %v1047_v2 = vmax.f32 %v687_v49, %v1046_v57  ;;  %v1040_v3 = vrot.slane %v682_v58, 4  ;;  %v697_v4 = vadd.f32 %v6951_v0, %v8398_v17 }
 0x123   :  { %v1284_v6 = vsel %vm1250_vm3, %v1009_v59, %v1283_v60  ;;  %v1037_v7 = vmax.f32 %v1035_v53, %v1036_v62  ;;  %v1030_v8 = vrot.slane %v1029_v63, 2  ;;  %v691_v9 = vpop.f32.mrf.mxu0  ;;  %v1027_v10 = vmax.f32 %v1025_v52, %v1026_v61  ;;  %6999 = vmatmul.mubr.bf16.vlgmr.msra.gmra.mxu1 %v1336_v44  ;;  %v7619_v62 = vld [vmem:[%s9592_s3 + $0x68] sm:$0xff]  }
 0x124   :  { %v1020_v11 = vrot.slane %v1019_v1, 1  ;;  %v1048_v12 = vrot.slane %v1047_v2, 2  ;;  %v1041_v13 = vmax.f32 %v682_v58, %v1040_v3  ;;  %v1058_v16 = vrot.slane %v697_v4, 4  ;;  %7007 = vmatpush3.bf16.msra.mxu1 %v8405_v24 }
 0x125   :  { %v1038_v14 = vrot.slane %v1037_v7, 1  ;;  %v1031_v15 = vmax.f32 %v1029_v63, %v1030_v8  ;;  %v692_v18 = vadd.f32 %v8398_v17, %v691_v9  ;;  %v6954_v19 = vpop.f32.mrf.mxu0  ;;  %v1285_v26 = vsel %vm1252_vm4, %v1015_v5, %v1284_v6  ;;  %7008 = vmatprep.subr.bf16.mxu1 %v7617_v45 }
 0x126   :  { %v1021_v20 = vmax.f32 %v1019_v1, %v1020_v11  ;;  %v1049_v21 = vmax.f32 %v1047_v2, %v1048_v12  ;;  %v1042_v22 = vrot.slane %v1041_v13, 2  ;;  %v707_v25 = vadd.f32 %v6954_v19, %v8398_v17 }
 0x127   :  { %v1032_v27 = vrot.slane %v1031_v15, 1  ;;  %v1059_v28 = vmax.f32 %v697_v4, %v1058_v16  ;;  %v1052_v29 = vrot.slane %v692_v18, 4  ;;  %v701_v30 = vpop.f32.mrf.mxu0  ;;  %v1039_v32 = vmax.f32 %v1037_v7, %v1038_v14  ;;  %v7621_v16 = vld [vmem:[%s9592_s3 + $0x60] sm:$0xff]  }
 0x128   :  { %v1286_v31 = vsel %vm1254_vm5, %v1021_v20, %v1285_v26  ;;  %v1043_v33 = vmax.f32 %v1041_v13, %v1042_v22  ;;  %v1070_v34 = vrot.slane %v707_v25, 4  ;;  %v1050_v36 = vrot.slane %v1049_v21, 1  ;;  %7009 = vmatpush3.bf16.msra.mxu1 %v7617_v45 }
 0x129   :  { %v1033_v35 = vmax.f32 %v1031_v15, %v1032_v27  ;;  %v1060_v38 = vrot.slane %v1059_v28, 2  ;;  %v1053_v39 = vmax.f32 %v692_v18, %v1052_v29  ;;  %v6957_v40 = vpop.f32.mrf.mxu0  ;;  %v1287_v41 = vsel %vm1256_vm6, %v1027_v10, %v1286_v31  ;;  %7010 = vmatprep.subr.bf16.mxu1 %v7619_v62 }
 0x12a   :  { %v1044_v42 = vrot.slane %v1043_v33, 1  ;;  %v1071_v43 = vmax.f32 %v707_v25, %v1070_v34  ;;  %v702_v49 = vadd.f32 %v8398_v17, %v701_v30  ;;  %v717_v54 = vadd.f32 %v6957_v40, %v8398_v17 }
 0x12b   :  { %v1288_v46 = vsel %vm1258_vm7, %v1033_v35, %v1287_v41  ;;  %v1061_v47 = vmax.f32 %v1059_v28, %v1060_v38  ;;  %v1054_v48 = vrot.slane %v1053_v39, 2  ;;  %v711_v51 = vpop.f32.mrf.mxu0  ;;  %v1051_v63 = vmax.f32 %v1049_v21, %v1050_v36 }
 0x12c   :  { %v8508_v52 = vsel %vm1260_vm8, %v1039_v32, %v1288_v46  ;;  %v1072_v53 = vrot.slane %v1071_v43, 2  ;;  %v1045_v23 = vmax.f32 %v1043_v33, %v1044_v42  ;;  %v1064_v55 = vrot.slane %v702_v49, 4  ;;  %7011 = vmatpush3.bf16.msra.mxu1 %v7619_v62 }
 0x12d   :  { %1323 = vst [vmem:[#allocation2 + $0x20] sm:$0xff] %v8508_v52  ;;  %v1055_v37 = vmax.f32 %v1053_v39, %v1054_v48  ;;  %v712_v60 = vadd.f32 %v8398_v17, %v711_v51  ;;  %v6960_v56 = vpop.f32.mrf.mxu0  ;;  %v1062_v57 = vrot.slane %v1061_v47, 1  ;;  %v1082_v59 = vrot.slane %v717_v54, 4  ;;  %7012 = vmatprep.subr.bf16.mxu1 %v7621_v16  ;;  %v7623_v39 = vld [vmem:[%s9592_s3 + $0x58] sm:$0xff]  }
 0x12e   :  { %v1073_v58 = vmax.f32 %v1071_v43, %v1072_v53  ;;  %v727_v61 = vadd.f32 %v6960_v56, %v8398_v17  ;;  %v1065_v1 = vmax.f32 %v702_v49, %v1064_v55  ;;  %v1290_v7 = vsel %vm1248_vm2, %v1051_v63, %v1045_v23 }
 0x12f   :  { %v1056_v0 = vrot.slane %v1055_v37, 1  ;;  %v1076_v2 = vrot.slane %v712_v60, 4  ;;  %v721_v3 = vpop.f32.mrf.mxu0  ;;  %v1083_v5 = vmax.f32 %v717_v54, %v1082_v59  ;;  %v1063_v12 = vmax.f32 %v1061_v47, %v1062_v57  ;;  %v7625_v59 = vld [vmem:[%s9592_s3 + $0x50] sm:$0xff]  }
 0x130   :  { %v1074_v4 = vrot.slane %v1073_v58, 1  ;;  %v1094_v6 = vrot.slane %v727_v61, 4  ;;  %v722_v24 = vadd.f32 %v8398_v17, %v721_v3  ;;  %v1066_v9 = vrot.slane %v1065_v1, 2  ;;  %7013 = vmatpush3.bf16.msra.mxu1 %v7621_v16 }
 0x131   :  { %v1057_v8 = vmax.f32 %v1055_v37, %v1056_v0  ;;  %v1077_v10 = vmax.f32 %v712_v60, %v1076_v2  ;;  %v6963_v11 = vpop.f32.mrf.mxu0  ;;  %v1084_v13 = vrot.slane %v1083_v5, 2  ;;  %7014 = vmatprep.subr.bf16.mxu1 %v7623_v39  ;;  %v7618_v2 = vld [vmem:[%s9592_s3 + $0x1b0] sm:$0xff]  }
 0x132   :  { %v1095_v14 = vmax.f32 %v727_v61, %v1094_v6  ;;  %v1088_v15 = vrot.slane %v722_v24, 4  ;;  %v1075_v18 = vmax.f32 %v1073_v58, %v1074_v4  ;;  %v1067_v19 = vmax.f32 %v1065_v1, %v1066_v9  ;;  %v1934_v58 = vld [vmem:[#allocation2 + $0x14] sm:$0xff] }
 0x133   :  { %v1078_v20 = vrot.slane %v1077_v10, 2  ;;  %v737_v21 = vadd.f32 %v6963_v11, %v8398_v17  ;;  %v731_v22 = vpop.f32.mrf.mxu0  ;;  %v1291_v25 = vsel %vm1250_vm3, %v1057_v8, %v1290_v7  ;;  %v1085_v26 = vmax.f32 %v1083_v5, %v1084_v13 }
 0x134   :  { %v1096_v27 = vrot.slane %v1095_v14, 2  ;;  %v1089_v28 = vmax.f32 %v722_v24, %v1088_v15  ;;  %v1068_v29 = vrot.slane %v1067_v19, 1  ;;  %v732_v32 = vadd.f32 %v8398_v17, %v731_v22  ;;  %v1935_v49 = vld [vmem:[#allocation2 + $0x1c] sm:$0xff]  ;;  %7015 = vmatpush3.bf16.msra.mxu1 %v7623_v39 }
 0x135   :  { %v1079_v30 = vmax.f32 %v1077_v10, %v1078_v20  ;;  %v1106_v31 = vrot.slane %v737_v21, 4  ;;  %v6966_v33 = vpop.f32.mrf.mxu0  ;;  %v1086_v34 = vrot.slane %v1085_v26, 1  ;;  %v1292_v45 = vsel %vm1252_vm4, %v1063_v12, %v1291_v25  ;;  %v8547_v12 = vld [vmem:[%s9622_s2] ss:$0 sm:$0xff]  ;;  %7016 = vmatprep.subr.bf16.mxu1 %v7625_v59  ;;  %v7620_v20 = vld [vmem:[%s9592_s3 + $0x1a8] sm:$0xff]  }
 0x136   :  { %v1097_v35 = vmax.f32 %v1095_v14, %v1096_v27  ;;  %v1090_v36 = vrot.slane %v1089_v28, 2  ;;  %v747_v38 = vadd.f32 %v6966_v33, %v8398_v17  ;;  %v1069_v40 = vmax.f32 %v1067_v19, %v1068_v29  ;;  %v7627_v14 = vld [vmem:[%s9592_s3 + $0x48] sm:$0xff]  }
 0x137   :  { %v1080_v41 = vrot.slane %v1079_v30, 1  ;;  %v1107_v42 = vmax.f32 %v737_v21, %v1106_v31  ;;  %v1100_v43 = vrot.slane %v732_v32, 4  ;;  %v741_v44 = vpop.f32.mrf.mxu0  ;;  %v1087_v46 = vmax.f32 %v1085_v26, %v1086_v34 }
 0x138   :  { %v1091_v47 = vmax.f32 %v1089_v28, %v1090_v36  ;;  %v1118_v48 = vrot.slane %v747_v38, 4  ;;  %v1293_v51 = vsel %vm1254_vm5, %v1069_v40, %v1292_v45  ;;  %v1098_v60 = vrot.slane %v1097_v35, 1  ;;  %7017 = vmatpush3.bf16.msra.mxu1 %v7625_v59 }
 0x139   :  { %v1081_v53 = vmax.f32 %v1079_v30, %v1080_v41  ;;  %v1108_v54 = vrot.slane %v1107_v42, 2  ;;  %v1101_v23 = vmax.f32 %v732_v32, %v1100_v43  ;;  %v6969_v37 = vpop.f32.mrf.mxu0  ;;  %v1294_v55 = vsel %vm1256_vm6, %v1075_v18, %v1293_v51  ;;  %7018 = vmatprep.subr.bf16.mxu1 %v7627_v14 }
 0x13a   :  { %v1092_v56 = vrot.slane %v1091_v47, 1  ;;  %v1119_v57 = vmax.f32 %v747_v38, %v1118_v48  ;;  %v1941_v0 = vpack.c.bf16 %v1935_v49, %v1934_v58  ;;  %v742_v5 = vadd.f32 %v8398_v17, %v741_v44 }
 0x13b   :  { %v1295_v61 = vsel %vm1258_vm7, %v1081_v53, %v1294_v55  ;;  %v1109_v62 = vmax.f32 %v1107_v42, %v1108_v54  ;;  %v1102_v63 = vrot.slane %v1101_v23, 2  ;;  %v751_v1 = vpop.f32.mrf.mxu0  ;;  %v757_v24 = vadd.f32 %v6969_v37, %v8398_v17  ;;  %v8573_v55 = vld [vmem:[%s9592_s3 + $0xb8] sm:$0xff]  }
 0x13c   :  { %v1296_v3 = vsel %vm1260_vm8, %v1087_v46, %v1295_v61  ;;  %v1120_v4 = vrot.slane %v1119_v57, 2  ;;  %7095 = vmatmul.mubr.bf16.vlgmr.msra.gmra.mxu0 %v1941_v0  ;;  %v752_v7 = vadd.f32 %v8398_v17, %v751_v1  ;;  %v1099_v9 = vmax.f32 %v1097_v35, %v1098_v60  ;;  %v7629_v35 = vld [vmem:[%s9592_s3 + $0x40] sm:$0xff]   ;;  %7019 = vmatpush3.bf16.msra.mxu1 %v7627_v14  ;;  %v7624_v61 = vld [vmem:[%s9592_s3 + $0x198] sm:$0xff]  }
 0x13d   :  { %1324 = vst [vmem:[#allocation2 + $0x28] sm:$0xff] %v1296_v3  ;;  %v1103_v6 = vmax.f32 %v1101_v23, %v1102_v63  ;;  %v6972_v8 = vpop.f32.mrf.mxu0  ;;  %v1093_v10 = vmax.f32 %v1091_v47, %v1092_v56  ;;  %v1112_v11 = vrot.slane %v742_v5, 4  ;;  %7127 = vmatpush3.bf16.msra.mxu0 %v8415_v50  ;;  %v1110_v17 = vrot.slane %v1109_v62, 1  ;;  %7020 = vmatprep.subr.bf16.mxu1 %v7629_v35 }
 0x13e   :  { %v767_v13 = vadd.f32 %v8547_v12, %v6972_v8  ;;  %v1130_v16 = vrot.slane %v757_v24, 4  ;;  %v1124_v18 = vrot.slane %v752_v7, 4  ;;  %7128 = vmatprep.subr.bf16.mxu0 %v7618_v2  ;;  %v1121_v21 = vmax.f32 %v1119_v57, %v1120_v4 }
 0x13f   :  { %v1104_v15 = vrot.slane %v1103_v6, 1  ;;  %v761_v19 = vpop.f32.mrf.mxu0  ;;  %v1113_v22 = vmax.f32 %v742_v5, %v1112_v11  ;;  %v1337_v30 = vpack.c.bf16 %v1296_v3, %v8508_v52  ;;  %v1297_v31 = vsel %vm1248_vm2, %v1099_v9, %v1093_v10  ;;  %v7622_v52 = vld [vmem:[%s9592_s3 + $0x1a0] sm:$0xff]  }
 0x140   :  { %v1142_v25 = vrot.slane %v767_v13, 4  ;;  %v762_v50 = vadd.f32 %v8547_v12, %v761_v19  ;;  %v1131_v27 = vmax.f32 %v757_v24, %v1130_v16  ;;  %v1125_v28 = vmax.f32 %v752_v7, %v1124_v18  ;;  %7021 = vmatpush3.bf16.msra.mxu1 %v7629_v35 }
 0x141   :  { %v1105_v26 = vmax.f32 %v1103_v6, %v1104_v15  ;;  %v6975_v29 = vpop.f32.mrf.mxu0  ;;  %v1114_v32 = vrot.slane %v1113_v22, 2  ;;  %7129 = vmatpush3.bf16.msra.mxu0 %v7618_v2  ;;  %v1111_v36 = vmax.f32 %v1109_v62, %v1110_v17  ;;  %7002 = vmatprep.mubr.bf16.mxu1 %v1337_v30  ;;  %v1122_v43 = vrot.slane %v1121_v21, 1  ;;  %v7626_v17 = vld [vmem:[%s9592_s3 + $0x190] sm:$0xff]   ;;  %v7628_v30 = vld [vmem:[%s9592_s3 + $0x188] sm:$0xff]  }
 0x142   :  { %v1143_v33 = vmax.f32 %v767_v13, %v1142_v25  ;;  %v1136_v34 = vrot.slane %v762_v50, 4  ;;  %v1132_v38 = vrot.slane %v1131_v27, 2  ;;  %v1126_v39 = vrot.slane %v1125_v28, 2  ;;  %7130 = vmatprep.subr.bf16.mxu0 %v7620_v20  ;;  %7030 = vmatprep.subr.bf16.mxu1 %v8573_v55 }
 0x143   :  { %v777_v40 = vadd.f32 %v8547_v12, %v6975_v29  ;;  %v771_v41 = vpop.f32.mrf.mxu0  ;;  %v1298_v42 = vsel %vm1250_vm3, %v1105_v26, %v1297_v31  ;;  %v1115_v44 = vmax.f32 %v1113_v22, %v1114_v32  ;;  %v1123_v1 = vmax.f32 %v1121_v21, %v1122_v43 }
 0x144   :  { %v1137_v45 = vmax.f32 %v762_v50, %v1136_v34  ;;  %v1133_v46 = vmax.f32 %v1131_v27, %v1132_v38  ;;  %v1127_v47 = vmax.f32 %v1125_v28, %v1126_v39  ;;  %v772_v49 = vadd.f32 %v8547_v12, %v771_v41 }
 0x145   :  { %v1154_v48 = vrot.slane %v777_v40, 4  ;;  %v6978_v51 = vpop.f32.mrf.mxu0  ;;  %v1116_v53 = vrot.slane %v1115_v44, 1  ;;  %v1144_v54 = vrot.slane %v1143_v33, 2  ;;  %7131 = vmatpush3.bf16.msra.mxu0 %v7620_v20  ;;  %v1299_v2 = vsel %vm1252_vm4, %v1111_v36, %v1298_v42 }
 0x146   :  { %v1138_v23 = vrot.slane %v1137_v45, 2  ;;  %v787_v37 = vadd.f32 %v8547_v12, %v6978_v51  ;;  %v1134_v60 = vrot.slane %v1133_v46, 1  ;;  %v1128_v56 = vrot.slane %v1127_v47, 1  ;;  %7132 = vmatprep.subr.bf16.mxu0 %v7622_v52 }
 0x147   :  { %v1155_v57 = vmax.f32 %v777_v40, %v1154_v48  ;;  %v1148_v58 = vrot.slane %v772_v49, 4  ;;  %v781_v59 = vpop.f32.mrf.mxu0  ;;  %v1117_v62 = vmax.f32 %v1115_v44, %v1116_v53  ;;  %v1145_v24 = vmax.f32 %v1143_v33, %v1144_v54  ;;  %v1936_v48 = vld [vmem:[#allocation2 + $0x24] sm:$0xff] }
 0x148   :  { %v1139_v63 = vmax.f32 %v1137_v45, %v1138_v23  ;;  %v1166_v0 = vrot.slane %v787_v37, 4  ;;  %v1129_v3 = vmax.f32 %v1127_v47, %v1128_v56  ;;  %v1135_v9 = vmax.f32 %v1133_v46, %v1134_v60 }
 0x149   :  { %v1149_v4 = vmax.f32 %v772_v49, %v1148_v58  ;;  %v6981_v5 = vpop.f32.mrf.mxu0  ;;  %v1300_v6 = vsel %vm1254_vm5, %v1117_v62, %v1299_v2  ;;  %v1156_v7 = vrot.slane %v1155_v57, 2  ;;  %7133 = vmatpush3.bf16.msra.mxu0 %v7622_v52  ;;  %v782_v13 = vadd.f32 %v8547_v12, %v781_v59  ;;  %v7630_v52 = vld [vmem:[%s9592_s3 + $0x180] sm:$0xff]  }
 0x14a   :  { %v1167_v8 = vmax.f32 %v787_v37, %v1166_v0  ;;  %v1301_v10 = vsel %vm1256_vm6, %v1123_v1, %v1300_v6  ;;  %7134 = vmatprep.subr.bf16.mxu0 %v7624_v61  ;;  %v1140_v16 = vrot.slane %v1139_v63, 1  ;;  %v797_v18 = vadd.f32 %v8547_v12, %v6981_v5  ;;  %v1483_v0 = vld [vmem:[#allocation2 + $0x9] sm:$0xff]  ;;  %v1485_v5 = vld [vmem:[#allocation2 + $0x19] sm:$0xff] }
 0x14b   :  { %v1150_v11 = vrot.slane %v1149_v4, 2  ;;  %v791_v14 = vpop.f32.mrf.mxu0  ;;  %v1302_v15 = vsel %vm1258_vm7, %v1129_v3, %v1301_v10  ;;  %v1160_v22 = vrot.slane %v782_v13, 4  ;;  %v1146_v25 = vrot.slane %v1145_v24, 1  ;;  %v1482_v3 = vld [vmem:[#allocation2 + $0x1] sm:$0xff]  ;;  %v2233_v6 = vld [vmem:[#allocation2 + $0xe] sm:$0xff] }
 0x14c   :  { %v1303_v19 = vsel %vm1260_vm8, %v1135_v9, %v1302_v15  ;;  %v1168_v21 = vrot.slane %v1167_v8, 2  ;;  %v1157_v50 = vmax.f32 %v1155_v57, %v1156_v7  ;;  %v1178_v26 = vrot.slane %v797_v18, 4  ;;  %v1486_v15 = vld [vmem:[#allocation2 + $0x21] sm:$0xff] }
 0x14d   :  { %v1151_v20 = vmax.f32 %v1149_v4, %v1150_v11  ;;  %1325 = vst [vmem:[#allocation2 + $0x30] sm:$0xff] %v1303_v19  ;;  %v792_v27 = vadd.f32 %v8547_v12, %v791_v14  ;;  %7135 = vmatpush3.bf16.msra.mxu0 %v7624_v61  ;;  %v1161_v29 = vmax.f32 %v782_v13, %v1160_v22  ;;  %v2232_v11 = vld [vmem:[#allocation2 + $0x6] sm:$0xff]  ;;  %v7632_v14 = vld [vmem:[%s9592_s3 + $0xb0] sm:$0xff]  }
 0x14e   :  { %7136 = vmatprep.subr.bf16.mxu0 %v7626_v17  ;;  %v1141_v31 = vmax.f32 %v1139_v63, %v1140_v16  ;;  %v1179_v32 = vmax.f32 %v797_v18, %v1178_v26  ;;  %v1169_v35 = vmax.f32 %v1167_v8, %v1168_v21  ;;  %v1147_v38 = vmax.f32 %v1145_v24, %v1146_v25  ;;  %v1484_v24 = vld [vmem:[#allocation2 + $0x11] sm:$0xff]  ;;  %v7633_v18 = vld [vmem:[%s9592_s3 + $0xa8] sm:$0xff]  }
 0x14f   :  { %v1152_v28 = vrot.slane %v1151_v20, 1  ;;  %v1172_v33 = vrot.slane %v792_v27, 4  ;;  %v1162_v36 = vrot.slane %v1161_v29, 2  ;;  %v1158_v39 = vrot.slane %v1157_v50, 1  ;;  %v2234_v25 = vld [vmem:[#allocation2 + $0x16] sm:$0xff] }
 0x150   :  { %v1180_v40 = vrot.slane %v1179_v32, 2  ;;  %v1304_v42 = vsel %vm1248_vm2, %v1147_v38, %v1141_v31  ;;  %v1170_v46 = vrot.slane %v1169_v35, 1  ;;  %v1490_v4 = vpack.c.bf16 %v1483_v0, %v1482_v3  ;;  %v7637_v38 = vld [vmem:[%s9592_s3 + $0x88] sm:$0xff]  }
 0x151   :  { %v1153_v34 = vmax.f32 %v1151_v20, %v1152_v28  ;;  %v1173_v41 = vmax.f32 %v792_v27, %v1172_v33  ;;  %7137 = vmatpush3.bf16.msra.mxu0 %v7626_v17  ;;  %v1163_v12 = vmax.f32 %v1161_v29, %v1162_v36  ;;  %v1159_v51 = vmax.f32 %v1157_v50, %v1158_v39  ;;  %v1633_v50 = vld [vmem:[#allocation2 + $0xa] sm:$0xff]  ;;  %v7638_v39 = vld [vmem:[%s9592_s3 + $0x80] sm:$0xff]  }
 0x152   :  { %7138 = vmatprep.subr.bf16.mxu0 %v7628_v30  ;;  %v1181_v43 = vmax.f32 %v1179_v32, %v1180_v40  ;;  %v1171_v57 = vmax.f32 %v1169_v35, %v1170_v46  ;;  %v1491_v13 = vpack.c.bf16 %v1485_v5, %v1484_v24  ;;  %v2240_v17 = vpack.c.bf16 %v2233_v6, %v2232_v11  ;;  %v2236_v27 = vld [vmem:[#allocation2 + $0x26] sm:$0xff]  ;;  %v7635_v32 = vld [vmem:[%s9592_s3 + $0x98] sm:$0xff]   ;;  %v7636_v36 = vld [vmem:[%s9592_s3 + $0x90] sm:$0xff]  }
 0x153   :  { %v1174_v44 = vrot.slane %v1173_v41, 2  ;;  %v1305_v45 = vsel %vm1250_vm3, %v1153_v34, %v1304_v42  ;;  %v1164_v47 = vrot.slane %v1163_v12, 1  ;;  %v7639_v40 = vld [vmem:[%s9592_s3 + $0xf8] sm:$0xff]   ;;  %v7641_v46 = vld [vmem:[%s9592_s3 + $0xe8] sm:$0xff]   ;;  %v7652_v11 = vld [vmem:[%s9592_s3 + $0x150] sm:$0xff]  }
 0x154   :  { %v1937_v49 = vld [vmem:[#allocation2 + $0x2c] sm:$0xff]  ;;  %v1182_v37 = vrot.slane %v1181_v43, 1  ;;  %v1306_v60 = vsel %vm1252_vm4, %v1159_v51, %v1305_v45  ;;  %v1786_v0 = vld [vmem:[#allocation2 + $0x23] sm:$0xff] }
 0x155   :  { %v1175_v53 = vmax.f32 %v1173_v41, %v1174_v44  ;;  %v1942_v54 = vpack.c.bf16 %v1937_v49, %v1936_v48  ;;  %7139 = vmatpush3.bf16.msra.mxu0 %v7628_v30  ;;  %v1165_v23 = vmax.f32 %v1163_v12, %v1164_v47  ;;  %v1487_v9 = vld [vmem:[#allocation2 + $0x29] sm:$0xff]  ;;  %v1635_v41 = vld [vmem:[#allocation2 + $0x1a] sm:$0xff] }
 0x156   :  { %7140 = vmatprep.subr.bf16.mxu0 %v7630_v52  ;;  %v1183_v61 = vmax.f32 %v1181_v43, %v1182_v37  ;;  %v1492_v16 = vpack.c.bf16 %v1487_v9, %v1486_v15  ;;  %v2237_v22 = vld [vmem:[#allocation2 + $0x2e] sm:$0xff]  ;;  %v1632_v30 = vld [vmem:[#allocation2 + $0x2] sm:$0xff]  ;;  %v7643_v37 = vld [vmem:[%s9592_s3 + $0xd8] sm:$0xff]  }
 0x157   :  { %v1176_v56 = vrot.slane %v1175_v53, 1  ;;  %7098 = vmatprep.mubr.bf16.mxu0 %v1942_v54  ;;  %v1307_v58 = vsel %vm1254_vm5, %v1165_v23, %v1306_v60  ;;  %v2242_v29 = vpack.c.bf16 %v2237_v22, %v2236_v27  ;;  %v1640_v31 = vpack.c.bf16 %v1633_v50, %v1632_v30  ;;  %v1637_v12 = vld [vmem:[#allocation2 + $0x2a] sm:$0xff]  ;;  %v1636_v43 = vld [vmem:[#allocation2 + $0x22] sm:$0xff] }
 0x158   :  { %v1308_v62 = vsel %vm1256_vm6, %v1171_v57, %v1307_v58  ;;  %v7640_v44 = vld [vmem:[%s9592_s3 + $0xf0] sm:$0xff]   ;;  %v1642_v45 = vpack.c.bf16 %v1637_v12, %v1636_v43  ;;  %v7642_v54 = vld [vmem:[%s9592_s3 + $0xe0] sm:$0xff]   ;;  %v7647_v58 = vld [vmem:[%s9592_s3 + $0x178] sm:$0xff]  }
 0x159   :  { %v1177_v59 = vmax.f32 %v1175_v53, %v1176_v56  ;;  %7141 = vmatpush3.bf16.msra.mxu0 %v7630_v52  ;;  %v1634_v52 = vld [vmem:[#allocation2 + $0x12] sm:$0xff]  ;;  %v1782_v53 = vld [vmem:[#allocation2 + $0x3] sm:$0xff] }
 0x15a   :  { %v1641_v42 = vpack.c.bf16 %v1635_v41, %v1634_v52  ;;  %v1783_v49 = vld [vmem:[#allocation2 + $0xb] sm:$0xff]  ;;  %v7646_v57 = vld [vmem:[%s9592_s3 + $0xc0] sm:$0xff]  }
 0x15b   :  { %v1309_v63 = vsel %vm1258_vm7, %v1177_v59, %v1308_v62  ;;  %v1790_v23 = vpack.c.bf16 %v1783_v49, %v1782_v53  ;;  %v7644_v60 = vld [vmem:[%s9592_s3 + $0xd0] sm:$0xff]   ;;  %v7645_v56 = vld [vmem:[%s9592_s3 + $0xc8] sm:$0xff]   ;;  %v1785_v59 = vld [vmem:[#allocation2 + $0x1b] sm:$0xff] }
 0x15c   :  { %v1310_v1 = vsel %vm1260_vm8, %v1183_v61, %v1309_v63  ;;  %v1787_v61 = vld [vmem:[#allocation2 + $0x2b] sm:$0xff]  ;;  %v1784_v62 = vld [vmem:[#allocation2 + $0x13] sm:$0xff]  ;;  %v2085_v15 = vld [vmem:[#allocation2 + $0x1d] sm:$0xff] }
 0x15d   :  { %1326 = vst [vmem:[#allocation2 + $0x38] sm:$0xff] %v1310_v1  ;;  %v1338_v2 = vpack.c.bf16 %v1310_v1, %v1303_v19  ;;  %v2235_v19 = vld [vmem:[#allocation2 + $0x1e] sm:$0xff]  ;;  %v1791_v63 = vpack.c.bf16 %v1785_v59, %v1784_v62  ;;  %v7648_v1 = vld [vmem:[%s9592_s3 + $0x170] sm:$0xff]   ;;  %v7649_v3 = vld [vmem:[%s9592_s3 + $0x168] sm:$0xff]  }
 0x15e   :  { %v2241_v26 = vpack.c.bf16 %v2235_v19, %v2234_v25  ;;  %v2083_v6 = vld [vmem:[#allocation2 + $0xd] sm:$0xff]  ;;  %v7671_v59 = vld [vmem:[%s9594_s5 + $0x18] sm:$0xff]  }
 0x15f   :  { %7003 = vmatmul.mubr.bf16.gmra.mxu1 %v1338_v2  ;;  %v1792_v2 = vpack.c.bf16 %v1787_v61, %v1786_v0  ;;  %v7657_v25 = vld [vmem:[%s9592_s3 + $0x1e8] sm:$0xff]   ;;  %v7672_v62 = vld [vmem:[%s9594_s5 + $0x58] sm:$0xff]  }
 0x160   :  { %7022 = vmatprep.mubr.bf16.mxu1 %v1490_v4  ;;  %v2383_v27 = vld [vmem:[#allocation2 + $0xf] sm:$0xff] }
 0x161   :  { %v7668_v53 = vld [vmem:[%s9594_s5 + $0x68] sm:$0xff]  }
 0x164   :  { %v1938_v7 = vld [vmem:[#allocation2 + $0x34] sm:$0xff]  ;;  %v1939_v8 = vld [vmem:[#allocation2 + $0x3c] sm:$0xff] }
 0x165   :  { %v1943_v10 = vpack.c.bf16 %v1939_v8, %v1938_v7  ;;  %v1488_v20 = vld [vmem:[#allocation2 + $0x31] sm:$0xff]  ;;  %v1489_v21 = vld [vmem:[#allocation2 + $0x39] sm:$0xff]  ;;  %v2082_v7 = vld [vmem:[#allocation2 + $0x5] sm:$0xff] }
 0x166   :  { %v1493_v28 = vpack.c.bf16 %v1489_v21, %v1488_v20  ;;  %v2238_v33 = vld [vmem:[#allocation2 + $0x36] sm:$0xff]  ;;  %v2239_v34 = vld [vmem:[#allocation2 + $0x3e] sm:$0xff]  ;;  %v2090_v9 = vpack.c.bf16 %v2083_v6, %v2082_v7 }
 0x167   :  { %7099 = vmatmul.mubr.bf16.gmra.mxu0 %v1943_v10  ;;  %7023 = vmatmul.mubr.bf16.vlgmr.msra.gmra.mxu1 %v1491_v13  ;;  %v2243_v35 = vpack.c.bf16 %v2239_v34, %v2238_v33  ;;  %v1638_v47 = vld [vmem:[#allocation2 + $0x32] sm:$0xff]  ;;  %v1639_v48 = vld [vmem:[#allocation2 + $0x3a] sm:$0xff]  ;;  %v7653_v13 = vld [vmem:[%s9592_s3 + $0x148] sm:$0xff]  }
 0x168   :  { %7142 = vmatprep.mubr.bf16.mxu0 %v2240_v17  ;;  %7031 = vmatpush3.bf16.msra.mxu1 %v8573_v55  ;;  %v7634_v55 = vld [vmem:[%s9592_s3 + $0xa0] sm:$0xff]   ;;  %v1643_v51 = vpack.c.bf16 %v1639_v48, %v1638_v47  ;;  %v1788_v4 = vld [vmem:[#allocation2 + $0x33] sm:$0xff]  ;;  %v7661_v33 = vld [vmem:[%s9592_s3 + $0x1c8] sm:$0xff]  }
 0x169   :  { %7026 = vmatprep.mubr.bf16.mxu1 %v1492_v16  ;;  %7032 = vmatprep.subr.bf16.mxu1 %v7632_v14  ;;  %v1789_v5 = vld [vmem:[#allocation2 + $0x3b] sm:$0xff]  ;;  %v2087_v16 = vld [vmem:[#allocation2 + $0x2d] sm:$0xff]  ;;  %v2086_v20 = vld [vmem:[#allocation2 + $0x25] sm:$0xff] }
 0x16a   :  { %v1793_v24 = vpack.c.bf16 %v1789_v5, %v1788_v4  ;;  %v7650_v8 = vld [vmem:[%s9592_s3 + $0x160] sm:$0xff]   ;;  %v7651_v10 = vld [vmem:[%s9592_s3 + $0x158] sm:$0xff]   ;;  %v7656_v21 = vld [vmem:[%s9592_s3 + $0x1f0] sm:$0xff]   ;;  %v2092_v22 = vpack.c.bf16 %v2087_v16, %v2086_v20 }
 0x16b   :  { %v7655_v17 = vld [vmem:[%s9592_s3 + $0x1f8] sm:$0xff]   ;;  %v7662_v34 = vld [vmem:[%s9592_s3 + $0x1c0] sm:$0xff]   ;;  %v7665_v47 = vld [vmem:[%s9594_s5 + $0x30] sm:$0xff]  }
 0x16c   :  { %7033 = vmatpush3.bf16.msra.mxu1 %v7632_v14  ;;  %v7654_v14 = vld [vmem:[%s9592_s3 + $0x140] sm:$0xff]   ;;  %v2088_v50 = vld [vmem:[#allocation2 + $0x35] sm:$0xff]  ;;  %v7676_v4 = vld [vmem:[%s9594_s5 + $0x48] sm:$0xff]  }
 0x16d   :  { %7034 = vmatprep.subr.bf16.mxu1 %v7633_v18  ;;  %v2388_v12 = vld [vmem:[#allocation2 + $0x37] sm:$0xff]  ;;  %v2389_v52 = vld [vmem:[#allocation2 + $0x3f] sm:$0xff] }
 0x16e   :  { %v7666_v48 = vld [vmem:[%s9594_s5 + $0x70] sm:$0xff]   ;;  %v7677_v5 = vld [vmem:[%s9594_s5] sm:$0xff]  }
 0x16f   :  { %7143 = vmatmul.mubr.bf16.vlgmr.msra.gmra.mxu0 %v2241_v26  ;;  %7027 = vmatmul.mubr.bf16.gmra.mxu1 %v1493_v28  ;;  %v2089_v26 = vld [vmem:[#allocation2 + $0x3d] sm:$0xff] }
 0x170   :  { %7146 = vmatprep.mubr.bf16.mxu0 %v2242_v29  ;;  %7035 = vmatpush3.bf16.msra.mxu1 %v7633_v18  ;;  %v2084_v18 = vld [vmem:[#allocation2 + $0x15] sm:$0xff]  ;;  %v2093_v28 = vpack.c.bf16 %v2089_v26, %v2088_v50  ;;  %v7658_v29 = vld [vmem:[%s9592_s3 + $0x1e0] sm:$0xff]  }
 0x171   :  { %7046 = vmatprep.mubr.bf16.mxu1 %v1640_v31  ;;  %7036 = vmatprep.subr.bf16.mxu1 %v7634_v55  ;;  %v2091_v19 = vpack.c.bf16 %v2085_v15, %v2084_v18  ;;  %v7659_v31 = vld [vmem:[%s9592_s3 + $0x1d8] sm:$0xff]   ;;  %v7678_v6 = vld [vmem:[%s9594_s5 + $0x40] sm:$0xff]  }
 0x174   :  { %7037 = vmatpush3.bf16.msra.mxu1 %v7634_v55  ;;  %v2382_v55 = vld [vmem:[#allocation2 + $0x7] sm:$0xff] }
 0x175   :  { %7038 = vmatprep.subr.bf16.mxu1 %v7635_v32  ;;  %v2390_v30 = vpack.c.bf16 %v2383_v27, %v2382_v55 }
 0x177   :  { %7147 = vmatmul.mubr.bf16.gmra.mxu0 %v2243_v35  ;;  %v2385_v35 = vld [vmem:[#allocation2 + $0x1f] sm:$0xff] }
 0x178   :  { %7039 = vmatpush3.bf16.msra.mxu1 %v7635_v32  ;;  %v7660_v32 = vld [vmem:[%s9592_s3 + $0x1d0] sm:$0xff]  }
 0x179   :  { %7040 = vmatprep.subr.bf16.mxu1 %v7636_v36 }
 0x17c   :  { %7041 = vmatpush3.bf16.msra.mxu1 %v7636_v36  ;;  %v2387_v36 = vld [vmem:[#allocation2 + $0x2f] sm:$0xff] }
 0x17d   :  { %7042 = vmatprep.subr.bf16.mxu1 %v7637_v38 }
 0x180   :  { %7043 = vmatpush3.bf16.msra.mxu1 %v7637_v38  ;;  %v2384_v38 = vld [vmem:[#allocation2 + $0x17] sm:$0xff] }
 0x181   :  { %7044 = vmatprep.subr.bf16.mxu1 %v7638_v39 }
 0x184   :  { %7045 = vmatpush3.bf16.msra.mxu1 %v7638_v39  ;;  %v2391_v39 = vpack.c.bf16 %v2385_v35, %v2384_v38 }
 0x185   :  { %7054 = vmatprep.subr.bf16.mxu1 %v7639_v40 }
 0x187   :  { %7047 = vmatmul.mubr.bf16.vlgmr.msra.gmra.mxu1 %v1641_v42  ;;  %v2393_v42 = vpack.c.bf16 %v2389_v52, %v2388_v12 }
 0x188   :  { %7050 = vmatprep.mubr.bf16.mxu1 %v1642_v45  ;;  %7055 = vmatpush3.bf16.msra.mxu1 %v7639_v40  ;;  %v2386_v40 = vld [vmem:[#allocation2 + $0x27] sm:$0xff]  ;;  %v7663_v45 = vld [vmem:[%s9594_s5 + $0x38] sm:$0xff]  }
 0x189   :  { %7056 = vmatprep.subr.bf16.mxu1 %v7640_v44  ;;  %v2392_v41 = vpack.c.bf16 %v2387_v36, %v2386_v40  ;;  %7174 = vmatprep.subr.bf16.mxu0 %v7663_v45 }
 0x18a   :  { %7175 = vmatpush3.bf16.msra.mxu0 %v7663_v45 }
 0x18b   :  { %7176 = vmatprep.subr.bf16.mxu0 %v7665_v47 }
 0x18c   :  { %7057 = vmatpush3.bf16.msra.mxu1 %v7640_v44 }
 0x18d   :  { %7058 = vmatprep.subr.bf16.mxu1 %v7641_v46 }
 0x18e   :  { %7177 = vmatpush3.bf16.msra.mxu0 %v7665_v47 }
 0x18f   :  { %7051 = vmatmul.mubr.bf16.gmra.mxu1 %v1643_v51  ;;  %v7667_v51 = vld [vmem:[%s9594_s5 + $0x28] sm:$0xff]  }
 0x190   :  { %7059 = vmatpush3.bf16.msra.mxu1 %v7641_v46  ;;  %7070 = vmatprep.mubr.bf16.mxu1 %v1790_v23  ;;  %v7664_v46 = vld [vmem:[%s9594_s5 + $0x78] sm:$0xff]   ;;  %v7669_v23 = vld [vmem:[%s9594_s5 + $0x20] sm:$0xff]  }
 0x191   :  { %7060 = vmatprep.subr.bf16.mxu1 %v7642_v54  ;;  %7178 = vmatprep.subr.bf16.mxu0 %v7667_v51 }
 0x192   :  { %7179 = vmatpush3.bf16.msra.mxu0 %v7667_v51 }
 0x193   :  { %7180 = vmatprep.subr.bf16.mxu0 %v7669_v23 }
 0x194   :  { %7061 = vmatpush3.bf16.msra.mxu1 %v7642_v54 }
 0x195   :  { %7062 = vmatprep.subr.bf16.mxu1 %v7643_v37 }
 0x196   :  { %7181 = vmatpush3.bf16.msra.mxu0 %v7669_v23 }
 0x197   :  { %7182 = vmatprep.subr.bf16.mxu0 %v7671_v59 }
 0x198   :  { %7063 = vmatpush3.bf16.msra.mxu1 %v7643_v37 }
 0x199   :  { %7064 = vmatprep.subr.bf16.mxu1 %v7644_v60 }
 0x19a   :  { %7183 = vmatpush3.bf16.msra.mxu0 %v7671_v59 }
 0x19c   :  { %7065 = vmatpush3.bf16.msra.mxu1 %v7644_v60 }
 0x19d   :  { %7066 = vmatprep.subr.bf16.mxu1 %v7645_v56 }
 0x1a0   :  { %7067 = vmatpush3.bf16.msra.mxu1 %v7645_v56 }
 0x1a1   :  { %7068 = vmatprep.subr.bf16.mxu1 %v7646_v57 }
 0x1a4   :  { %7069 = vmatpush3.bf16.msra.mxu1 %v7646_v57 }
 0x1a5   :  { %7102 = vmatprep.subr.bf16.mxu1 %v7647_v58 }
 0x1a7   :  { %7071 = vmatmul.mubr.bf16.vlgmr.msra.gmra.mxu1 %v1791_v63  ;;  %v7673_v63 = vld [vmem:[%s9594_s5 + $0x10] sm:$0xff]  }
 0x1a8   :  { %7074 = vmatprep.mubr.bf16.mxu1 %v1792_v2  ;;  %7103 = vmatpush3.bf16.msra.mxu1 %v7647_v58  ;;  %v7670_v58 = vld [vmem:[%s9594_s5 + $0x60] sm:$0xff]   ;;  %v7675_v2 = vld [vmem:[%s9594_s5 + $0x8] sm:$0xff]  }
 0x1a9   :  { %7104 = vmatprep.subr.bf16.mxu1 %v7648_v1  ;;  %7184 = vmatprep.subr.bf16.mxu0 %v7673_v63 }
 0x1aa   :  { %7185 = vmatpush3.bf16.msra.mxu0 %v7673_v63 }
 0x1ab   :  { %7186 = vmatprep.subr.bf16.mxu0 %v7675_v2 }
 0x1ac   :  { %7105 = vmatpush3.bf16.msra.mxu1 %v7648_v1  ;;  %v7674_v1 = vld [vmem:[%s9594_s5 + $0x50] sm:$0xff]  }
 0x1ad   :  { %7106 = vmatprep.subr.bf16.mxu1 %v7649_v3 }
 0x1ae   :  { %7187 = vmatpush3.bf16.msra.mxu0 %v7675_v2 }
 0x1af   :  { %7075 = vmatmul.mubr.bf16.gmra.mxu1 %v1793_v24  ;;  %7188 = vmatprep.subr.bf16.mxu0 %v7677_v5  ;;  %v8768_v24 = vld [vmem:[%s9594_s5 + $0xb8] sm:$0xff]  }
 0x1b0   :  { %7107 = vmatpush3.bf16.msra.mxu1 %v7649_v3  ;;  %7118 = vmatprep.mubr.bf16.mxu1 %v2090_v9 }
 0x1b1   :  { %7108 = vmatprep.subr.bf16.mxu1 %v7650_v8 }
 0x1b2   :  { %7189 = vmatpush3.bf16.msra.mxu0 %v7677_v5 }
 0x1b3   :  { %7222 = vmatprep.subr.bf16.mxu0 %v8768_v24 }
 0x1b4   :  { %7109 = vmatpush3.bf16.msra.mxu1 %v7650_v8  ;;  %v8774_v8 = vld [vmem:[%s9594_s5 + $0xf8] sm:$0xff]  }
 0x1b5   :  { %7110 = vmatprep.subr.bf16.mxu1 %v7651_v10  ;;  %9623 = vst [vmem:[#allocation12_spill] sm:$0xff] %v8774_v8 }
 0x1b8   :  { %7111 = vmatpush3.bf16.msra.mxu1 %v7651_v10 }
 0x1b9   :  { %7112 = vmatprep.subr.bf16.mxu1 %v7652_v11 }
 0x1bc   :  { %7113 = vmatpush3.bf16.msra.mxu1 %v7652_v11 }
 0x1bd   :  { %7114 = vmatprep.subr.bf16.mxu1 %v7653_v13 }
 0x1c0   :  { %7115 = vmatpush3.bf16.msra.mxu1 %v7653_v13 }
 0x1c1   :  { %7116 = vmatprep.subr.bf16.mxu1 %v7654_v14 }
 0x1c4   :  { %7117 = vmatpush3.bf16.msra.mxu1 %v7654_v14 }
 0x1c5   :  { %7150 = vmatprep.subr.bf16.mxu1 %v7655_v17 }
 0x1c7   :  { %7119 = vmatmul.mubr.bf16.vlgmr.msra.gmra.mxu1 %v2091_v19 }
 0x1c8   :  { %7122 = vmatprep.mubr.bf16.mxu1 %v2092_v22  ;;  %7151 = vmatpush3.bf16.msra.mxu1 %v7655_v17 }
 0x1c9   :  { %7152 = vmatprep.subr.bf16.mxu1 %v7656_v21 }
 0x1cc   :  { %7153 = vmatpush3.bf16.msra.mxu1 %v7656_v21 }
 0x1cd   :  { %7154 = vmatprep.subr.bf16.mxu1 %v7657_v25 }
 0x1cf   :  { %7123 = vmatmul.mubr.bf16.gmra.mxu1 %v2093_v28 }
 0x1d0   :  { %7155 = vmatpush3.bf16.msra.mxu1 %v7657_v25  ;;  %7166 = vmatprep.mubr.bf16.mxu1 %v2390_v30 }
 0x1d1   :  { %7156 = vmatprep.subr.bf16.mxu1 %v7658_v29 }
 0x1d4   :  { %7157 = vmatpush3.bf16.msra.mxu1 %v7658_v29 }
 0x1d5   :  { %7158 = vmatprep.subr.bf16.mxu1 %v7659_v31 }
 0x1d8   :  { %7159 = vmatpush3.bf16.msra.mxu1 %v7659_v31 }
 0x1d9   :  { %7160 = vmatprep.subr.bf16.mxu1 %v7660_v32 }
 0x1dc   :  { %7161 = vmatpush3.bf16.msra.mxu1 %v7660_v32 }
 0x1dd   :  { %7162 = vmatprep.subr.bf16.mxu1 %v7661_v33 }
 0x1e0   :  { %7163 = vmatpush3.bf16.msra.mxu1 %v7661_v33 }
 0x1e1   :  { %7164 = vmatprep.subr.bf16.mxu1 %v7662_v34 }
 0x1e3   :  { %v8697_v43 = vpop.f32.mrf.mxu1 }
 0x1e4   :  { %7165 = vmatpush3.bf16.msra.mxu1 %v7662_v34 }
 0x1e5   :  { %v8699_v44 = vpop.f32.mrf.mxu1  ;;  %7198 = vmatprep.subr.bf16.mxu1 %v7664_v46 }
 0x1e7   :  { %7167 = vmatmul.mubr.bf16.vlgmr.msra.gmra.mxu1 %v2391_v39  ;;  %v8713_v49 = vpop.f32.mrf.mxu1 }
 0x1e8   :  { %7170 = vmatprep.mubr.bf16.mxu1 %v2392_v41  ;;  %7199 = vmatpush3.bf16.msra.mxu1 %v7664_v46  ;;  %v5920_v41 = vld [vmem:[%s9593_s4] ss:$0 sm:$0xff] }
 0x1e9   :  { %7200 = vmatprep.subr.bf16.mxu1 %v7666_v48  ;;  %v8721_v54 = vpop.f32.mrf.mxu1  ;;  %v1474_v46 = vadd.f32 %v5920_v41, %v8699_v44  ;;  %v1477_v51 = vadd.f32 %v8713_v49, %v5920_v41 }
 0x1ea   :  { %v1475_v59 = vadd.f32 %v5920_v41, %v8721_v54 }
 0x1ec   :  { %7201 = vmatpush3.bf16.msra.mxu1 %v7666_v48 }
 0x1ed   :  { %7202 = vmatprep.subr.bf16.mxu1 %v7668_v53 }
 0x1ef   :  { %7171 = vmatmul.mubr.bf16.gmra.mxu1 %v2393_v42  ;;  %v1476_v42 = vadd.f32 %v8697_v43, %v5920_v41 }
 0x1f0   :  { %7203 = vmatpush3.bf16.msra.mxu1 %v7668_v53 }
 0x1f1   :  { %7204 = vmatprep.subr.bf16.mxu1 %v7670_v58 }
 0x1f4   :  { %7205 = vmatpush3.bf16.msra.mxu1 %v7670_v58 }
 0x1f5   :  { %7206 = vmatprep.subr.bf16.mxu1 %v7672_v62 }
 0x1f8   :  { %7207 = vmatpush3.bf16.msra.mxu1 %v7672_v62 }
 0x1f9   :  { %7208 = vmatprep.subr.bf16.mxu1 %v7674_v1 }
 0x1fc   :  { %7209 = vmatpush3.bf16.msra.mxu1 %v7674_v1  ;;  %v7096_v27 = vpop.f32.mrf.mxu0 }
 0x1fd   :  { %7210 = vmatprep.subr.bf16.mxu1 %v7676_v4 }
 0x1fe   :  { %v2043_v55 = vpop.f32.mrf.mxu0 }
 0x200   :  { %7211 = vmatpush3.bf16.msra.mxu1 %v7676_v4  ;;  %v7097_v30 = vpop.f32.mrf.mxu0 }
 0x201   :  { %7212 = vmatprep.subr.bf16.mxu1 %v7678_v6 }
 0x202   :  { %v2046_v32 = vpop.f32.mrf.mxu0 }
 0x204   :  { %7213 = vmatpush3.bf16.msra.mxu1 %v7678_v6 }
 0x205   :  { %7246 = vmatprep.subr.bf16.mxu1 %v8774_v8 }
 0x21f   :  { %v8726_v37 = vpop.f32.mrf.mxu1 }
 0x220   :  { %v1480_v2 = vadd.f32 %v8726_v37, %v5920_v41 }
 0x221   :  { %v8728_v60 = vpop.f32.mrf.mxu1 }
 0x223   :  { %v8730_v56 = vpop.f32.mrf.mxu1 }
 0x225   :  { %v8732_v57 = vpop.f32.mrf.mxu1 }
 0x226   :  { %v1479_v37 = vadd.f32 %v5920_v41, %v8732_v57 }
 0x227   :  { %v8740_v61 = vpop.f32.mrf.mxu1  ;;  %v7100_v33 = vpop.f32.mrf.mxu0 }
 0x228   :  { %v1626_v47 = vadd.f32 %v8740_v61, %v1476_v42  ;;  %v1478_v42 = vadd.f32 %v5920_v41, %v8728_v60 }
 0x229   :  { %v8748_v0 = vpop.f32.mrf.mxu1  ;;  %v8783_v36 = vpop.f32.mrf.mxu0 }
 0x22a   :  { %v1624_v53 = vadd.f32 %v8748_v0, %v1474_v46 }
 0x22b   :  { %v7025_v3 = vpop.f32.mrf.mxu1  ;;  %v8785_v39 = vpop.f32.mrf.mxu0 }
 0x22c   :  { %v1627_v62 = vadd.f32 %v7025_v3, %v1477_v51 }
 0x22d   :  { %v1596_v7 = vpop.f32.mrf.mxu1  ;;  %v8790_v12 = vpop.f32.mrf.mxu0 }
 0x22e   :  { %v1625_v4 = vadd.f32 %v1596_v7, %v1475_v59 }
 0x22f   :  { %v7028_v9 = vpop.f32.mrf.mxu1  ;;  %v7144_v45 = vpop.f32.mrf.mxu0 }
 0x230   :  { %v1630_v61 = vadd.f32 %v7028_v9, %v1480_v2 }
 0x231   :  { %v1609_v10 = vpop.f32.mrf.mxu1  ;;  %v2343_v58 = vpop.f32.mrf.mxu0 }
 0x232   :  { %v1628_v3 = vadd.f32 %v1609_v10, %v1478_v42 }
 0x233   :  { %v8777_v11 = vpop.f32.mrf.mxu1  ;;  %v7145_v6 = vpop.f32.mrf.mxu0 }
 0x235   :  { %v8779_v13 = vpop.f32.mrf.mxu1  ;;  %v2346_v7 = vpop.f32.mrf.mxu0 }
 0x247   :  { %v7048_v14 = vpop.f32.mrf.mxu1 }
 0x248   :  { %v1776_v23 = vadd.f32 %v7048_v14, %v1626_v47  ;;  %v1481_v14 = vadd.f32 %v8730_v56, %v5920_v41 }
 0x249   :  { %v1743_v17 = vpop.f32.mrf.mxu1 }
 0x24a   :  { %v1774_v63 = vadd.f32 %v1743_v17, %v1624_v53 }
 0x24b   :  { %v7049_v15 = vpop.f32.mrf.mxu1 }
 0x24c   :  { %v1777_v5 = vadd.f32 %v7049_v15, %v1627_v62  ;;  %v1631_v15 = vadd.f32 %v8777_v11, %v1481_v14 }
 0x24d   :  { %v1746_v16 = vpop.f32.mrf.mxu1 }
 0x24e   :  { %v1775_v49 = vadd.f32 %v1746_v16, %v1625_v4  ;;  %v1629_v16 = vadd.f32 %v8779_v13, %v1479_v37 }
 0x24f   :  { %v7052_v18 = vpop.f32.mrf.mxu1 }
 0x250   :  { %v1780_v46 = vadd.f32 %v7052_v18, %v1630_v61 }
 0x251   :  { %v1759_v19 = vpop.f32.mrf.mxu1 }
 0x252   :  { %v1778_v9 = vadd.f32 %v1759_v19, %v1628_v3 }
 0x253   :  { %v7053_v20 = vpop.f32.mrf.mxu1 }
 0x255   :  { %v8781_v21 = vpop.f32.mrf.mxu1 }
 0x267   :  { %v7072_v22 = vpop.f32.mrf.mxu1 }
 0x268   :  { %v1926_v1 = vadd.f32 %v7072_v22, %v1776_v23 }
 0x269   :  { %v1893_v25 = vpop.f32.mrf.mxu1 }
 0x26a   :  { %v1924_v44 = vadd.f32 %v1893_v25, %v1774_v63  ;;  %v2076_v0 = vadd.f32 %v7096_v27, %v1926_v1 }
 0x26b   :  { %v7073_v50 = vpop.f32.mrf.mxu1 }
 0x26c   :  { %v1927_v8 = vadd.f32 %v7073_v50, %v1777_v5  ;;  %v2074_v47 = vadd.f32 %v2043_v55, %v1924_v44  ;;  %v1781_v50 = vadd.f32 %v7053_v20, %v1631_v15  ;;  %v1779_v55 = vadd.f32 %v8781_v21, %v1629_v16  ;;  %v9624_v16 = vld [vmem:[#allocation12_spill] sm:$0xff] }
 0x26d   :  { %v1896_v26 = vpop.f32.mrf.mxu1 }
 0x26e   :  { %v1925_v17 = vadd.f32 %v1896_v26, %v1775_v49  ;;  %v2077_v60 = vadd.f32 %v7097_v30, %v1927_v8  ;;  %v7148_v26 = vpop.f32.mrf.mxu0 }
 0x26f   :  { %v7076_v28 = vpop.f32.mrf.mxu1 }
 0x270   :  { %v1930_v25 = vadd.f32 %v7076_v28, %v1780_v46  ;;  %v2075_v53 = vadd.f32 %v2046_v32, %v1925_v17  ;;  %v2359_v30 = vpop.f32.mrf.mxu0 }
 0x271   :  { %v1909_v29 = vpop.f32.mrf.mxu1 }
 0x272   :  { %v1928_v56 = vadd.f32 %v1909_v29, %v1778_v9 }
 0x273   :  { %v7077_v31 = vpop.f32.mrf.mxu1 }
 0x274   :  { %v1931_v41 = vadd.f32 %v7077_v31, %v1781_v50  ;;  %v2078_v13 = vadd.f32 %v8783_v36, %v1928_v56  ;;  %v7149_v36 = vpop.f32.mrf.mxu0 }
 0x275   :  { %v1912_v34 = vpop.f32.mrf.mxu1 }
 0x276   :  { %v1929_v19 = vadd.f32 %v1912_v34, %v1779_v55  ;;  %v2362_v44 = vpop.f32.mrf.mxu0 }
 0x278   :  { %v2079_v31 = vadd.f32 %v8790_v12, %v1929_v19  ;;  %v7693_v19 = vld [vmem:[%s9594_s5 + $0x80] sm:$0xff]  }
 0x287   :  { %v7120_v35 = vpop.f32.mrf.mxu1 }
 0x288   :  { %v2226_v22 = vadd.f32 %v7120_v35, %v2076_v0  ;;  %v2080_v35 = vadd.f32 %v7100_v33, %v1930_v25  ;;  %v7683_v0 = vld [vmem:[%s9594_s5 + $0xa8] sm:$0xff]  }
 0x289   :  { %v2193_v38 = vpop.f32.mrf.mxu1 }
 0x28a   :  { %v2224_v51 = vadd.f32 %v2193_v38, %v2074_v47  ;;  %v2376_v10 = vadd.f32 %v7144_v45, %v2226_v22  ;;  %v2081_v45 = vadd.f32 %v8785_v39, %v1931_v41  ;;  %v7681_v39 = vld [vmem:[%s9594_s5 + $0xb0] sm:$0xff]   ;;  %v7686_v41 = vld [vmem:[%s9594_s5 + $0xe0] sm:$0xff]  }
 0x28b   :  { %v7121_v40 = vpop.f32.mrf.mxu1 }
 0x28c   :  { %v2227_v18 = vadd.f32 %v7121_v40, %v2077_v60  ;;  %v2374_v28 = vadd.f32 %v2343_v58, %v2224_v51  ;;  %v7682_v51 = vld [vmem:[%s9594_s5 + $0xf0] sm:$0xff]   ;;  %v7687_v60 = vld [vmem:[%s9594_s5 + $0x98] sm:$0xff]  }
 0x28d   :  { %v2196_v52 = vpop.f32.mrf.mxu1 }
 0x28e   :  { %v2225_v23 = vadd.f32 %v2196_v52, %v2075_v53  ;;  %v2377_v29 = vadd.f32 %v7145_v6, %v2227_v18  ;;  %v7684_v18 = vld [vmem:[%s9594_s5 + $0xe8] sm:$0xff]  }
 0x28f   :  { %v7124_v48 = vpop.f32.mrf.mxu1 }
 0x290   :  { %v2230_v8 = vadd.f32 %v7124_v48, %v2080_v35  ;;  %v2375_v33 = vadd.f32 %v2346_v7, %v2225_v23 }
 0x291   :  { %v2209_v43 = vpop.f32.mrf.mxu1 }
 0x292   :  { %v2228_v40 = vadd.f32 %v2209_v43, %v2078_v13  ;;  %v2380_v48 = vadd.f32 %v7148_v26, %v2230_v8  ;;  %v7689_v26 = vld [vmem:[%s9594_s5 + $0x90] sm:$0xff]   ;;  %v7695_v8 = vld [vmem:[%s9594_s5 + $0x138] sm:$0xff]  }
 0x293   :  { %v7125_v54 = vpop.f32.mrf.mxu1 }
 0x294   :  { %v2231_v58 = vadd.f32 %v7125_v54, %v2081_v45  ;;  %v2378_v2 = vadd.f32 %v2359_v30, %v2228_v40  ;;  %v7692_v30 = vld [vmem:[%s9594_s5 + $0xc8] sm:$0xff]  }
 0x295   :  { %v2212_v27 = vpop.f32.mrf.mxu1 }
 0x296   :  { %v2229_v63 = vadd.f32 %v2212_v27, %v2079_v31  ;;  %v2381_v5 = vadd.f32 %v7149_v36, %v2231_v58  ;;  %v7699_v58 = vld [vmem:[%s9594_s5 + $0x128] sm:$0xff]  }
 0x298   :  { %v2379_v42 = vadd.f32 %v2362_v44, %v2229_v63  ;;  %v7703_v44 = vld [vmem:[%s9594_s5 + $0x118] sm:$0xff]  }
 0x2a7   :  { %v7168_v57 = vpop.f32.mrf.mxu1 }
 0x2a8   :  { %v2526_v11 = vadd.f32 %v7168_v57, %v2376_v10 }
 0x2a9   :  { %v2493_v38 = vpop.f32.mrf.mxu1 }
 0x2aa   :  { %2534 = vst [vmem:[#allocation3 + $0x10] sm:$0xff] %v2526_v11  ;;  %v2524_v20 = vadd.f32 %v2493_v38, %v2374_v28  ;;  %v7688_v28 = vld [vmem:[%s9594_s5 + $0xd8] sm:$0xff]   ;;  %v7690_v38 = vld [vmem:[%s9594_s5 + $0xd0] sm:$0xff]  }
 0x2ab   :  { %v7169_v32 = vpop.f32.mrf.mxu1 }
 0x2ac   :  { %2532 = vst [vmem:[#allocation3] sm:$0xff] %v2524_v20  ;;  %v2527_v21 = vadd.f32 %v7169_v32, %v2377_v29 }
 0x2ad   :  { %v2496_v52 = vpop.f32.mrf.mxu1 }
 0x2ae   :  { %2535 = vst [vmem:[#allocation3 + $0x18] sm:$0xff] %v2527_v21  ;;  %v2525_v34 = vadd.f32 %v2496_v52, %v2375_v33  ;;  %v2549_v59 = vpack.c.bf16 %v2527_v21, %v2526_v11  ;;  %v7691_v11 = vld [vmem:[%s9594_s5 + $0x88] sm:$0xff]   ;;  %v7697_v21 = vld [vmem:[%s9594_s5 + $0x130] sm:$0xff]   ;;  %v7694_v33 = vld [vmem:[%s9594_s5 + $0xc0] sm:$0xff]  }
 0x2af   :  { %v7172_v62 = vpop.f32.mrf.mxu1 }
 0x2b0   :  { %2533 = vst [vmem:[#allocation3 + $0x8] sm:$0xff] %v2525_v34  ;;  %v2530_v1 = vadd.f32 %v7172_v62, %v2380_v48  ;;  %v2548_v43 = vpack.c.bf16 %v2525_v34, %v2524_v20 }
 0x2b1   :  { %v2509_v4 = vpop.f32.mrf.mxu1 }
 0x2b2   :  { %2538 = vst [vmem:[#allocation3 + $0x30] sm:$0xff] %v2530_v1  ;;  %v2528_v12 = vadd.f32 %v2509_v4, %v2378_v2  ;;  %7190 = vmatprep.mubr.bf16.mxu0 %v2548_v43  ;;  %v7701_v43 = vld [vmem:[%s9594_s5 + $0x120] sm:$0xff]  }
 0x2b3   :  { %v7173_v6 = vpop.f32.mrf.mxu1  ;;  %7191 = vmatmul.mubr.bf16.vlgmr.msra.gmra.mxu0 %v2549_v59  ;;  %v7696_v59 = vld [vmem:[%s9594_s5 + $0x178] sm:$0xff]  }
 0x2b4   :  { %2536 = vst [vmem:[#allocation3 + $0x20] sm:$0xff] %v2528_v12  ;;  %v2531_v61 = vadd.f32 %v7173_v6, %v2381_v5  ;;  %7223 = vmatpush3.bf16.msra.mxu0 %v8768_v24  ;;  %v7685_v24 = vld [vmem:[%s9594_s5 + $0xa0] sm:$0xff]   ;;  %v7700_v6 = vld [vmem:[%s9594_s5 + $0x168] sm:$0xff]  }
 0x2b5   :  { %v2512_v49 = vpop.f32.mrf.mxu1  ;;  %7224 = vmatprep.subr.bf16.mxu0 %v7681_v39  ;;  %v2697_v15 = vld [vmem:[#allocation3 + $0x11] sm:$0xff] }
 0x2b6   :  { %2539 = vst [vmem:[#allocation3 + $0x38] sm:$0xff] %v2531_v61  ;;  %v2529_v14 = vadd.f32 %v2512_v49, %v2379_v42  ;;  %v2551_v46 = vpack.c.bf16 %v2531_v61, %v2530_v1  ;;  %v2847_v32 = vld [vmem:[#allocation3 + $0x12] sm:$0xff] }
 0x2b7   :  { %v2695_v54 = vld [vmem:[#allocation3 + $0x1] sm:$0xff]  ;;  %v2696_v3 = vld [vmem:[#allocation3 + $0x9] sm:$0xff]  ;;  %v2997_v4 = vld [vmem:[#allocation3 + $0x13] sm:$0xff] }
 0x2b8   :  { %v2845_v17 = vld [vmem:[#allocation3 + $0x2] sm:$0xff]  ;;  %2537 = vst [vmem:[#allocation3 + $0x28] sm:$0xff] %v2529_v14  ;;  %v2703_v22 = vpack.c.bf16 %v2696_v3, %v2695_v54  ;;  %7225 = vmatpush3.bf16.msra.mxu0 %v7681_v39  ;;  %v2550_v47 = vpack.c.bf16 %v2529_v14, %v2528_v12  ;;  %v2846_v37 = vld [vmem:[#allocation3 + $0xa] sm:$0xff]  ;;  %v7702_v54 = vld [vmem:[%s9594_s5 + $0x160] sm:$0xff]  }
 0x2b9   :  { %7226 = vmatprep.subr.bf16.mxu0 %v7683_v0  ;;  %v2853_v7 = vpack.c.bf16 %v2846_v37, %v2845_v17  ;;  %v2995_v55 = vld [vmem:[#allocation3 + $0x3] sm:$0xff]  ;;  %v2996_v35 = vld [vmem:[#allocation3 + $0xb] sm:$0xff] }
 0x2ba   :  { %7214 = vmatprep.mubr.bf16.mxu1 %v2703_v22  ;;  %7194 = vmatprep.mubr.bf16.mxu0 %v2550_v47  ;;  %v3003_v23 = vpack.c.bf16 %v2996_v35, %v2995_v55  ;;  %v3145_v34 = vld [vmem:[#allocation3 + $0x4] sm:$0xff]  ;;  %v3146_v48 = vld [vmem:[#allocation3 + $0xc] sm:$0xff]  ;;  %v7709_v47 = vld [vmem:[%s9594_s5 + $0x100] sm:$0xff]  }
 0x2bb   :  { %v2698_v25 = vld [vmem:[#allocation3 + $0x19] sm:$0xff]  ;;  %7195 = vmatmul.mubr.bf16.gmra.mxu0 %v2551_v46  ;;  %v3153_v2 = vpack.c.bf16 %v3146_v48, %v3145_v34  ;;  %v7698_v12 = vld [vmem:[%s9594_s5 + $0x170] sm:$0xff]   ;;  %v7704_v22 = vld [vmem:[%s9594_s5 + $0x158] sm:$0xff]  }
 0x2bc   :  { %v2704_v9 = vpack.c.bf16 %v2698_v25, %v2697_v15  ;;  %7227 = vmatpush3.bf16.msra.mxu0 %v7683_v0  ;;  %7238 = vmatprep.mubr.bf16.mxu0 %v2853_v7  ;;  %v2848_v13 = vld [vmem:[#allocation3 + $0x1a] sm:$0xff]  ;;  %v3295_v49 = vld [vmem:[#allocation3 + $0x5] sm:$0xff]  ;;  %v3296_v0 = vld [vmem:[#allocation3 + $0xd] sm:$0xff] }
 0x2bd   :  { %7228 = vmatprep.subr.bf16.mxu0 %v7685_v24  ;;  %v2701_v53 = vld [vmem:[#allocation3 + $0x31] sm:$0xff]  ;;  %v2702_v10 = vld [vmem:[#allocation3 + $0x39] sm:$0xff]  ;;  %v2854_v40 = vpack.c.bf16 %v2848_v13, %v2847_v32  ;;  %v7705_v14 = vld [vmem:[%s9594_s5 + $0x110] sm:$0xff]   ;;  %v3303_v3 = vpack.c.bf16 %v3296_v0, %v3295_v49 }
 0x2be   :  { %7215 = vmatmul.mubr.bf16.vlgmr.msra.gmra.mxu1 %v2704_v9  ;;  %v2706_v57 = vpack.c.bf16 %v2702_v10, %v2701_v53  ;;  %v2851_v31 = vld [vmem:[#allocation3 + $0x32] sm:$0xff]  ;;  %v2852_v52 = vld [vmem:[#allocation3 + $0x3a] sm:$0xff]  ;;  %v7706_v37 = vld [vmem:[%s9594_s5 + $0x150] sm:$0xff]  }
 0x2bf   :  { %7247 = vmatpush3.bf16.msra.mxu1 %v9624_v16  ;;  %v2699_v50 = vld [vmem:[#allocation3 + $0x21] sm:$0xff]  ;;  %v2700_v27 = vld [vmem:[#allocation3 + $0x29] sm:$0xff]  ;;  %v2856_v62 = vpack.c.bf16 %v2852_v52, %v2851_v31  ;;  %v3001_v61 = vld [vmem:[#allocation3 + $0x33] sm:$0xff] }
 0x2c0   :  { %7248 = vmatprep.subr.bf16.mxu1 %v7682_v51  ;;  %v2705_v56 = vpack.c.bf16 %v2700_v27, %v2699_v50  ;;  %7229 = vmatpush3.bf16.msra.mxu0 %v7685_v24  ;;  %v2849_v20 = vld [vmem:[#allocation3 + $0x22] sm:$0xff]  ;;  %v2850_v29 = vld [vmem:[#allocation3 + $0x2a] sm:$0xff]  ;;  %v7710_v27 = vld [vmem:[%s9594_s5 + $0x140] sm:$0xff]  }
 0x2c1   :  { %7230 = vmatprep.subr.bf16.mxu0 %v7687_v60  ;;  %v2855_v45 = vpack.c.bf16 %v2850_v29, %v2849_v20  ;;  %v2998_v36 = vld [vmem:[#allocation3 + $0x1b] sm:$0xff]  ;;  %v2999_v63 = vld [vmem:[#allocation3 + $0x23] sm:$0xff]  ;;  %v3000_v1 = vld [vmem:[#allocation3 + $0x2b] sm:$0xff] }
 0x2c2   :  { %7218 = vmatprep.mubr.bf16.mxu1 %v2705_v56  ;;  %v3004_v39 = vpack.c.bf16 %v2998_v36, %v2997_v4  ;;  %v3005_v5 = vpack.c.bf16 %v3000_v1, %v2999_v63  ;;  %v3002_v42 = vld [vmem:[#allocation3 + $0x3b] sm:$0xff]  ;;  %v7711_v24 = vld [vmem:[%s9594_s5 + $0x1b8] sm:$0xff]   ;;  %v3149_v25 = vld [vmem:[#allocation3 + $0x24] sm:$0xff] }
 0x2c3   :  { %7249 = vmatpush3.bf16.msra.mxu1 %v7682_v51  ;;  %v3006_v46 = vpack.c.bf16 %v3002_v42, %v3001_v61  ;;  %v7707_v17 = vld [vmem:[%s9594_s5 + $0x108] sm:$0xff]   ;;  %v3150_v9 = vld [vmem:[#allocation3 + $0x2c] sm:$0xff]  ;;  %v3147_v51 = vld [vmem:[#allocation3 + $0x14] sm:$0xff] }
 0x2c4   :  { %7250 = vmatprep.subr.bf16.mxu1 %v7684_v18  ;;  %7231 = vmatpush3.bf16.msra.mxu0 %v7687_v60  ;;  %v3148_v7 = vld [vmem:[#allocation3 + $0x1c] sm:$0xff]  ;;  %v7713_v16 = vld [vmem:[%s9594_s5 + $0x1b0] sm:$0xff]   ;;  %v3155_v50 = vpack.c.bf16 %v3150_v9, %v3149_v25  ;;  %v7712_v10 = vld [vmem:[%s9594_s5 + $0x1f8] sm:$0xff]  }
 0x2c5   :  { %7232 = vmatprep.subr.bf16.mxu0 %v7689_v26  ;;  %v7708_v15 = vld [vmem:[%s9594_s5 + $0x148] sm:$0xff]   ;;  %v3154_v60 = vpack.c.bf16 %v3148_v7, %v3147_v51  ;;  %v3446_v55 = vld [vmem:[#allocation3 + $0xe] sm:$0xff]  ;;  %v7718_v31 = vld [vmem:[%s9594_s5 + $0x1e0] sm:$0xff]  }
 0x2c6   :  { %7219 = vmatmul.mubr.bf16.gmra.mxu1 %v2706_v57  ;;  %v7715_v56 = vld [vmem:[%s9594_s5 + $0x1a8] sm:$0xff]   ;;  %v7719_v20 = vld [vmem:[%s9594_s5 + $0x198] sm:$0xff]   ;;  %v7725_v48 = vld [vmem:[%s9594_s5 + $0x180] sm:$0xff]  }
 0x2c7   :  { %7251 = vmatpush3.bf16.msra.mxu1 %v7684_v18  ;;  %7262 = vmatprep.mubr.bf16.mxu1 %v3003_v23  ;;  %v3151_v18 = vld [vmem:[#allocation3 + $0x34] sm:$0xff]  ;;  %v3152_v53 = vld [vmem:[#allocation3 + $0x3c] sm:$0xff]  ;;  %v3299_v57 = vld [vmem:[#allocation3 + $0x25] sm:$0xff] }
 0x2c8   :  { %7252 = vmatprep.subr.bf16.mxu1 %v7686_v41  ;;  %7233 = vmatpush3.bf16.msra.mxu0 %v7689_v26  ;;  %v3445_v26 = vld [vmem:[#allocation3 + $0x6] sm:$0xff]  ;;  %v3298_v35 = vld [vmem:[#allocation3 + $0x1d] sm:$0xff]  ;;  %v3156_v23 = vpack.c.bf16 %v3152_v53, %v3151_v18  ;;  %v7720_v34 = vld [vmem:[%s9594_s5 + $0x1d8] sm:$0xff]  }
 0x2c9   :  { %7234 = vmatprep.subr.bf16.mxu0 %v7691_v11  ;;  %v7716_v29 = vld [vmem:[%s9594_s5 + $0x1e8] sm:$0xff]   ;;  %v3450_v1 = vld [vmem:[#allocation3 + $0x2e] sm:$0xff]  ;;  %v3597_v49 = vld [vmem:[#allocation3 + $0x17] sm:$0xff] }
 0x2ca   :  { %v3302_v32 = vld [vmem:[#allocation3 + $0x3d] sm:$0xff]  ;;  %v3449_v63 = vld [vmem:[#allocation3 + $0x26] sm:$0xff]  ;;  %v3600_v61 = vld [vmem:[#allocation3 + $0x2f] sm:$0xff] }
 0x2cb   :  { %7253 = vmatpush3.bf16.msra.mxu1 %v7686_v41  ;;  %v3300_v41 = vld [vmem:[#allocation3 + $0x2d] sm:$0xff]  ;;  %v3448_v36 = vld [vmem:[#allocation3 + $0x1e] sm:$0xff]  ;;  %v3455_v4 = vpack.c.bf16 %v3450_v1, %v3449_v63 }
 0x2cc   :  { %7254 = vmatprep.subr.bf16.mxu1 %v7688_v28  ;;  %7235 = vmatpush3.bf16.msra.mxu0 %v7691_v11  ;;  %v7717_v11 = vld [vmem:[%s9594_s5 + $0x1a0] sm:$0xff]   ;;  %v3305_v13 = vpack.c.bf16 %v3300_v41, %v3299_v57  ;;  %v7732_v7 = vld [vmem:[%s9596_s7 + $0x68] sm:$0xff]   ;;  %v7735_v9 = vld [vmem:[%s9596_s7 + $0x18] sm:$0xff]  }
 0x2cd   :  { %7236 = vmatprep.subr.bf16.mxu0 %v7693_v19  ;;  %v7734_v25 = vld [vmem:[%s9596_s7 + $0x60] sm:$0xff]   ;;  %v7736_v51 = vld [vmem:[%s9596_s7 + $0x58] sm:$0xff]  }
 0x2ce   :  { %v7742_v18 = vld [vmem:[%s9596_s7 + $0x40] sm:$0xff]   ;;  %v8999_v53 = vld [vmem:[%s9596_s7 + $0xb8] sm:$0xff]  }
 0x2cf   :  { %7255 = vmatpush3.bf16.msra.mxu1 %v7688_v28  ;;  %v3297_v28 = vld [vmem:[#allocation3 + $0x15] sm:$0xff]  ;;  %9625 = vst [vmem:[#allocation12_spill] sm:$0xff] %v8999_v53 }
 0x2d0   :  { %7256 = vmatprep.subr.bf16.mxu1 %v7690_v38  ;;  %7237 = vmatpush3.bf16.msra.mxu0 %v7693_v19  ;;  %v3453_v19 = vpack.c.bf16 %v3446_v55, %v3445_v26 }
 0x2d1   :  { %7270 = vmatprep.subr.bf16.mxu0 %v7695_v8 }
 0x2d3   :  { %7257 = vmatpush3.bf16.msra.mxu1 %v7690_v38  ;;  %7239 = vmatmul.mubr.bf16.vlgmr.msra.gmra.mxu0 %v2854_v40  ;;  %v3304_v38 = vpack.c.bf16 %v3298_v35, %v3297_v28  ;;  %v3595_v40 = vld [vmem:[#allocation3 + $0x7] sm:$0xff] }
 0x2d4   :  { %7258 = vmatprep.subr.bf16.mxu1 %v7692_v30  ;;  %7242 = vmatprep.mubr.bf16.mxu0 %v2855_v45  ;;  %v3596_v45 = vld [vmem:[#allocation3 + $0xf] sm:$0xff] }
 0x2d5   :  { %7271 = vmatpush3.bf16.msra.mxu0 %v7695_v8  ;;  %v7714_v8 = vld [vmem:[%s9594_s5 + $0x1f0] sm:$0xff]   ;;  %v3603_v52 = vpack.c.bf16 %v3596_v45, %v3595_v40 }
 0x2d6   :  { %7272 = vmatprep.subr.bf16.mxu0 %v7697_v21 }
 0x2d7   :  { %7259 = vmatpush3.bf16.msra.mxu1 %v7692_v30  ;;  %v3301_v30 = vld [vmem:[#allocation3 + $0x35] sm:$0xff] }
 0x2d8   :  { %7260 = vmatprep.subr.bf16.mxu1 %v7694_v33 }
 0x2d9   :  { %7273 = vmatpush3.bf16.msra.mxu0 %v7697_v21  ;;  %v7721_v21 = vld [vmem:[%s9594_s5 + $0x190] sm:$0xff]  }
 0x2da   :  { %7274 = vmatprep.subr.bf16.mxu0 %v7699_v58 }
 0x2db   :  { %7261 = vmatpush3.bf16.msra.mxu1 %v7694_v33  ;;  %7243 = vmatmul.mubr.bf16.gmra.mxu0 %v2856_v62  ;;  %v3306_v33 = vpack.c.bf16 %v3302_v32, %v3301_v30  ;;  %v7724_v62 = vld [vmem:[%s9594_s5 + $0x1c8] sm:$0xff]  }
 0x2dc   :  { %7294 = vmatprep.subr.bf16.mxu1 %v7696_v59  ;;  %7286 = vmatprep.mubr.bf16.mxu0 %v3153_v2  ;;  %v3447_v2 = vld [vmem:[#allocation3 + $0x16] sm:$0xff] }
 0x2dd   :  { %7275 = vmatpush3.bf16.msra.mxu0 %v7699_v58  ;;  %v7723_v58 = vld [vmem:[%s9594_s5 + $0x188] sm:$0xff]  }
 0x2de   :  { %7263 = vmatmul.mubr.bf16.vlgmr.msra.gmra.mxu1 %v3004_v39  ;;  %7276 = vmatprep.subr.bf16.mxu0 %v7701_v43  ;;  %v7726_v39 = vld [vmem:[%s9594_s5 + $0x1c0] sm:$0xff]  }
 0x2df   :  { %7266 = vmatprep.mubr.bf16.mxu1 %v3005_v5  ;;  %7295 = vmatpush3.bf16.msra.mxu1 %v7696_v59  ;;  %v7722_v59 = vld [vmem:[%s9594_s5 + $0x1d0] sm:$0xff]   ;;  %v3452_v5 = vld [vmem:[#allocation3 + $0x3e] sm:$0xff] }
 0x2e0   :  { %7296 = vmatprep.subr.bf16.mxu1 %v7698_v12 }
 0x2e1   :  { %7277 = vmatpush3.bf16.msra.mxu0 %v7701_v43  ;;  %v3454_v43 = vpack.c.bf16 %v3448_v36, %v3447_v2 }
 0x2e2   :  { %7278 = vmatprep.subr.bf16.mxu0 %v7703_v44 }
 0x2e3   :  { %7297 = vmatpush3.bf16.msra.mxu1 %v7698_v12  ;;  %v3451_v12 = vld [vmem:[#allocation3 + $0x36] sm:$0xff] }
 0x2e4   :  { %7298 = vmatprep.subr.bf16.mxu1 %v7700_v6  ;;  %v3456_v42 = vpack.c.bf16 %v3452_v5, %v3451_v12 }
 0x2e5   :  { %7279 = vmatpush3.bf16.msra.mxu0 %v7703_v44  ;;  %v3598_v44 = vld [vmem:[#allocation3 + $0x1f] sm:$0xff] }
 0x2e6   :  { %7267 = vmatmul.mubr.bf16.gmra.mxu1 %v3006_v46  ;;  %7280 = vmatprep.subr.bf16.mxu0 %v7705_v14  ;;  %v3604_v0 = vpack.c.bf16 %v3598_v44, %v3597_v49  ;;  %v3601_v46 = vld [vmem:[#allocation3 + $0x37] sm:$0xff] }
 0x2e7   :  { %7299 = vmatpush3.bf16.msra.mxu1 %v7700_v6  ;;  %7310 = vmatprep.mubr.bf16.mxu1 %v3303_v3  ;;  %v3599_v6 = vld [vmem:[#allocation3 + $0x27] sm:$0xff] }
 0x2e8   :  { %7300 = vmatprep.subr.bf16.mxu1 %v7702_v54 }
 0x2e9   :  { %7281 = vmatpush3.bf16.msra.mxu0 %v7705_v14  ;;  %v3605_v14 = vpack.c.bf16 %v3600_v61, %v3599_v6 }
 0x2ea   :  { %7282 = vmatprep.subr.bf16.mxu0 %v7707_v17 }
 0x2eb   :  { %7301 = vmatpush3.bf16.msra.mxu1 %v7702_v54  ;;  %v3602_v54 = vld [vmem:[#allocation3 + $0x3f] sm:$0xff] }
 0x2ec   :  { %7302 = vmatprep.subr.bf16.mxu1 %v7704_v22  ;;  %v3606_v3 = vpack.c.bf16 %v3602_v54, %v3601_v46 }
 0x2ed   :  { %7283 = vmatpush3.bf16.msra.mxu0 %v7707_v17  ;;  %v7727_v17 = vld [vmem:[%s9596_s7 + $0x38] sm:$0xff]  }
 0x2ee   :  { %7284 = vmatprep.subr.bf16.mxu0 %v7709_v47 }
 0x2ef   :  { %7303 = vmatpush3.bf16.msra.mxu1 %v7704_v22  ;;  %v7728_v22 = vld [vmem:[%s9596_s7 + $0x78] sm:$0xff]  }
 0x2f0   :  { %7304 = vmatprep.subr.bf16.mxu1 %v7706_v37 }
 0x2f1   :  { %7285 = vmatpush3.bf16.msra.mxu0 %v7709_v47  ;;  %v7729_v47 = vld [vmem:[%s9596_s7 + $0x30] sm:$0xff]  }
 0x2f2   :  { %7318 = vmatprep.subr.bf16.mxu0 %v7711_v24 }
 0x2f3   :  { %7305 = vmatpush3.bf16.msra.mxu1 %v7706_v37  ;;  %v7730_v37 = vld [vmem:[%s9596_s7 + $0x70] sm:$0xff]  }
 0x2f4   :  { %7306 = vmatprep.subr.bf16.mxu1 %v7708_v15  ;;  %7287 = vmatmul.mubr.bf16.vlgmr.msra.gmra.mxu0 %v3154_v60  ;;  %v7737_v60 = vld [vmem:[%s9596_s7 + $0x10] sm:$0xff]  }
 0x2f5   :  { %7290 = vmatprep.mubr.bf16.mxu0 %v3155_v50  ;;  %7319 = vmatpush3.bf16.msra.mxu0 %v7711_v24  ;;  %v7731_v24 = vld [vmem:[%s9596_s7 + $0x28] sm:$0xff]  }
 0x2f6   :  { %7320 = vmatprep.subr.bf16.mxu0 %v7713_v16  ;;  %v7739_v50 = vld [vmem:[%s9596_s7 + $0x8] sm:$0xff]  }
 0x2f7   :  { %7307 = vmatpush3.bf16.msra.mxu1 %v7708_v15  ;;  %v7733_v15 = vld [vmem:[%s9596_s7 + $0x20] sm:$0xff]  }
 0x2f8   :  { %7308 = vmatprep.subr.bf16.mxu1 %v7710_v27 }
 0x2f9   :  { %7321 = vmatpush3.bf16.msra.mxu0 %v7713_v16  ;;  %v7738_v16 = vld [vmem:[%s9596_s7 + $0x50] sm:$0xff]  }
 0x2fa   :  { %7322 = vmatprep.subr.bf16.mxu0 %v7715_v56 }
 0x2fb   :  { %7309 = vmatpush3.bf16.msra.mxu1 %v7710_v27  ;;  %v7740_v27 = vld [vmem:[%s9596_s7 + $0x48] sm:$0xff]  }
 0x2fc   :  { %7342 = vmatprep.subr.bf16.mxu1 %v7712_v10  ;;  %7291 = vmatmul.mubr.bf16.gmra.mxu0 %v3156_v23 }
 0x2fd   :  { %7323 = vmatpush3.bf16.msra.mxu0 %v7715_v56  ;;  %7334 = vmatprep.mubr.bf16.mxu0 %v3453_v19  ;;  %v7741_v56 = vld [vmem:[%s9596_s7] sm:$0xff]  }
 0x2fe   :  { %7311 = vmatmul.mubr.bf16.vlgmr.msra.gmra.mxu1 %v3304_v38  ;;  %7324 = vmatprep.subr.bf16.mxu0 %v7717_v11 }
 0x2ff   :  { %7314 = vmatprep.mubr.bf16.mxu1 %v3305_v13  ;;  %7343 = vmatpush3.bf16.msra.mxu1 %v7712_v10  ;;  %v9005_v10 = vld [vmem:[%s9596_s7 + $0xf8] sm:$0xff]  }
 0x300   :  { %7344 = vmatprep.subr.bf16.mxu1 %v7714_v8  ;;  %9626 = vst [vmem:[#allocation13_spill] sm:$0xff] %v9005_v10 }
 0x301   :  { %7325 = vmatpush3.bf16.msra.mxu0 %v7717_v11 }
 0x302   :  { %7326 = vmatprep.subr.bf16.mxu0 %v7719_v20 }
 0x303   :  { %7345 = vmatpush3.bf16.msra.mxu1 %v7714_v8 }
 0x304   :  { %7346 = vmatprep.subr.bf16.mxu1 %v7716_v29 }
 0x305   :  { %7327 = vmatpush3.bf16.msra.mxu0 %v7719_v20 }
 0x306   :  { %7315 = vmatmul.mubr.bf16.gmra.mxu1 %v3306_v33  ;;  %7328 = vmatprep.subr.bf16.mxu0 %v7721_v21 }
 0x307   :  { %7347 = vmatpush3.bf16.msra.mxu1 %v7716_v29  ;;  %7358 = vmatprep.mubr.bf16.mxu1 %v3603_v52 }
 0x308   :  { %7348 = vmatprep.subr.bf16.mxu1 %v7718_v31 }
 0x309   :  { %7329 = vmatpush3.bf16.msra.mxu0 %v7721_v21 }
 0x30a   :  { %7330 = vmatprep.subr.bf16.mxu0 %v7723_v58 }
 0x30b   :  { %7349 = vmatpush3.bf16.msra.mxu1 %v7718_v31 }
 0x30c   :  { %7350 = vmatprep.subr.bf16.mxu1 %v7720_v34 }
 0x30d   :  { %7331 = vmatpush3.bf16.msra.mxu0 %v7723_v58 }
 0x30e   :  { %7332 = vmatprep.subr.bf16.mxu0 %v7725_v48 }
 0x30f   :  { %7351 = vmatpush3.bf16.msra.mxu1 %v7720_v34 }
 0x310   :  { %7352 = vmatprep.subr.bf16.mxu1 %v7722_v59 }
 0x311   :  { %7333 = vmatpush3.bf16.msra.mxu0 %v7725_v48 }
 0x312   :  { %7366 = vmatprep.subr.bf16.mxu0 %v7727_v17 }
 0x313   :  { %7353 = vmatpush3.bf16.msra.mxu1 %v7722_v59 }
 0x314   :  { %7354 = vmatprep.subr.bf16.mxu1 %v7724_v62  ;;  %7335 = vmatmul.mubr.bf16.vlgmr.msra.gmra.mxu0 %v3454_v43 }
 0x315   :  { %7338 = vmatprep.mubr.bf16.mxu0 %v3455_v4  ;;  %7367 = vmatpush3.bf16.msra.mxu0 %v7727_v17 }
 0x316   :  { %7368 = vmatprep.subr.bf16.mxu0 %v7729_v47 }
 0x317   :  { %7355 = vmatpush3.bf16.msra.mxu1 %v7724_v62 }
 0x318   :  { %7356 = vmatprep.subr.bf16.mxu1 %v7726_v39 }
 0x319   :  { %7369 = vmatpush3.bf16.msra.mxu0 %v7729_v47 }
 0x31a   :  { %7370 = vmatprep.subr.bf16.mxu0 %v7731_v24 }
 0x31b   :  { %7357 = vmatpush3.bf16.msra.mxu1 %v7726_v39 }
 0x31c   :  { %7339 = vmatmul.mubr.bf16.gmra.mxu0 %v3456_v42  ;;  %7390 = vmatprep.subr.bf16.mxu1 %v7728_v22 }
 0x31d   :  { %7371 = vmatpush3.bf16.msra.mxu0 %v7731_v24 }
 0x31e   :  { %7359 = vmatmul.mubr.bf16.vlgmr.msra.gmra.mxu1 %v3604_v0  ;;  %7372 = vmatprep.subr.bf16.mxu0 %v7733_v15 }
 0x31f   :  { %7362 = vmatprep.mubr.bf16.mxu1 %v3605_v14  ;;  %7391 = vmatpush3.bf16.msra.mxu1 %v7728_v22  ;;  %v6097_v14 = vld [vmem:[%s9595_s6] ss:$0 sm:$0xff] }
 0x320   :  { %7392 = vmatprep.subr.bf16.mxu1 %v7730_v37 }
 0x321   :  { %7373 = vmatpush3.bf16.msra.mxu0 %v7733_v15 }
 0x322   :  { %7374 = vmatprep.subr.bf16.mxu0 %v7735_v9 }
 0x323   :  { %7393 = vmatpush3.bf16.msra.mxu1 %v7730_v37 }
 0x324   :  { %7394 = vmatprep.subr.bf16.mxu1 %v7732_v7 }
 0x325   :  { %7375 = vmatpush3.bf16.msra.mxu0 %v7735_v9 }
 0x326   :  { %7363 = vmatmul.mubr.bf16.gmra.mxu1 %v3606_v3  ;;  %7376 = vmatprep.subr.bf16.mxu0 %v7737_v60 }
 0x327   :  { %7395 = vmatpush3.bf16.msra.mxu1 %v7732_v7 }
 0x328   :  { %7396 = vmatprep.subr.bf16.mxu1 %v7734_v25 }
 0x329   :  { %7377 = vmatpush3.bf16.msra.mxu0 %v7737_v60 }
 0x32a   :  { %7378 = vmatprep.subr.bf16.mxu0 %v7739_v50 }
 0x32b   :  { %7397 = vmatpush3.bf16.msra.mxu1 %v7734_v25 }
 0x32c   :  { %7398 = vmatprep.subr.bf16.mxu1 %v7736_v51 }
 0x32d   :  { %7379 = vmatpush3.bf16.msra.mxu0 %v7739_v50 }
 0x32e   :  { %7380 = vmatprep.subr.bf16.mxu0 %v7741_v56 }
 0x32f   :  { %7399 = vmatpush3.bf16.msra.mxu1 %v7736_v51 }
 0x330   :  { %7400 = vmatprep.subr.bf16.mxu1 %v7738_v16 }
 0x331   :  { %7381 = vmatpush3.bf16.msra.mxu0 %v7741_v56 }
 0x332   :  { %7414 = vmatprep.subr.bf16.mxu0 %v8999_v53 }
 0x333   :  { %7401 = vmatpush3.bf16.msra.mxu1 %v7738_v16 }
 0x334   :  { %7402 = vmatprep.subr.bf16.mxu1 %v7740_v27 }
 0x337   :  { %7403 = vmatpush3.bf16.msra.mxu1 %v7740_v27 }
 0x338   :  { %7404 = vmatprep.subr.bf16.mxu1 %v7742_v18 }
 0x33b   :  { %7405 = vmatpush3.bf16.msra.mxu1 %v7742_v18 }
 0x33c   :  { %7438 = vmatprep.subr.bf16.mxu1 %v9005_v10 }
 0x373   :  { %v7192_v26 = vpop.f32.mrf.mxu0 }
 0x374   :  { %v2689_v3 = vadd.f32 %v7192_v26, %v6097_v14 }
 0x375   :  { %v2650_v55 = vpop.f32.mrf.mxu0 }
 0x376   :  { %v2687_v22 = vadd.f32 %v6097_v14, %v2650_v55 }
 0x377   :  { %v7193_v35 = vpop.f32.mrf.mxu0 }
 0x378   :  { %v2690_v7 = vadd.f32 %v7193_v35, %v6097_v14 }
 0x379   :  { %v2653_v41 = vpop.f32.mrf.mxu0 }
 0x37a   :  { %v2688_v51 = vadd.f32 %v6097_v14, %v2653_v41 }
 0x37b   :  { %v7196_v11 = vpop.f32.mrf.mxu0 }
 0x37c   :  { %v2693_v27 = vadd.f32 %v7196_v11, %v6097_v14 }
 0x37d   :  { %v2666_v19 = vpop.f32.mrf.mxu0 }
 0x37e   :  { %v7216_v57 = vpop.f32.mrf.mxu1  ;;  %v2691_v55 = vadd.f32 %v6097_v14, %v2666_v19 }
 0x37f   :  { %v9008_v8 = vpop.f32.mrf.mxu0  ;;  %v2839_v47 = vadd.f32 %v7216_v57, %v2689_v3 }
 0x380   :  { %v2806_v23 = vpop.f32.mrf.mxu1 }
 0x381   :  { %v9010_v20 = vpop.f32.mrf.mxu0  ;;  %v2837_v15 = vadd.f32 %v2806_v23, %v2687_v22 }
 0x382   :  { %v7217_v28 = vpop.f32.mrf.mxu1 }
 0x383   :  { %v2840_v60 = vadd.f32 %v7217_v28, %v2690_v7 }
 0x384   :  { %v2809_v38 = vpop.f32.mrf.mxu1 }
 0x385   :  { %v2838_v10 = vadd.f32 %v2809_v38, %v2688_v51 }
 0x386   :  { %v7220_v13 = vpop.f32.mrf.mxu1 }
 0x387   :  { %v2843_v57 = vadd.f32 %v7220_v13, %v2693_v27 }
 0x388   :  { %v2822_v29 = vpop.f32.mrf.mxu1 }
 0x389   :  { %v2841_v41 = vadd.f32 %v2822_v29, %v2691_v55 }
 0x38a   :  { %v9012_v32 = vpop.f32.mrf.mxu1 }
 0x38c   :  { %v9014_v45 = vpop.f32.mrf.mxu1 }
 0x393   :  { %v7240_v30 = vpop.f32.mrf.mxu0 }
 0x394   :  { %v2989_v25 = vadd.f32 %v7240_v30, %v2839_v47  ;;  %v2694_v30 = vadd.f32 %v9008_v8, %v6097_v14 }
 0x395   :  { %v2956_v40 = vpop.f32.mrf.mxu0 }
 0x396   :  { %v2987_v16 = vadd.f32 %v2956_v40, %v2837_v15  ;;  %v2844_v19 = vadd.f32 %v9012_v32, %v2694_v30 }
 0x397   :  { %v7241_v21 = vpop.f32.mrf.mxu0 }
 0x398   :  { %v2990_v26 = vadd.f32 %v7241_v21, %v2840_v60  ;;  %v2692_v21 = vadd.f32 %v6097_v14, %v9010_v20 }
 0x399   :  { %v2959_v31 = vpop.f32.mrf.mxu0 }
 0x39a   :  { %v2842_v8 = vadd.f32 %v9014_v45, %v2692_v21 }
 0x39b   :  { %v7244_v58 = vpop.f32.mrf.mxu0 }
 0x39c   :  { %v2993_v28 = vadd.f32 %v7244_v58, %v2843_v57  ;;  %v9633_v57 = vld [vmem:[#allocation12_spill] sm:$0xff] }
 0x39d   :  { %v2972_v48 = vpop.f32.mrf.mxu0 }
 0x39e   :  { %v7264_v33 = vpop.f32.mrf.mxu1  ;;  %v2991_v13 = vadd.f32 %v2972_v48, %v2841_v41 }
 0x39f   :  { %v9016_v36 = vpop.f32.mrf.mxu0  ;;  %v3139_v50 = vadd.f32 %v7264_v33, %v2989_v25 }
 0x3a0   :  { %v3106_v52 = vpop.f32.mrf.mxu1  ;;  %v2994_v29 = vadd.f32 %v9016_v36, %v2844_v19 }
 0x3a1   :  { %v9018_v63 = vpop.f32.mrf.mxu0  ;;  %v3137_v53 = vadd.f32 %v3106_v52, %v2987_v16  ;;  %v7745_v16 = vld [vmem:[%s9596_s7 + $0xb0] sm:$0xff]  }
 0x3a2   :  { %v7265_v34 = vpop.f32.mrf.mxu1  ;;  %v2992_v48 = vadd.f32 %v9018_v63, %v2842_v8  ;;  %v7748_v8 = vld [vmem:[%s9596_s7 + $0xe8] sm:$0xff]  }
 0x3a4   :  { %v3109_v59 = vpop.f32.mrf.mxu1 }
 0x3a6   :  { %v7268_v62 = vpop.f32.mrf.mxu1 }
 0x3a7   :  { %v3143_v52 = vadd.f32 %v7268_v62, %v2993_v28 }
 0x3a8   :  { %v9020_v1 = vpop.f32.mrf.mxu1 }
 0x3a9   :  { %v3141_v58 = vadd.f32 %v9020_v1, %v2991_v13 }
 0x3aa   :  { %v9022_v43 = vpop.f32.mrf.mxu1 }
 0x3ab   :  { %v3144_v62 = vadd.f32 %v9022_v43, %v2994_v29 }
 0x3ac   :  { %v9024_v39 = vpop.f32.mrf.mxu1 }
 0x3ad   :  { %v3142_v1 = vadd.f32 %v9024_v39, %v2992_v48  ;;  %v7755_v48 = vld [vmem:[%s9596_s7 + $0x88] sm:$0xff]  }
 0x3b4   :  { %v7288_v2 = vpop.f32.mrf.mxu0 }
 0x3b6   :  { %v3256_v4 = vpop.f32.mrf.mxu0 }
 0x3b7   :  { %v3287_v35 = vadd.f32 %v3256_v4, %v3137_v53 }
 0x3b8   :  { %v7289_v12 = vpop.f32.mrf.mxu0 }
 0x3ba   :  { %v3259_v44 = vpop.f32.mrf.mxu0 }
 0x3bc   :  { %v7292_v61 = vpop.f32.mrf.mxu0 }
 0x3be   :  { %v7312_v5 = vpop.f32.mrf.mxu1  ;;  %v9026_v49 = vpop.f32.mrf.mxu0 }
 0x3c0   :  { %v3406_v6 = vpop.f32.mrf.mxu1  ;;  %v9031_v46 = vpop.f32.mrf.mxu0 }
 0x3c1   :  { %9627 = vst [vmem:[#allocation14_spill] sm:$0xff] %v9031_v46  ;;  %v3140_v46 = vadd.f32 %v7265_v34, %v2990_v26  ;;  %v3437_v47 = vadd.f32 %v3406_v6, %v3287_v35  ;;  %v3291_v6 = vadd.f32 %v9026_v49, %v3141_v58  ;;  %v7747_v35 = vld [vmem:[%s9596_s7 + $0xa8] sm:$0xff]  }
 0x3c2   :  { %v7313_v42 = vpop.f32.mrf.mxu1  ;;  %v9033_v17 = vpop.f32.mrf.mxu0 }
 0x3c3   :  { %9628 = vst [vmem:[#allocation15_spill] sm:$0xff] %v9033_v17  ;;  %v3289_v17 = vadd.f32 %v7288_v2, %v3139_v50  ;;  %v3290_v22 = vadd.f32 %v7289_v12, %v3140_v46  ;;  %v3293_v12 = vadd.f32 %v7292_v61, %v3143_v52  ;;  %v7746_v52 = vld [vmem:[%s9596_s7 + $0xf0] sm:$0xff]  }
 0x3c4   :  { %v3409_v0 = vpop.f32.mrf.mxu1 }
 0x3c5   :  { %v3439_v23 = vadd.f32 %v7312_v5, %v3289_v17  ;;  %v3440_v53 = vadd.f32 %v7313_v42, %v3290_v22 }
 0x3c6   :  { %v7316_v54 = vpop.f32.mrf.mxu1 }
 0x3c7   :  { %v3443_v42 = vadd.f32 %v7316_v54, %v3293_v12 }
 0x3c8   :  { %v9035_v37 = vpop.f32.mrf.mxu1  ;;  %v9630_v61 = vld [vmem:[#allocation14_spill] sm:$0xff] }
 0x3c9   :  { %9629 = vst [vmem:[#allocation16_spill] sm:$0xff] %v9035_v37  ;;  %v2988_v37 = vadd.f32 %v2959_v31, %v2838_v10 }
 0x3ca   :  { %v7317_v56 = vpop.f32.mrf.mxu1  ;;  %v9632_v7 = vld [vmem:[#allocation15_spill] sm:$0xff] }
 0x3cb   :  { %v3138_v11 = vadd.f32 %v3109_v59, %v2988_v37  ;;  %v3292_v43 = vadd.f32 %v9632_v7, %v3142_v1  ;;  %v7763_v7 = vld [vmem:[%s9596_s7 + $0x128] sm:$0xff]  }
 0x3cc   :  { %v3425_v40 = vpop.f32.mrf.mxu1 }
 0x3cd   :  { %v3288_v31 = vadd.f32 %v3259_v44, %v3138_v11  ;;  %v3442_v50 = vadd.f32 %v3425_v40, %v3292_v43 }
 0x3cf   :  { %v3438_v5 = vadd.f32 %v3409_v0, %v3288_v31  ;;  %v3294_v0 = vadd.f32 %v9630_v61, %v3144_v62  ;;  %v9634_v31 = vld [vmem:[#allocation13_spill] sm:$0xff]  ;;  %v7752_v62 = vld [vmem:[%s9596_s7 + $0xd8] sm:$0xff]  }
 0x3d0   :  { %v9631_v17 = vld [vmem:[#allocation16_spill] sm:$0xff] }
 0x3d1   :  { %v3441_v37 = vadd.f32 %v9631_v17, %v3291_v6  ;;  %v3444_v25 = vadd.f32 %v7317_v56, %v3294_v0  ;;  %v7754_v6 = vld [vmem:[%s9596_s7 + $0xd0] sm:$0xff]  }
 0x3d2   :  { %v7761_v17 = vld [vmem:[%s9596_s7 + $0x130] sm:$0xff]  }
 0x3d4   :  { %v7336_v24 = vpop.f32.mrf.mxu0 }
 0x3d5   :  { %v3589_v38 = vadd.f32 %v7336_v24, %v3439_v23 }
 0x3d6   :  { %v3556_v9 = vpop.f32.mrf.mxu0 }
 0x3d7   :  { %v3587_v34 = vadd.f32 %v3556_v9, %v3437_v47  ;;  %v7749_v47 = vld [vmem:[%s9596_s7 + $0xa0] sm:$0xff]  }
 0x3d8   :  { %v7337_v18 = vpop.f32.mrf.mxu0 }
 0x3d9   :  { %v3590_v20 = vadd.f32 %v7337_v18, %v3440_v53 }
 0x3da   :  { %v3559_v3 = vpop.f32.mrf.mxu0 }
 0x3db   :  { %v3588_v45 = vadd.f32 %v3559_v3, %v3438_v5 }
 0x3dc   :  { %v7340_v33 = vpop.f32.mrf.mxu0 }
 0x3dd   :  { %v3593_v24 = vadd.f32 %v7340_v33, %v3443_v42  ;;  %v7759_v42 = vld [vmem:[%s9596_s7 + $0x138] sm:$0xff]  }
 0x3de   :  { %v7360_v10 = vpop.f32.mrf.mxu1  ;;  %v3572_v4 = vpop.f32.mrf.mxu0 }
 0x3df   :  { %v3739_v2 = vadd.f32 %v7360_v10, %v3589_v38  ;;  %v3591_v49 = vadd.f32 %v3572_v4, %v3441_v37  ;;  %v7751_v10 = vld [vmem:[%s9596_s7 + $0x98] sm:$0xff]   ;;  %v7758_v37 = vld [vmem:[%s9596_s7 + $0xc0] sm:$0xff]  }
 0x3e0   :  { %v3706_v59 = vpop.f32.mrf.mxu1  ;;  %v7341_v46 = vpop.f32.mrf.mxu0 }
 0x3e1   :  { %3747 = vst [vmem:[#allocation2 + $0x10] sm:$0xff] %v3739_v2  ;;  %v3737_v32 = vadd.f32 %v3706_v59, %v3587_v34  ;;  %v3594_v27 = vadd.f32 %v7341_v46, %v3444_v25  ;;  %v7753_v59 = vld [vmem:[%s9596_s7 + $0x90] sm:$0xff]   ;;  %v7760_v25 = vld [vmem:[%s9596_s7 + $0x178] sm:$0xff]  }
 0x3e2   :  { %v7361_v44 = vpop.f32.mrf.mxu1  ;;  %v3575_v60 = vpop.f32.mrf.mxu0 }
 0x3e3   :  { %3745 = vst [vmem:[#allocation2] sm:$0xff] %v3737_v32  ;;  %v3740_v36 = vadd.f32 %v7361_v44, %v3590_v20  ;;  %v3592_v56 = vadd.f32 %v3575_v60, %v3442_v50  ;;  %v7750_v20 = vld [vmem:[%s9596_s7 + $0xe0] sm:$0xff]  }
 0x3e4   :  { %v3709_v14 = vpop.f32.mrf.mxu1  ;;  %v7757_v44 = vld [vmem:[%s9596_s7 + $0x80] sm:$0xff]  }
 0x3e5   :  { %3748 = vst [vmem:[#allocation2 + $0x18] sm:$0xff] %v3740_v36  ;;  %v3738_v63 = vadd.f32 %v3709_v14, %v3588_v45  ;;  %v3762_v39 = vpack.c.bf16 %v3740_v36, %v3739_v2  ;;  %v7756_v14 = vld [vmem:[%s9596_s7 + $0xc8] sm:$0xff]  }
 0x3e6   :  { %v7364_v15 = vpop.f32.mrf.mxu1 }
 0x3e7   :  { %3746 = vst [vmem:[#allocation2 + $0x8] sm:$0xff] %v3738_v63  ;;  %v3743_v54 = vadd.f32 %v7364_v15, %v3593_v24  ;;  %v3761_v9 = vpack.c.bf16 %v3738_v63, %v3737_v32 }
 0x3e8   :  { %v3722_v51 = vpop.f32.mrf.mxu1 }
 0x3e9   :  { %3751 = vst [vmem:[#allocation2 + $0x30] sm:$0xff] %v3743_v54  ;;  %v3741_v18 = vadd.f32 %v3722_v51, %v3591_v49  ;;  %7382 = vmatprep.mubr.bf16.mxu0 %v3761_v9 }
 0x3ea   :  { %v7365_v26 = vpop.f32.mrf.mxu1  ;;  %7383 = vmatmul.mubr.bf16.vlgmr.msra.gmra.mxu0 %v3762_v39  ;;  %v7765_v39 = vld [vmem:[%s9596_s7 + $0x120] sm:$0xff]  }
 0x3eb   :  { %3749 = vst [vmem:[#allocation2 + $0x20] sm:$0xff] %v3741_v18  ;;  %v3744_v55 = vadd.f32 %v7365_v26, %v3594_v27  ;;  %7415 = vmatpush3.bf16.msra.mxu0 %v9633_v57  ;;  %v7762_v27 = vld [vmem:[%s9596_s7 + $0x170] sm:$0xff]   ;;  %v7767_v26 = vld [vmem:[%s9596_s7 + $0x118] sm:$0xff]  }
 0x3ec   :  { %v3725_v3 = vpop.f32.mrf.mxu1  ;;  %7416 = vmatprep.subr.bf16.mxu0 %v7745_v16  ;;  %v3910_v21 = vld [vmem:[#allocation2 + $0x11] sm:$0xff] }
 0x3ed   :  { %3752 = vst [vmem:[#allocation2 + $0x38] sm:$0xff] %v3744_v55  ;;  %v3742_v23 = vadd.f32 %v3725_v3, %v3592_v56  ;;  %v3764_v22 = vpack.c.bf16 %v3744_v55, %v3743_v54  ;;  %v4060_v46 = vld [vmem:[#allocation2 + $0x12] sm:$0xff]  ;;  %v7764_v56 = vld [vmem:[%s9596_s7 + $0x168] sm:$0xff]  }
 0x3ee   :  { %v3908_v30 = vld [vmem:[#allocation2 + $0x1] sm:$0xff]  ;;  %v3909_v41 = vld [vmem:[#allocation2 + $0x9] sm:$0xff] }
 0x3ef   :  { %v4058_v28 = vld [vmem:[#allocation2 + $0x2] sm:$0xff]  ;;  %3750 = vst [vmem:[#allocation2 + $0x28] sm:$0xff] %v3742_v23  ;;  %v3916_v40 = vpack.c.bf16 %v3909_v41, %v3908_v30  ;;  %7417 = vmatpush3.bf16.msra.mxu0 %v7745_v16  ;;  %v3763_v33 = vpack.c.bf16 %v3742_v23, %v3741_v18  ;;  %v4059_v11 = vld [vmem:[#allocation2 + $0xa] sm:$0xff]  ;;  %v4210_v16 = vld [vmem:[#allocation2 + $0x13] sm:$0xff] }
 0x3f0   :  { %7418 = vmatprep.subr.bf16.mxu0 %v7747_v35  ;;  %v4066_v38 = vpack.c.bf16 %v4059_v11, %v4058_v28  ;;  %v4208_v4 = vld [vmem:[#allocation2 + $0x3] sm:$0xff]  ;;  %v4209_v12 = vld [vmem:[#allocation2 + $0xb] sm:$0xff] }
 0x3f1   :  { %7406 = vmatprep.mubr.bf16.mxu1 %v3916_v40  ;;  %7386 = vmatprep.mubr.bf16.mxu0 %v3763_v33  ;;  %v4216_v32 = vpack.c.bf16 %v4209_v12, %v4208_v4  ;;  %v4358_v43 = vld [vmem:[#allocation2 + $0x4] sm:$0xff]  ;;  %v4359_v15 = vld [vmem:[#allocation2 + $0xc] sm:$0xff]  ;;  %v7768_v33 = vld [vmem:[%s9596_s7 + $0x158] sm:$0xff]  }
 0x3f2   :  { %v3911_v19 = vld [vmem:[#allocation2 + $0x19] sm:$0xff]  ;;  %7387 = vmatmul.mubr.bf16.gmra.mxu0 %v3764_v22  ;;  %v4366_v60 = vpack.c.bf16 %v4359_v15, %v4358_v43  ;;  %v4508_v3 = vld [vmem:[#allocation2 + $0x5] sm:$0xff]  ;;  %v7769_v23 = vld [vmem:[%s9596_s7 + $0x110] sm:$0xff]  }
 0x3f3   :  { %v3917_v13 = vpack.c.bf16 %v3911_v19, %v3910_v21  ;;  %7419 = vmatpush3.bf16.msra.mxu0 %v7747_v35  ;;  %7430 = vmatprep.mubr.bf16.mxu0 %v4066_v38  ;;  %v4061_v45 = vld [vmem:[#allocation2 + $0x1a] sm:$0xff]  ;;  %v4509_v35 = vld [vmem:[#allocation2 + $0xd] sm:$0xff] }
 0x3f4   :  { %7420 = vmatprep.subr.bf16.mxu0 %v7749_v47  ;;  %v3914_v29 = vld [vmem:[#allocation2 + $0x31] sm:$0xff]  ;;  %v3915_v58 = vld [vmem:[#allocation2 + $0x39] sm:$0xff]  ;;  %v4067_v61 = vpack.c.bf16 %v4061_v45, %v4060_v46  ;;  %v4516_v28 = vpack.c.bf16 %v4509_v35, %v4508_v3  ;;  %v7771_v40 = vld [vmem:[%s9596_s7 + $0x108] sm:$0xff]  }
 0x3f5   :  { %7407 = vmatmul.mubr.bf16.vlgmr.msra.gmra.mxu1 %v3917_v13  ;;  %v3919_v5 = vpack.c.bf16 %v3915_v58, %v3914_v29  ;;  %v4064_v24 = vld [vmem:[#allocation2 + $0x32] sm:$0xff]  ;;  %v4065_v63 = vld [vmem:[#allocation2 + $0x3a] sm:$0xff]  ;;  %v7772_v21 = vld [vmem:[%s9596_s7 + $0x148] sm:$0xff]  }
 0x3f6   :  { %7439 = vmatpush3.bf16.msra.mxu1 %v9634_v31  ;;  %v3912_v53 = vld [vmem:[#allocation2 + $0x21] sm:$0xff]  ;;  %v3913_v34 = vld [vmem:[#allocation2 + $0x29] sm:$0xff]  ;;  %v4069_v54 = vpack.c.bf16 %v4065_v63, %v4064_v24  ;;  %v4214_v55 = vld [vmem:[#allocation2 + $0x33] sm:$0xff] }
 0x3f7   :  { %7440 = vmatprep.subr.bf16.mxu1 %v7746_v52  ;;  %v3918_v2 = vpack.c.bf16 %v3913_v34, %v3912_v53  ;;  %7421 = vmatpush3.bf16.msra.mxu0 %v7749_v47  ;;  %v4062_v36 = vld [vmem:[#allocation2 + $0x22] sm:$0xff]  ;;  %v4063_v1 = vld [vmem:[#allocation2 + $0x2a] sm:$0xff]  ;;  %v7775_v47 = vld [vmem:[%s9596_s7 + $0x1b8] sm:$0xff]  }
 0x3f8   :  { %7422 = vmatprep.subr.bf16.mxu0 %v7751_v10  ;;  %v4068_v0 = vpack.c.bf16 %v4063_v1, %v4062_v36  ;;  %v4211_v49 = vld [vmem:[#allocation2 + $0x1b] sm:$0xff]  ;;  %v4212_v9 = vld [vmem:[#allocation2 + $0x23] sm:$0xff]  ;;  %v4213_v51 = vld [vmem:[#allocation2 + $0x2b] sm:$0xff] }
 0x3f9   :  { %7410 = vmatprep.mubr.bf16.mxu1 %v3918_v2  ;;  %v4217_v50 = vpack.c.bf16 %v4211_v49, %v4210_v16  ;;  %v4218_v18 = vpack.c.bf16 %v4213_v51, %v4212_v9  ;;  %v4215_v57 = vld [vmem:[#allocation2 + $0x3b] sm:$0xff]  ;;  %v7770_v22 = vld [vmem:[%s9596_s7 + $0x150] sm:$0xff]   ;;  %v4362_v19 = vld [vmem:[#allocation2 + $0x24] sm:$0xff] }
 0x3fa   :  { %7441 = vmatpush3.bf16.msra.mxu1 %v7746_v52  ;;  %v4219_v30 = vpack.c.bf16 %v4215_v57, %v4214_v55  ;;  %v7766_v41 = vld [vmem:[%s9596_s7 + $0x160] sm:$0xff]   ;;  %v4363_v13 = vld [vmem:[#allocation2 + $0x2c] sm:$0xff]  ;;  %v4360_v52 = vld [vmem:[#allocation2 + $0x14] sm:$0xff] }
 0x3fb   :  { %7442 = vmatprep.subr.bf16.mxu1 %v7748_v8  ;;  %7423 = vmatpush3.bf16.msra.mxu0 %v7751_v10  ;;  %v7773_v11 = vld [vmem:[%s9596_s7 + $0x100] sm:$0xff]   ;;  %v7777_v31 = vld [vmem:[%s9596_s7 + $0x1b0] sm:$0xff]   ;;  %v4368_v53 = vpack.c.bf16 %v4363_v13, %v4362_v19  ;;  %v7779_v2 = vld [vmem:[%s9596_s7 + $0x1a8] sm:$0xff]  }
 0x3fc   :  { %7424 = vmatprep.subr.bf16.mxu0 %v7753_v59  ;;  %v4361_v38 = vld [vmem:[#allocation2 + $0x1c] sm:$0xff]  ;;  %v4659_v4 = vld [vmem:[#allocation2 + $0xe] sm:$0xff]  ;;  %v4662_v9 = vld [vmem:[#allocation2 + $0x26] sm:$0xff] }
 0x3fd   :  { %7411 = vmatmul.mubr.bf16.gmra.mxu1 %v3919_v5  ;;  %v4367_v10 = vpack.c.bf16 %v4361_v38, %v4360_v52  ;;  %v7774_v34 = vld [vmem:[%s9596_s7 + $0x140] sm:$0xff]   ;;  %v7776_v58 = vld [vmem:[%s9596_s7 + $0x1f8] sm:$0xff]   ;;  %v7780_v1 = vld [vmem:[%s9596_s7 + $0x1e8] sm:$0xff]  }
 0x3fe   :  { %7443 = vmatpush3.bf16.msra.mxu1 %v7748_v8  ;;  %7454 = vmatprep.mubr.bf16.mxu1 %v4216_v32  ;;  %v4364_v8 = vld [vmem:[#allocation2 + $0x34] sm:$0xff]  ;;  %v4365_v29 = vld [vmem:[#allocation2 + $0x3c] sm:$0xff]  ;;  %v4512_v5 = vld [vmem:[#allocation2 + $0x25] sm:$0xff] }
 0x3ff   :  { %7444 = vmatprep.subr.bf16.mxu1 %v7750_v20  ;;  %7425 = vmatpush3.bf16.msra.mxu0 %v7753_v59  ;;  %v4658_v59 = vld [vmem:[#allocation2 + $0x6] sm:$0xff]  ;;  %v4511_v12 = vld [vmem:[#allocation2 + $0x1d] sm:$0xff]  ;;  %v4369_v32 = vpack.c.bf16 %v4365_v29, %v4364_v8  ;;  %v4663_v51 = vld [vmem:[#allocation2 + $0x2e] sm:$0xff]  ;;  %v9613_v29 = vmov 0  }
 0x400   :  { %7426 = vmatprep.subr.bf16.mxu0 %v7755_v48  ;;  %v7783_v36 = vld [vmem:[%s9596_s7 + $0x198] sm:$0xff]   ;;  %v7782_v24 = vld [vmem:[%s9596_s7 + $0x1e0] sm:$0xff]   ;;  %v4668_v16 = vpack.c.bf16 %v4663_v51, %v4662_v9  ;;  %v4813_v55 = vld [vmem:[#allocation2 + $0x2f] sm:$0xff] }
 0x401   :  { %v4515_v46 = vld [vmem:[#allocation2 + $0x3d] sm:$0xff]  ;;  %v7800_v19 = vld [vmem:[%s9598_s9 + $0xc8] ss:$16 sps:$4 sm:$0xff]  }
 0x402   :  { %7445 = vmatpush3.bf16.msra.mxu1 %v7750_v20  ;;  %v4513_v20 = vld [vmem:[#allocation2 + $0x2d] sm:$0xff]  ;;  %v7784_v43 = vld [vmem:[%s9596_s7 + $0x1d8] sm:$0xff]   ;;  %v7789_v15 = vld [vmem:[%s9596_s7 + $0x180] sm:$0xff]  }
 0x403   :  { %7446 = vmatprep.subr.bf16.mxu1 %v7752_v62  ;;  %7427 = vmatpush3.bf16.msra.mxu0 %v7755_v48  ;;  %v7781_v48 = vld [vmem:[%s9596_s7 + $0x1a0] sm:$0xff]   ;;  %v4518_v45 = vpack.c.bf16 %v4513_v20, %v4512_v5  ;;  %v4810_v3 = vld [vmem:[#allocation2 + $0x17] sm:$0xff] }
 0x404   :  { %7428 = vmatprep.subr.bf16.mxu0 %v7757_v44  ;;  %v4661_v49 = vld [vmem:[#allocation2 + $0x1e] sm:$0xff]  ;;  %v7818_v20 = vld [vmem:[%s9598_s9 + $0x68] ss:$16 sps:$4 sm:$0xff]  }
 0x405   :  { %v7802_v38 = vld [vmem:[%s9598_s9 + $0xcc] ss:$16 sps:$4 sm:$0xff]   ;;  %v7805_v13 = vld [vmem:[%s9598_s9 + $0xa4] ss:$16 sps:$4 sm:$0xff]   ;;  %v7809_v8 = vld [vmem:[%s9598_s9 + $0x80] ss:$16 sps:$4 sm:$0xff]  }
 0x406   :  { %7447 = vmatpush3.bf16.msra.mxu1 %v7752_v62  ;;  %v4510_v62 = vld [vmem:[#allocation2 + $0x15] sm:$0xff]  ;;  %v7815_v5 = vld [vmem:[%s9598_s9 + $0x60] ss:$16 sps:$4 sm:$0xff]  }
 0x407   :  { %7448 = vmatprep.subr.bf16.mxu1 %v7754_v6  ;;  %7429 = vmatpush3.bf16.msra.mxu0 %v7757_v44  ;;  %v4666_v44 = vpack.c.bf16 %v4659_v4, %v4658_v59  ;;  %v7808_v52 = vld [vmem:[%s9598_s9 + $0xac] ss:$16 sps:$4 sm:$0xff]   ;;  %v7817_v59 = vld [vmem:[%s9598_s9 + $0x64] ss:$16 sps:$4 sm:$0xff]  }
 0x408   :  { %7462 = vmatprep.subr.bf16.mxu0 %v7759_v42  ;;  %v7820_v4 = vld [vmem:[%s9598_s9 + $0x6c] ss:$16 sps:$4 sm:$0xff]  }
 0x40a   :  { %7449 = vmatpush3.bf16.msra.mxu1 %v7754_v6  ;;  %7431 = vmatmul.mubr.bf16.vlgmr.msra.gmra.mxu0 %v4067_v61  ;;  %v4517_v6 = vpack.c.bf16 %v4511_v12, %v4510_v62  ;;  %v4808_v61 = vld [vmem:[#allocation2 + $0x7] sm:$0xff] }
 0x40b   :  { %7450 = vmatprep.subr.bf16.mxu1 %v7756_v14  ;;  %7434 = vmatprep.mubr.bf16.mxu0 %v4068_v0  ;;  %v4809_v0 = vld [vmem:[#allocation2 + $0xf] sm:$0xff] }
 0x40c   :  { %7463 = vmatpush3.bf16.msra.mxu0 %v7759_v42  ;;  %v7778_v42 = vld [vmem:[%s9596_s7 + $0x1f0] sm:$0xff]   ;;  %v4816_v63 = vpack.c.bf16 %v4809_v0, %v4808_v61 }
 0x40d   :  { %7464 = vmatprep.subr.bf16.mxu0 %v7761_v17  ;;  %v7835_v61 = vld [vmem:[%s9598_s9 + $0x4] ss:$16 sps:$4 sm:$0xff]  }
 0x40e   :  { %7451 = vmatpush3.bf16.msra.mxu1 %v7756_v14  ;;  %v4514_v14 = vld [vmem:[#allocation2 + $0x35] sm:$0xff] }
 0x40f   :  { %7452 = vmatprep.subr.bf16.mxu1 %v7758_v37 }
 0x410   :  { %7465 = vmatpush3.bf16.msra.mxu0 %v7761_v17  ;;  %v7785_v17 = vld [vmem:[%s9596_s7 + $0x190] sm:$0xff]  }
 0x411   :  { %7466 = vmatprep.subr.bf16.mxu0 %v7763_v7 }
 0x412   :  { %7453 = vmatpush3.bf16.msra.mxu1 %v7758_v37  ;;  %7435 = vmatmul.mubr.bf16.gmra.mxu0 %v4069_v54  ;;  %v4519_v37 = vpack.c.bf16 %v4515_v46, %v4514_v14  ;;  %v7788_v54 = vld [vmem:[%s9596_s7 + $0x1c8] sm:$0xff]   ;;  %v7827_v14 = vld [vmem:[%s9598_s9 + $0x20] ss:$16 sps:$4 sm:$0xff]  }
 0x413   :  { %7486 = vmatprep.subr.bf16.mxu1 %v7760_v25  ;;  %7478 = vmatprep.mubr.bf16.mxu0 %v4366_v60  ;;  %v4660_v60 = vld [vmem:[#allocation2 + $0x16] sm:$0xff] }
 0x414   :  { %7467 = vmatpush3.bf16.msra.mxu0 %v7763_v7  ;;  %v7787_v7 = vld [vmem:[%s9596_s7 + $0x188] sm:$0xff]  }
 0x415   :  { %7455 = vmatmul.mubr.bf16.vlgmr.msra.gmra.mxu1 %v4217_v50  ;;  %7468 = vmatprep.subr.bf16.mxu0 %v7765_v39  ;;  %v7790_v50 = vld [vmem:[%s9596_s7 + $0x1c0] sm:$0xff]   ;;  %v7830_v46 = vld [vmem:[%s9598_s9 + $0x28] ss:$16 sps:$4 sm:$0xff]  }
 0x416   :  { %7458 = vmatprep.mubr.bf16.mxu1 %v4218_v18  ;;  %7487 = vmatpush3.bf16.msra.mxu1 %v7760_v25  ;;  %v7786_v25 = vld [vmem:[%s9596_s7 + $0x1d0] sm:$0xff]   ;;  %v4665_v18 = vld [vmem:[#allocation2 + $0x3e] sm:$0xff] }
 0x417   :  { %7488 = vmatprep.subr.bf16.mxu1 %v7762_v27 }
 0x418   :  { %7469 = vmatpush3.bf16.msra.mxu0 %v7765_v39  ;;  %v4667_v39 = vpack.c.bf16 %v4661_v49, %v4660_v60 }
 0x419   :  { %7470 = vmatprep.subr.bf16.mxu0 %v7767_v26 }
 0x41a   :  { %7489 = vmatpush3.bf16.msra.mxu1 %v7762_v27  ;;  %v4664_v27 = vld [vmem:[#allocation2 + $0x36] sm:$0xff] }
 0x41b   :  { %7490 = vmatprep.subr.bf16.mxu1 %v7764_v56  ;;  %v4669_v57 = vpack.c.bf16 %v4665_v18, %v4664_v27 }
 0x41c   :  { %7471 = vmatpush3.bf16.msra.mxu0 %v7767_v26  ;;  %v4811_v26 = vld [vmem:[#allocation2 + $0x1f] sm:$0xff] }
 0x41d   :  { %7459 = vmatmul.mubr.bf16.gmra.mxu1 %v4219_v30  ;;  %7472 = vmatprep.subr.bf16.mxu0 %v7769_v23  ;;  %v4817_v35 = vpack.c.bf16 %v4811_v26, %v4810_v3  ;;  %v4814_v30 = vld [vmem:[#allocation2 + $0x37] sm:$0xff] }
 0x41e   :  { %7491 = vmatpush3.bf16.msra.mxu1 %v7764_v56  ;;  %7502 = vmatprep.mubr.bf16.mxu1 %v4516_v28  ;;  %v4812_v56 = vld [vmem:[#allocation2 + $0x27] sm:$0xff] }
 0x41f   :  { %7492 = vmatprep.subr.bf16.mxu1 %v7766_v41 }
 0x420   :  { %7473 = vmatpush3.bf16.msra.mxu0 %v7769_v23  ;;  %v4818_v23 = vpack.c.bf16 %v4813_v55, %v4812_v56 }
 0x421   :  { %7474 = vmatprep.subr.bf16.mxu0 %v7771_v40 }
 0x422   :  { %7493 = vmatpush3.bf16.msra.mxu1 %v7766_v41  ;;  %v4815_v41 = vld [vmem:[#allocation2 + $0x3f] sm:$0xff] }
 0x423   :  { %7494 = vmatprep.subr.bf16.mxu1 %v7768_v33  ;;  %v4819_v28 = vpack.c.bf16 %v4815_v41, %v4814_v30 }
 0x424   :  { %7475 = vmatpush3.bf16.msra.mxu0 %v7771_v40  ;;  %v7791_v40 = vld [vmem:[%s9598_s9 + $0xe0] ss:$16 sps:$4 sm:$0xff]  }
 0x425   :  { %7476 = vmatprep.subr.bf16.mxu0 %v7773_v11 }
 0x426   :  { %7495 = vmatpush3.bf16.msra.mxu1 %v7768_v33  ;;  %v7793_v33 = vld [vmem:[%s9598_s9 + $0xe4] ss:$16 sps:$4 sm:$0xff]  }
 0x427   :  { %7496 = vmatprep.subr.bf16.mxu1 %v7770_v22 }
 0x428   :  { %7477 = vmatpush3.bf16.msra.mxu0 %v7773_v11  ;;  %v7794_v11 = vld [vmem:[%s9598_s9 + $0xe8] ss:$16 sps:$4 sm:$0xff]  }
 0x429   :  { %7510 = vmatprep.subr.bf16.mxu0 %v7775_v47 }
 0x42a   :  { %7497 = vmatpush3.bf16.msra.mxu1 %v7770_v22  ;;  %v7796_v22 = vld [vmem:[%s9598_s9 + $0xec] ss:$16 sps:$4 sm:$0xff]  }
 0x42b   :  { %7498 = vmatprep.subr.bf16.mxu1 %v7772_v21  ;;  %7479 = vmatmul.mubr.bf16.vlgmr.msra.gmra.mxu0 %v4367_v10  ;;  %v7803_v10 = vld [vmem:[%s9598_s9 + $0xa0] ss:$16 sps:$4 sm:$0xff]  }
 0x42c   :  { %7482 = vmatprep.mubr.bf16.mxu0 %v4368_v53  ;;  %7511 = vmatpush3.bf16.msra.mxu0 %v7775_v47  ;;  %v7799_v47 = vld [vmem:[%s9598_s9 + $0xc4] ss:$16 sps:$4 sm:$0xff]  }
 0x42d   :  { %7512 = vmatprep.subr.bf16.mxu0 %v7777_v31  ;;  %v7811_v53 = vld [vmem:[%s9598_s9 + $0x84] ss:$16 sps:$4 sm:$0xff]  }
 0x42e   :  { %7499 = vmatpush3.bf16.msra.mxu1 %v7772_v21  ;;  %v7797_v21 = vld [vmem:[%s9598_s9 + $0xc0] ss:$16 sps:$4 sm:$0xff]  }
 0x42f   :  { %7500 = vmatprep.subr.bf16.mxu1 %v7774_v34 }
 0x430   :  { %7513 = vmatpush3.bf16.msra.mxu0 %v7777_v31  ;;  %v7806_v31 = vld [vmem:[%s9598_s9 + $0xa8] ss:$16 sps:$4 sm:$0xff]  }
 0x431   :  { %7514 = vmatprep.subr.bf16.mxu0 %v7779_v2 }
 0x432   :  { %7501 = vmatpush3.bf16.msra.mxu1 %v7774_v34  ;;  %v7814_v34 = vld [vmem:[%s9598_s9 + $0x8c] ss:$16 sps:$4 sm:$0xff]  }
 0x433   :  { %7534 = vmatprep.subr.bf16.mxu1 %v7776_v58  ;;  %7483 = vmatmul.mubr.bf16.gmra.mxu0 %v4369_v32  ;;  %v7823_v32 = vld [vmem:[%s9598_s9 + $0x44] ss:$16 sps:$4 sm:$0xff]  }
 0x434   :  { %7515 = vmatpush3.bf16.msra.mxu0 %v7779_v2  ;;  %7526 = vmatprep.mubr.bf16.mxu0 %v4666_v44  ;;  %v7821_v44 = vld [vmem:[%s9598_s9 + $0x40] ss:$16 sps:$4 sm:$0xff]  }
 0x435   :  { %7503 = vmatmul.mubr.bf16.vlgmr.msra.gmra.mxu1 %v4517_v6  ;;  %7516 = vmatprep.subr.bf16.mxu0 %v7781_v48  ;;  %v7824_v6 = vld [vmem:[%s9598_s9 + $0x48] ss:$16 sps:$4 sm:$0xff]  }
 0x436   :  { %7506 = vmatprep.mubr.bf16.mxu1 %v4518_v45  ;;  %7535 = vmatpush3.bf16.msra.mxu1 %v7776_v58  ;;  %v7812_v58 = vld [vmem:[%s9598_s9 + $0x88] ss:$16 sps:$4 sm:$0xff]  }
 0x437   :  { %7536 = vmatprep.subr.bf16.mxu1 %v7778_v42 }
 0x438   :  { %7517 = vmatpush3.bf16.msra.mxu0 %v7781_v48  ;;  %v7826_v48 = vld [vmem:[%s9598_s9 + $0x4c] ss:$16 sps:$4 sm:$0xff]  }
 0x439   :  { %7518 = vmatprep.subr.bf16.mxu0 %v7783_v36 }
 0x43a   :  { %7537 = vmatpush3.bf16.msra.mxu1 %v7778_v42  ;;  %v7829_v42 = vld [vmem:[%s9598_s9 + $0x24] ss:$16 sps:$4 sm:$0xff]  }
 0x43b   :  { %7538 = vmatprep.subr.bf16.mxu1 %v7780_v1 }
 0x43c   :  { %7519 = vmatpush3.bf16.msra.mxu0 %v7783_v36  ;;  %v7832_v36 = vld [vmem:[%s9598_s9 + $0x2c] ss:$16 sps:$4 sm:$0xff]  }
 0x43d   :  { %7507 = vmatmul.mubr.bf16.gmra.mxu1 %v4519_v37  ;;  %7520 = vmatprep.subr.bf16.mxu0 %v7785_v17 }
 0x43e   :  { %7539 = vmatpush3.bf16.msra.mxu1 %v7780_v1  ;;  %7550 = vmatprep.mubr.bf16.mxu1 %v4816_v63  ;;  %v7836_v63 = vld [vmem:[%s9598_s9 + $0x8] ss:$16 sps:$4 sm:$0xff]  }
 0x43f   :  { %7540 = vmatprep.subr.bf16.mxu1 %v7782_v24 }
 0x440   :  { %7521 = vmatpush3.bf16.msra.mxu0 %v7785_v17  ;;  %v7838_v17 = vld [vmem:[%s9598_s9 + $0xc] ss:$16 sps:$4 sm:$0xff]  }
 0x441   :  { %7522 = vmatprep.subr.bf16.mxu0 %v7787_v7 }
 0x442   :  { %7541 = vmatpush3.bf16.msra.mxu1 %v7782_v24  ;;  %v7833_v24 = vld [vmem:[%s9598_s9] ss:$16 sps:$4 sm:$0xff]  }
 0x443   :  { %7542 = vmatprep.subr.bf16.mxu1 %v7784_v43 }
 0x444   :  { %7523 = vmatpush3.bf16.msra.mxu0 %v7787_v7  ;;  %v9303_v7 = vld [vmem:[%s9599_s10 + $0xe4] ss:$16 sps:$4 sm:$0xff]  }
 0x445   :  { %7524 = vmatprep.subr.bf16.mxu0 %v7789_v15  ;;  %9635 = vst [vmem:[#allocation14_spill] sm:$0xff] %v9303_v7 }
 0x446   :  { %7543 = vmatpush3.bf16.msra.mxu1 %v7784_v43 }
 0x447   :  { %7544 = vmatprep.subr.bf16.mxu1 %v7786_v25 }
 0x448   :  { %7525 = vmatpush3.bf16.msra.mxu0 %v7789_v15  ;;  %v9308_v15 = vld [vmem:[%s9599_s10 + $0xec] ss:$16 sps:$4 sm:$0xff]  }
 0x449   :  { %5189 = vmatprep.subr.bf16.mxu0 %v7793_v33  ;;  %9636 = vst [vmem:[#allocation16_spill] sm:$0xff] %v9308_v15 }
 0x44a   :  { %7545 = vmatpush3.bf16.msra.mxu1 %v7786_v25 }
 0x44b   :  { %7546 = vmatprep.subr.bf16.mxu1 %v7788_v54  ;;  %7527 = vmatmul.mubr.bf16.vlgmr.msra.gmra.mxu0 %v4667_v39 }
 0x44c   :  { %7530 = vmatprep.mubr.bf16.mxu0 %v4668_v16  ;;  %5190 = vmatpush1.bf16.msra.mxu0 %v7791_v40 }
 0x44d   :  { %5191 = vmatprep.subr.bf16.mxu0 %v7799_v47 }
 0x44e   :  { %7547 = vmatpush3.bf16.msra.mxu1 %v7788_v54 }
 0x44f   :  { %7548 = vmatprep.subr.bf16.mxu1 %v7790_v50 }
 0x450   :  { %5192 = vmatpush1.bf16.msra.mxu0 %v7797_v21 }
 0x451   :  { %5193 = vmatprep.subr.bf16.mxu0 %v7805_v13 }
 0x452   :  { %7549 = vmatpush3.bf16.msra.mxu1 %v7790_v50 }
 0x453   :  { %7531 = vmatmul.mubr.bf16.gmra.mxu0 %v4669_v57  ;;  %5230 = vmatprep.subr.bf16.mxu1 %v7796_v22 }
 0x454   :  { %5194 = vmatpush1.bf16.msra.mxu0 %v7803_v10  ;;  %5221 = vmatprep.mubr.bf16.mxu0 %v9613_v29 }
 0x455   :  { %7551 = vmatmul.mubr.bf16.vlgmr.msra.gmra.mxu1 %v4817_v35  ;;  %5195 = vmatprep.subr.bf16.mxu0 %v7811_v53 }
 0x456   :  { %7554 = vmatprep.mubr.bf16.mxu1 %v4818_v23  ;;  %5231 = vmatpush1.bf16.msra.mxu1 %v7794_v11 }
 0x457   :  { %5232 = vmatprep.subr.bf16.mxu1 %v7802_v38 }
 0x458   :  { %5196 = vmatpush1.bf16.msra.mxu0 %v7809_v8 }
 0x459   :  { %5197 = vmatprep.subr.bf16.mxu0 %v7817_v59 }
 0x45a   :  { %5233 = vmatpush1.bf16.msra.mxu1 %v7800_v19 }
 0x45b   :  { %5234 = vmatprep.subr.bf16.mxu1 %v7808_v52 }
 0x45c   :  { %5198 = vmatpush1.bf16.msra.mxu0 %v7815_v5 }
 0x45d   :  { %7555 = vmatmul.mubr.bf16.gmra.mxu1 %v4819_v28  ;;  %5199 = vmatprep.subr.bf16.mxu0 %v7823_v32 }
 0x45e   :  { %5235 = vmatpush1.bf16.msra.mxu1 %v7806_v31  ;;  %5262 = vmatprep.mubr.bf16.mxu1 %v9613_v29 }
 0x45f   :  { %5236 = vmatprep.subr.bf16.mxu1 %v7814_v34  ;;  %v6274_v34 = vld [vmem:[%s9597_s8] ss:$0 sm:$0xff] }
 0x460   :  { %5200 = vmatpush1.bf16.msra.mxu0 %v7821_v44 }
 0x461   :  { %5201 = vmatprep.subr.bf16.mxu0 %v7829_v42 }
 0x462   :  { %5237 = vmatpush1.bf16.msra.mxu1 %v7812_v58 }
 0x463   :  { %5238 = vmatprep.subr.bf16.mxu1 %v7820_v4 }
 0x464   :  { %5202 = vmatpush1.bf16.msra.mxu0 %v7827_v14 }
 0x465   :  { %5203 = vmatprep.subr.bf16.mxu0 %v7835_v61 }
 0x466   :  { %5239 = vmatpush1.bf16.msra.mxu1 %v7818_v20 }
 0x467   :  { %5240 = vmatprep.subr.bf16.mxu1 %v7826_v48 }
 0x468   :  { %5204 = vmatpush1.bf16.msra.mxu0 %v7833_v24 }
 0x469   :  { %5471 = vmatprep.subr.bf16.mxu0 %v9303_v7 }
 0x46a   :  { %5241 = vmatpush1.bf16.msra.mxu1 %v7824_v6 }
 0x46b   :  { %5242 = vmatprep.subr.bf16.mxu1 %v7832_v36 }
 0x46e   :  { %5243 = vmatpush1.bf16.msra.mxu1 %v7830_v46 }
 0x46f   :  { %5244 = vmatprep.subr.bf16.mxu1 %v7838_v17 }
 0x472   :  { %5245 = vmatpush1.bf16.msra.mxu1 %v7836_v63 }
 0x473   :  { %5512 = vmatprep.subr.bf16.mxu1 %v9308_v15 }
 0x4aa   :  { %v9232_v2 = vpop.f32.mrf.mxu0 }
 0x4ab   :  { %v3902_v59 = vadd.f32 %v9232_v2, %v6274_v34 }
 0x4ac   :  { %v9248_v12 = vpop.f32.mrf.mxu0 }
 0x4ad   :  { %v3900_v5 = vadd.f32 %v6274_v34, %v9248_v12 }
 0x4ae   :  { %v9262_v62 = vpop.f32.mrf.mxu0 }
 0x4af   :  { %v3903_v44 = vadd.f32 %v9262_v62, %v6274_v34 }
 0x4b0   :  { %v9278_v1 = vpop.f32.mrf.mxu0 }
 0x4b1   :  { %v3901_v14 = vadd.f32 %v6274_v34, %v9278_v1 }
 0x4b2   :  { %v9292_v37 = vpop.f32.mrf.mxu0 }
 0x4b3   :  { %v3906_v2 = vadd.f32 %v9292_v37, %v6274_v34 }
 0x4b4   :  { %v3879_v25 = vpop.f32.mrf.mxu0 }
 0x4b5   :  { %v9273_v45 = vpop.f32.mrf.mxu1  ;;  %v3904_v15 = vadd.f32 %v6274_v34, %v3879_v25 }
 0x4b6   :  { %v9312_v54 = vpop.f32.mrf.mxu0  ;;  %v4052_v20 = vadd.f32 %v9273_v45, %v3902_v59 }
 0x4b7   :  { %v4019_v0 = vpop.f32.mrf.mxu1  ;;  %v3907_v1 = vadd.f32 %v9312_v54, %v6274_v34 }
 0x4b8   :  { %v9314_v51 = vpop.f32.mrf.mxu0  ;;  %v4050_v6 = vadd.f32 %v4019_v0, %v3900_v5 }
 0x4b9   :  { %v7409_v43 = vpop.f32.mrf.mxu1 }
 0x4ba   :  { %v4053_v46 = vadd.f32 %v7409_v43, %v3903_v44 }
 0x4bb   :  { %v4022_v49 = vpop.f32.mrf.mxu1 }
 0x4bc   :  { %v4051_v12 = vadd.f32 %v4022_v49, %v3901_v14 }
 0x4bd   :  { %v7412_v9 = vpop.f32.mrf.mxu1 }
 0x4be   :  { %v4056_v7 = vadd.f32 %v7412_v9, %v3906_v2 }
 0x4bf   :  { %v4035_v60 = vpop.f32.mrf.mxu1 }
 0x4c0   :  { %v4054_v43 = vadd.f32 %v4035_v60, %v3904_v15 }
 0x4c1   :  { %v9316_v16 = vpop.f32.mrf.mxu1 }
 0x4c2   :  { %v4057_v25 = vadd.f32 %v9316_v16, %v3907_v1 }
 0x4c3   :  { %v9318_v27 = vpop.f32.mrf.mxu1 }
 0x4ca   :  { %v7432_v39 = vpop.f32.mrf.mxu0 }
 0x4cb   :  { %v4202_v42 = vadd.f32 %v7432_v39, %v4052_v20 }
 0x4cc   :  { %v4169_v50 = vpop.f32.mrf.mxu0 }
 0x4cd   :  { %v4200_v61 = vadd.f32 %v4169_v50, %v4050_v6 }
 0x4ce   :  { %v7433_v18 = vpop.f32.mrf.mxu0 }
 0x4cf   :  { %v4203_v29 = vadd.f32 %v7433_v18, %v4053_v46  ;;  %v3905_v18 = vadd.f32 %v6274_v34, %v9314_v51 }
 0x4d0   :  { %v4172_v56 = vpop.f32.mrf.mxu0 }
 0x4d1   :  { %v4201_v62 = vadd.f32 %v4172_v56, %v4051_v12  ;;  %v4055_v15 = vadd.f32 %v9318_v27, %v3905_v18 }
 0x4d2   :  { %v7436_v57 = vpop.f32.mrf.mxu0 }
 0x4d3   :  { %v4206_v50 = vadd.f32 %v7436_v57, %v4056_v7 }
 0x4d4   :  { %v4185_v35 = vpop.f32.mrf.mxu0 }
 0x4d5   :  { %v7456_v26 = vpop.f32.mrf.mxu1  ;;  %v4204_v9 = vadd.f32 %v4185_v35, %v4054_v43 }
 0x4d6   :  { %v9320_v30 = vpop.f32.mrf.mxu0  ;;  %v4352_v17 = vadd.f32 %v7456_v26, %v4202_v42 }
 0x4d7   :  { %v4319_v55 = vpop.f32.mrf.mxu1  ;;  %v4207_v7 = vadd.f32 %v9320_v30, %v4057_v25 }
 0x4d8   :  { %v9322_v28 = vpop.f32.mrf.mxu0  ;;  %v4350_v45 = vadd.f32 %v4319_v55, %v4200_v61 }
 0x4d9   :  { %v7457_v3 = vpop.f32.mrf.mxu1  ;;  %v4205_v35 = vadd.f32 %v9322_v28, %v4055_v15 }
 0x4da   :  { %v4353_v0 = vadd.f32 %v7457_v3, %v4203_v29 }
 0x4db   :  { %v4322_v23 = vpop.f32.mrf.mxu1 }
 0x4dc   :  { %v4351_v37 = vadd.f32 %v4322_v23, %v4201_v62 }
 0x4dd   :  { %v7460_v41 = vpop.f32.mrf.mxu1 }
 0x4de   :  { %v4356_v55 = vadd.f32 %v7460_v41, %v4206_v50 }
 0x4df   :  { %v9324_v40 = vpop.f32.mrf.mxu1 }
 0x4e0   :  { %v4354_v54 = vadd.f32 %v9324_v40, %v4204_v9 }
 0x4e1   :  { %v9326_v11 = vpop.f32.mrf.mxu1 }
 0x4e2   :  { %v4357_v41 = vadd.f32 %v9326_v11, %v4207_v7 }
 0x4e3   :  { %v9328_v47 = vpop.f32.mrf.mxu1 }
 0x4e4   :  { %v4355_v40 = vadd.f32 %v9328_v47, %v4205_v35 }
 0x4eb   :  { %v7480_v33 = vpop.f32.mrf.mxu0 }
 0x4ec   :  { %v4502_v59 = vadd.f32 %v7480_v33, %v4352_v17 }
 0x4ed   :  { %v4469_v22 = vpop.f32.mrf.mxu0 }
 0x4ee   :  { %v4500_v39 = vadd.f32 %v4469_v22, %v4350_v45 }
 0x4ef   :  { %v7481_v38 = vpop.f32.mrf.mxu0 }
 0x4f0   :  { %v4503_v44 = vadd.f32 %v7481_v38, %v4353_v0 }
 0x4f1   :  { %v4472_v19 = vpop.f32.mrf.mxu0 }
 0x4f2   :  { %v4501_v29 = vadd.f32 %v4472_v19, %v4351_v37 }
 0x4f3   :  { %v7484_v52 = vpop.f32.mrf.mxu0 }
 0x4f4   :  { %v4506_v23 = vadd.f32 %v7484_v52, %v4356_v55 }
 0x4f5   :  { %v7504_v21 = vpop.f32.mrf.mxu1  ;;  %v9330_v31 = vpop.f32.mrf.mxu0 }
 0x4f6   :  { %v4652_v5 = vadd.f32 %v7504_v21, %v4502_v59  ;;  %v4504_v19 = vadd.f32 %v9330_v31, %v4354_v54 }
 0x4f7   :  { %v4619_v13 = vpop.f32.mrf.mxu1  ;;  %v9335_v8 = vpop.f32.mrf.mxu0 }
 0x4f8   :  { %v4650_v6 = vadd.f32 %v4619_v13, %v4500_v39  ;;  %v4507_v52 = vadd.f32 %v9335_v8, %v4357_v41 }
 0x4f9   :  { %v7505_v10 = vpop.f32.mrf.mxu1  ;;  %v9338_v4 = vpop.f32.mrf.mxu0 }
 0x4fa   :  { %9637 = vst [vmem:[#allocation15_spill] sm:$0xff] %v9338_v4  ;;  %v4653_v3 = vadd.f32 %v7505_v10, %v4503_v44 }
 0x4fb   :  { %v4622_v53 = vpop.f32.mrf.mxu1 }
 0x4fc   :  { %v4651_v38 = vadd.f32 %v4622_v53, %v4501_v29 }
 0x4fd   :  { %v7508_v58 = vpop.f32.mrf.mxu1 }
 0x4fe   :  { %v4656_v13 = vadd.f32 %v7508_v58, %v4506_v23 }
 0x4ff   :  { %v9342_v32 = vpop.f32.mrf.mxu1 }
 0x500   :  { %v4654_v53 = vadd.f32 %v9342_v32, %v4504_v19 }
 0x501   :  { %v7509_v24 = vpop.f32.mrf.mxu1  ;;  %v9638_v11 = vld [vmem:[#allocation15_spill] sm:$0xff] }
 0x502   :  { %v4657_v14 = vadd.f32 %v7509_v24, %v4507_v52 }
 0x503   :  { %v4638_v26 = vpop.f32.mrf.mxu1 }
 0x50b   :  { %v7528_v48 = vpop.f32.mrf.mxu0 }
 0x50c   :  { %v4802_v49 = vadd.f32 %v7528_v48, %v4652_v5 }
 0x50d   :  { %v4769_v36 = vpop.f32.mrf.mxu0 }
 0x50e   :  { %v4800_v33 = vadd.f32 %v4769_v36, %v4650_v6  ;;  %v4505_v36 = vadd.f32 %v9638_v11, %v4355_v40  ;;  %v9376_v11 = vld [vmem:[%s9599_s10 + $0xe8] ss:$16 sps:$4 sm:$0xff]  }
 0x50f   :  { %v7529_v63 = vpop.f32.mrf.mxu0 }
 0x510   :  { %v4803_v51 = vadd.f32 %v7529_v63, %v4653_v3  ;;  %v4655_v61 = vadd.f32 %v4638_v26, %v4505_v36 }
 0x511   :  { %v4772_v4 = vpop.f32.mrf.mxu0 }
 0x512   :  { %v4801_v27 = vadd.f32 %v4772_v4, %v4651_v38 }
 0x513   :  { %v7532_v20 = vpop.f32.mrf.mxu0 }
 0x514   :  { %v4806_v48 = vadd.f32 %v7532_v20, %v4656_v13 }
 0x515   :  { %v7552_v56 = vpop.f32.mrf.mxu1  ;;  %v4785_v57 = vpop.f32.mrf.mxu0 }
 0x516   :  { %v4952_v22 = vadd.f32 %v7552_v56, %v4802_v49  ;;  %v4804_v31 = vadd.f32 %v4785_v57, %v4654_v53 }
 0x517   :  { %v4919_v60 = vpop.f32.mrf.mxu1  ;;  %v7533_v34 = vpop.f32.mrf.mxu0 }
 0x518   :  { %4960 = vst [vmem:[#allocation3 + $0x10] sm:$0xff] %v4952_v22  ;;  %v4950_v16 = vadd.f32 %v4919_v60, %v4800_v33  ;;  %v4807_v47 = vadd.f32 %v7533_v34, %v4657_v14 }
 0x519   :  { %v7553_v21 = vpop.f32.mrf.mxu1  ;;  %v4788_v46 = vpop.f32.mrf.mxu0 }
 0x51a   :  { %4958 = vst [vmem:[#allocation3] sm:$0xff] %v4950_v16  ;;  %v4953_v30 = vadd.f32 %v7553_v21, %v4803_v51  ;;  %v4805_v8 = vadd.f32 %v4788_v46, %v4655_v61  ;;  %v9399_v46 = vld [vmem:[%s9599_s10 + $0xc8] ss:$16 sps:$4 sm:$0xff]   ;;  %v9406_v61 = vld [vmem:[%s9599_s10 + $0xa4] ss:$16 sps:$4 sm:$0xff]  }
 0x51b   :  { %v4922_v10 = vpop.f32.mrf.mxu1 }
 0x51c   :  { %4961 = vst [vmem:[#allocation3 + $0x18] sm:$0xff] %v4953_v30  ;;  %v4951_v28 = vadd.f32 %v4922_v10, %v4801_v27 }
 0x51d   :  { %v7556_v42 = vpop.f32.mrf.mxu1 }
 0x51e   :  { %4959 = vst [vmem:[#allocation3 + $0x8] sm:$0xff] %v4951_v28  ;;  %v4956_v58 = vadd.f32 %v7556_v42, %v4806_v48  ;;  %v9371_v42 = vld [vmem:[%s9599_s10 + $0xe0] ss:$16 sps:$4 sm:$0xff]  }
 0x51f   :  { %v4935_v4 = vpop.f32.mrf.mxu1 }
 0x520   :  { %4964 = vst [vmem:[#allocation3 + $0x30] sm:$0xff] %v4956_v58  ;;  %v4954_v17 = vadd.f32 %v4935_v4, %v4804_v31  ;;  %v9382_v31 = vld [vmem:[%s9599_s10 + $0xc4] ss:$16 sps:$4 sm:$0xff]   ;;  %v9387_v58 = vld [vmem:[%s9599_s10 + $0xcc] ss:$16 sps:$4 sm:$0xff]  }
 0x521   :  { %v7557_v2 = vpop.f32.mrf.mxu1  ;;  %v4966_v0 = vld [vmem:[#allocation3] sm:$0xf]  ;;  %v4968_v39 = vld [vmem:[#allocation3 + $0x4] sm:$0xf]  ;;  %v9394_v4 = vld [vmem:[%s9599_s10 + $0xc0] ss:$16 sps:$4 sm:$0xff]  }
 0x522   :  { %4962 = vst [vmem:[#allocation3 + $0x20] sm:$0xff] %v4954_v17  ;;  %v4957_v32 = vadd.f32 %v7557_v2, %v4807_v47  ;;  %v9411_v47 = vld [vmem:[%s9599_s10 + $0xac] ss:$16 sps:$4 sm:$0xff]   ;;  %v9639_v17 = vmov 0   ;;  %v7851_v2 = vld [vmem:[%s9599_s10 + $0xa0] ss:$16 sps:$4 sm:$0xff]  }
 0x523   :  { %v4938_v63 = vpop.f32.mrf.mxu1 }
 0x524   :  { %4965 = vst [vmem:[#allocation3 + $0x38] sm:$0xff] %v4957_v32  ;;  %v4955_v12 = vadd.f32 %v4938_v63, %v4805_v8  ;;  %v7854_v8 = vld [vmem:[%s9599_s10 + $0xa8] ss:$16 sps:$4 sm:$0xff]   ;;  %v7859_v32 = vld [vmem:[%s9599_s10 + $0x84] ss:$16 sps:$4 sm:$0xff]  }
 0x525   :  { %v7862_v63 = vld [vmem:[%s9599_s10 + $0x8c] ss:$16 sps:$4 sm:$0xff]  }
 0x526   :  { %4963 = vst [vmem:[#allocation3 + $0x28] sm:$0xff] %v4955_v12  ;;  %v7857_v12 = vld [vmem:[%s9599_s10 + $0x80] ss:$16 sps:$4 sm:$0xff]  }
 0x529   :  { %v4967_v45 = vld [vmem:[#allocation3 + $0x20] sm:$0xf]  ;;  %v4969_v59 = vld [vmem:[#allocation3 + $0x24] sm:$0xf] }
 0x52a   :  { %v4971_v24 = vrot.slane %v4967_v45, 4  ;;  %v4974_v62 = vrot.slane %v4969_v59, 4  ;;  %v7860_v45 = vld [vmem:[%s9599_s10 + $0x88] ss:$16 sps:$4 sm:$0xff]   ;;  %v7865_v59 = vld [vmem:[%s9599_s10 + $0x64] ss:$16 sps:$4 sm:$0xff]  }
 0x52c   :  { %v4976_v5 = vsel %vm411_vm0, %v4966_v0, %v4971_v24  ;;  %v4977_v1 = vsel %vm411_vm0, %v4968_v39, %v4974_v62  ;;  %v7868_v24 = vld [vmem:[%s9599_s10 + $0x6c] ss:$16 sps:$4 sm:$0xff]   ;;  %v7863_v62 = vld [vmem:[%s9599_s10 + $0x60] ss:$16 sps:$4 sm:$0xff]   ;;  %v7866_v0 = vld [vmem:[%s9599_s10 + $0x68] ss:$16 sps:$4 sm:$0xff]  }
 0x52d   :  { %v4980_v43 = vcombine.high %v4976_v5, %v4976_v5  ;;  %v4981_v50 = vcombine.high %v4977_v1, %v4977_v1  ;;  %v4984_v26 = vsel %vm411_vm0, %v4976_v5, -inf  ;;  %v4998_v20 = vsel %vm411_vm0, %v4977_v1, -inf  ;;  %v7871_v39 = vld [vmem:[%s9599_s10 + $0x44] ss:$16 sps:$4 sm:$0xff]   ;;  %v7874_v5 = vld [vmem:[%s9599_s10 + $0x4c] ss:$16 sps:$4 sm:$0xff]  }
 0x52e   :  { %v4985_v37 = vrot.slane %v4984_v26, 4  ;;  %v4999_v44 = vrot.slane %v4998_v20, 4  ;;  %v7869_v1 = vld [vmem:[%s9599_s10 + $0x40] ss:$16 sps:$4 sm:$0xff]  }
 0x52f   :  { %v4991_v6 = vsel %vm411_vm0, %v4980_v43, -inf  ;;  %v5005_v49 = vsel %vm411_vm0, %v4981_v50, -inf  ;;  %v7872_v43 = vld [vmem:[%s9599_s10 + $0x48] ss:$16 sps:$4 sm:$0xff]   ;;  %v7877_v50 = vld [vmem:[%s9599_s10 + $0x24] ss:$16 sps:$4 sm:$0xff]  }
 0x530   :  { %v4986_v18 = vmax.f32 %v4984_v26, %v4985_v37  ;;  %v4992_v25 = vrot.slane %v4991_v6, 4  ;;  %v5000_v9 = vmax.f32 %v4998_v20, %v4999_v44  ;;  %v5006_v55 = vrot.slane %v5005_v49, 4  ;;  %v7880_v26 = vld [vmem:[%s9599_s10 + $0x2c] ss:$16 sps:$4 sm:$0xff]   ;;  %v7875_v20 = vld [vmem:[%s9599_s10 + $0x20] ss:$16 sps:$4 sm:$0xff]  }
 0x531   :  { %v7878_v37 = vld [vmem:[%s9599_s10 + $0x28] ss:$16 sps:$4 sm:$0xff]   ;;  %v7883_v44 = vld [vmem:[%s9599_s10 + $0x4] ss:$16 sps:$4 sm:$0xff]  }
 0x532   :  { %v4987_v56 = vrot.slane %v4986_v18, 2  ;;  %v4993_v29 = vmax.f32 %v4991_v6, %v4992_v25  ;;  %v5001_v3 = vrot.slane %v5000_v9, 2  ;;  %v5007_v33 = vmax.f32 %v5005_v49, %v5006_v55  ;;  %v7886_v6 = vld [vmem:[%s9599_s10 + $0xc] ss:$16 sps:$4 sm:$0xff]   ;;  %v7881_v49 = vld [vmem:[%s9599_s10] ss:$16 sps:$4 sm:$0xff]  }
 0x533   :  { %v5306_v25 = vld [vmem:[%s9603_s14] sm:$0x3]  ;;  %v9640_v55 = vld [vmem:[#allocation14_spill] sm:$0xff] }
 0x534   :  { %v4988_v22 = vmax.f32 %v4986_v18, %v4987_v56  ;;  %v4994_v15 = vrot.slane %v4993_v29, 2  ;;  %v5002_v7 = vmax.f32 %v5000_v9, %v5001_v3  ;;  %v5008_v54 = vrot.slane %v5007_v33, 2  ;;  %v7884_v18 = vld [vmem:[%s9599_s10 + $0x8] ss:$16 sps:$4 sm:$0xff]  }
 0x535   :  { %v5310_v9 = vpack.c.bf16 %v5306_v25, %v5306_v25  ;;  %v9641_v56 = vld [vmem:[#allocation16_spill] sm:$0xff]  ;;  %v5272_v3 = vlaneseq }
 0x536   :  { %v4989_v60 = vrot.slane %v4988_v22, 1  ;;  %v4995_v57 = vmax.f32 %v4993_v29, %v4994_v15  ;;  %v5003_v23 = vrot.slane %v5002_v7, 1  ;;  %v5009_v38 = vmax.f32 %v5007_v33, %v5008_v54  ;;  %v9500_v29 = vld [vmem:[#allocation2 + $0x40] sm:$0xff] }
 0x537   :  { %v5273_v33 = vshrl.u32 %v5272_v3, 7  ;;  %v142_v3 = vld [vmem:[%s9601_s12 + $0x68] sm:$0xff] }
 0x538   :  { %v4990_v51 = vmax.f32 %v4988_v22, %v4989_v60  ;;  %v4996_v16 = vrot.slane %v4995_v57, 1  ;;  %v5004_v35 = vmax.f32 %v5002_v7, %v5003_v23  ;;  %v5010_v41 = vrot.slane %v5009_v38, 1  ;;  %v128_v60 = vld [vmem:[%s9600_s11] sm:$0xf] }
 0x539   :  { %v5274_v22 = vsub.s32 0, %v5273_v33  ;;  %v5282_v15 = vsub.s32 2, %v5273_v33  ;;  %v5278_v7 = vsub.s32 1, %v5273_v33  ;;  %v5286_v54 = vsub.s32 3, %v5273_v33  ;;  %v141_v33 = vld [vmem:[%s9601_s12 + $0x60] sm:$0xff] }
 0x53a   :  { %v4997_v21 = vmax.f32 %v4995_v57, %v4996_v16  ;;  %v5011_v19 = vmax.f32 %v5009_v38, %v5010_v41  ;;  %v5012_v13 = vpack.c.bf16 %v4990_v51, %v4990_v51  ;;  %v5014_v27 = vpack.c.bf16 %v5004_v35, %v5004_v35 }
 0x53b   :  { %v5275_v57 = vrot.slane %v128_v60, %v5274_v22  ;;  %v5283_v23 = vrot.slane %v128_v60, %v5282_v15  ;;  %v5279_v38 = vrot.slane %v128_v60, %v5278_v7  ;;  %v5287_v51 = vrot.slane %v128_v60, %v5286_v54  ;;  %v140_v22 = vld [vmem:[%s9601_s12 + $0x58] sm:$0xff]  ;;  %v139_v15 = vld [vmem:[%s9601_s12 + $0x50] sm:$0xff]  ;;  %v138_v7 = vld [vmem:[%s9601_s12 + $0x48] sm:$0xff] }
 0x53c   :  { %v5013_v30 = vpack.c.bf16 %v4997_v21, %v4997_v21  ;;  %v5015_v40 = vpack.c.bf16 %v5011_v19, %v5011_v19  ;;  %v5020_v10 = vunpack.c.l.b16 %v5012_v13  ;;  %v5022_v52 = vunpack.c.l.b16 %v5014_v27  ;;  %v137_v54 = vld [vmem:[%s9601_s12 + $0x40] sm:$0xff]  ;;  %v136_v60 = vld [vmem:[%s9601_s12 + $0x38] sm:$0xff] }
 0x53e   :  { %v5021_v34 = vunpack.c.l.b16 %v5013_v30  ;;  %v5023_v53 = vunpack.c.l.b16 %v5015_v40 }
 0x540   :  { %v5024_v48 = vsel %vm1248_vm2, %v5021_v34, %v5020_v10 }
 0x541   :  { %v5025_v28 = vsel %vm1250_vm3, %v5022_v52, %v5024_v48 }
 0x542   :  { %v5026_v36 = vsel %vm1252_vm4, %v5023_v53, %v5025_v28 }
 0x543   :  { %v5027_v14 = vpack.c.b16 %v5026_v36, %v5026_v36 }
 0x545   :  { %5222 = vmatmul.mubr.bf16.vlgmr.msra.gmra.mxu0 %v5027_v14  ;;  %5263 = vmatmul.mubr.bf16.vlgmr.msra.gmra.mxu1 %v5027_v14 }
 0x546   :  { %5472 = vmatpush1.bf16.msra.mxu0 %v9371_v42  ;;  %5513 = vmatpush1.bf16.msra.mxu1 %v9376_v11 }
 0x547   :  { %5473 = vmatprep.subr.bf16.mxu0 %v9382_v31  ;;  %5514 = vmatprep.subr.bf16.mxu1 %v9387_v58 }
 0x548   :  { %5503 = vmatprep.mubr.bf16.mxu0 %v9639_v17  ;;  %5544 = vmatprep.mubr.bf16.mxu1 %v9639_v17 }
 0x54a   :  { %5474 = vmatpush1.bf16.msra.mxu0 %v9394_v4  ;;  %5515 = vmatpush1.bf16.msra.mxu1 %v9399_v46 }
 0x54b   :  { %5475 = vmatprep.subr.bf16.mxu0 %v9406_v61  ;;  %5516 = vmatprep.subr.bf16.mxu1 %v9411_v47 }
 0x54e   :  { %5476 = vmatpush1.bf16.msra.mxu0 %v7851_v2  ;;  %5517 = vmatpush1.bf16.msra.mxu1 %v7854_v8 }
 0x54f   :  { %5477 = vmatprep.subr.bf16.mxu0 %v7859_v32  ;;  %5518 = vmatprep.subr.bf16.mxu1 %v7862_v63 }
 0x552   :  { %5478 = vmatpush1.bf16.msra.mxu0 %v7857_v12  ;;  %5519 = vmatpush1.bf16.msra.mxu1 %v7860_v45 }
 0x553   :  { %5479 = vmatprep.subr.bf16.mxu0 %v7865_v59  ;;  %5520 = vmatprep.subr.bf16.mxu1 %v7868_v24 }
 0x556   :  { %5480 = vmatpush1.bf16.msra.mxu0 %v7863_v62  ;;  %5521 = vmatpush1.bf16.msra.mxu1 %v7866_v0 }
 0x557   :  { %5481 = vmatprep.subr.bf16.mxu0 %v7871_v39  ;;  %5522 = vmatprep.subr.bf16.mxu1 %v7874_v5 }
 0x55a   :  { %5482 = vmatpush1.bf16.msra.mxu0 %v7869_v1  ;;  %5523 = vmatpush1.bf16.msra.mxu1 %v7872_v43 }
 0x55b   :  { %5483 = vmatprep.subr.bf16.mxu0 %v7877_v50  ;;  %5524 = vmatprep.subr.bf16.mxu1 %v7880_v26 }
 0x55e   :  { %5484 = vmatpush1.bf16.msra.mxu0 %v7875_v20  ;;  %5525 = vmatpush1.bf16.msra.mxu1 %v7878_v37 }
 0x55f   :  { %5485 = vmatprep.subr.bf16.mxu0 %v7883_v44  ;;  %5526 = vmatprep.subr.bf16.mxu1 %v7886_v6 }
 0x562   :  { %5486 = vmatpush1.bf16.msra.mxu0 %v7881_v49  ;;  %5527 = vmatpush1.bf16.msra.mxu1 %v7884_v18 }
 0x563   :  { %5596 = vmatprep.subr.bf16.mxu0 %v9640_v55  ;;  %5637 = vmatprep.subr.bf16.mxu1 %v9641_v56  ;;  %v144_v55 = vld [vmem:[%s9601_s12 + $0x78] sm:$0xff]  ;;  %v143_v56 = vld [vmem:[%s9601_s12 + $0x70] sm:$0xff] }
 0x565   :  { %5504 = vmatmul.mubr.bf16.vlgmr.msra.gmra.mxu0 %v5310_v9  ;;  %5545 = vmatmul.mubr.bf16.vlgmr.msra.gmra.mxu1 %v5310_v9 }
 0x566   :  { %5597 = vmatpush1.bf16.msra.mxu0 %v9371_v42  ;;  %5638 = vmatpush1.bf16.msra.mxu1 %v9376_v11 }
 0x567   :  { %5598 = vmatprep.subr.bf16.mxu0 %v9382_v31  ;;  %5639 = vmatprep.subr.bf16.mxu1 %v9387_v58 }
 0x568   :  { %5628 = vmatprep.mubr.bf16.mxu0 %v9639_v17  ;;  %5669 = vmatprep.mubr.bf16.mxu1 %v9639_v17 }
 0x56a   :  { %5599 = vmatpush1.bf16.msra.mxu0 %v9394_v4  ;;  %5640 = vmatpush1.bf16.msra.mxu1 %v9399_v46 }
 0x56b   :  { %5600 = vmatprep.subr.bf16.mxu0 %v9406_v61  ;;  %5641 = vmatprep.subr.bf16.mxu1 %v9411_v47 }
 0x56e   :  { %5601 = vmatpush1.bf16.msra.mxu0 %v7851_v2  ;;  %5642 = vmatpush1.bf16.msra.mxu1 %v7854_v8 }
 0x56f   :  { %5602 = vmatprep.subr.bf16.mxu0 %v7859_v32  ;;  %5643 = vmatprep.subr.bf16.mxu1 %v7862_v63 }
 0x572   :  { %5603 = vmatpush1.bf16.msra.mxu0 %v7857_v12  ;;  %5644 = vmatpush1.bf16.msra.mxu1 %v7860_v45 }
 0x573   :  { %5604 = vmatprep.subr.bf16.mxu0 %v7865_v59  ;;  %5645 = vmatprep.subr.bf16.mxu1 %v7868_v24 }
 0x576   :  { %5605 = vmatpush1.bf16.msra.mxu0 %v7863_v62  ;;  %5646 = vmatpush1.bf16.msra.mxu1 %v7866_v0 }
 0x577   :  { %5606 = vmatprep.subr.bf16.mxu0 %v7871_v39  ;;  %5647 = vmatprep.subr.bf16.mxu1 %v7874_v5 }
 0x57a   :  { %5607 = vmatpush1.bf16.msra.mxu0 %v7869_v1  ;;  %5648 = vmatpush1.bf16.msra.mxu1 %v7872_v43  ;;  %v5307_v43 = vld [vmem:[%s9604_s15] sm:$0x3] }
 0x57b   :  { %5608 = vmatprep.subr.bf16.mxu0 %v7877_v50  ;;  %5649 = vmatprep.subr.bf16.mxu1 %v7880_v26 }
 0x57e   :  { %5609 = vmatpush1.bf16.msra.mxu0 %v7875_v20  ;;  %5650 = vmatpush1.bf16.msra.mxu1 %v7878_v37 }
 0x57f   :  { %5610 = vmatprep.subr.bf16.mxu0 %v7883_v44  ;;  %5651 = vmatprep.subr.bf16.mxu1 %v7886_v6 }
 0x582   :  { %5611 = vmatpush1.bf16.msra.mxu0 %v7881_v49  ;;  %5652 = vmatpush1.bf16.msra.mxu1 %v7884_v18 }
 0x583   :  { %7558 = vmatprep.subr.mxu0 %v9500_v29 }
 0x605   :  { %v5223_v16 = vpop.f32.mrf.mxu0  ;;  %v5264_v35 = vpop.f32.mrf.mxu1 }
 0x606   :  { %v5292_v19 = vadd.f32 %v5275_v57, %v5223_v16  ;;  %v5294_v13 = vadd.f32 %v5283_v23, %v5264_v35  ;;  %v135_v57 = vld [vmem:[%s9601_s12 + $0x30] sm:$0xff]  ;;  %v134_v23 = vld [vmem:[%s9601_s12 + $0x28] sm:$0xff] }
 0x607   :  { %v5225_v41 = vpop.f32.mrf.mxu0  ;;  %v5266_v21 = vpop.f32.mrf.mxu1  ;;  %v131_v16 = vld [vmem:[%s9601_s12 + $0x10] sm:$0xff]  ;;  %v130_v35 = vld [vmem:[%s9601_s12 + $0x8] sm:$0xff] }
 0x608   :  { %v5293_v27 = vadd.f32 %v5279_v38, %v5225_v41  ;;  %v5295_v30 = vadd.f32 %v5287_v51, %v5266_v21  ;;  %v133_v38 = vld [vmem:[%s9601_s12 + $0x20] sm:$0xff]  ;;  %v132_v51 = vld [vmem:[%s9601_s12 + $0x18] sm:$0xff] }
 0x609   :  { %v5227_v40 = vpop.f32.mrf.mxu0  ;;  %v5268_v10 = vpop.f32.mrf.mxu1  ;;  %v129_v41 = vld [vmem:[%s9601_s12] sm:$0xff]  ;;  %s7988_s12 = smov [#allocation7]  }
 0x60a   :  { %v5300_v34 = vcombine.low %v5292_v19, %v5293_v27  ;;  %v5301_v52 = vcombine.low %v5294_v13, %v5295_v30  ;;  %s5821_s0 = sshll.u32 %s7988_s12, 4  ;;  %s5822_s0 = int_to_ptr.vmem [resolvable:$true] %s5821_s0 }
 0x60b   :  { %v5228_v53 = vpop.f32.mrf.mxu0  ;;  %v5269_v48 = vpop.f32.mrf.mxu1  ;;  %s7921_s1 = scalar_lea.vmem %s5822_s0, 32  ;;  %p7926_p1 = scmp.lt.s32.totalorder %s5822_s0, %s5822_s0 }
 0x60c   :  { %5304 = vst [vmem:[#allocation4] sm:$0xff] %v5300_v34  ;;  %5305 = vst [vmem:[#allocation4 + $0x8] sm:$0xff] %v5301_v52  ;;  %p7922_p0 = scmp.ne.s32.totalorder %s5822_s0, %s7921_s1  ;;  %p7927_p2 = scmp.lt.s32.totalorder %s7921_s1, %s7921_s1 }
 0x60e   :  { %p7928_p3 = por %p7927_p2, %p7926_p1 }
 0x610   :  { %p7929_p4 = pnand %p7928_p3, %p7922_p0 }
 0x613   :  { %v5308_v31 = vld [vmem:[#allocation4] sm:$0x33]  ;;  %v5309_v63 = vld [vmem:[#allocation4 + $0x8] sm:$0x33]  ;;  %v5593_v52 = vld [vmem:[#allocation4] sm:$0xcc] }
 0x625   :  { %v5505_v28 = vpop.f32.mrf.mxu0  ;;  %v5546_v42 = vpop.f32.mrf.mxu1 }
 0x627   :  { %v5507_v11 = vpop.f32.mrf.mxu0  ;;  %v5548_v36 = vpop.f32.mrf.mxu1 }
 0x628   :  { %v5557_v14 = vcombine.low %v5505_v28, %v5507_v11  ;;  %v5558_v8 = vcombine.low %v5546_v42, %v5548_v36 }
 0x629   :  { %v5509_v58 = vpop.f32.mrf.mxu0  ;;  %v5550_v4 = vpop.f32.mrf.mxu1 }
 0x62a   :  { %v5561_v46 = vadd.f32 %v5557_v14, %v5308_v31  ;;  %v5562_v12 = vadd.f32 %v5558_v8, %v5309_v63 }
 0x62b   :  { %v5510_v61 = vpop.f32.mrf.mxu0  ;;  %v5551_v47 = vpop.f32.mrf.mxu1 }
 0x62c   :  { %v6507_v17 = vmul.f32 -1.442695, %v5561_v46  ;;  %v5570_v2 = vrot.slane %v5561_v46, 4  ;;  %v5580_v45 = vrot.slane %v5562_v12, 4 }
 0x62e   :  { %7887 = vpow2.f32 %v6507_v17  ;;  %v6508_v32 = vmul.f32 -1.442695, %v5570_v2  ;;  %v6509_v59 = vmul.f32 -1.442695, %v5580_v45 }
 0x630   :  { %7889 = vpow2.f32 %v6508_v32 }
 0x631   :  { %7891 = vpow2.f32 %v6509_v59 }
 0x63b   :  { %v7888_v24 = vpop.eup %7887 }
 0x63c   :  { %v5566_v62 = vadd.f32 1.0, %v7888_v24 }
 0x63d   :  { %v7890_v0 = vpop.eup %7889 }
 0x63e   :  { %7893 = vrcp.f32 %v5566_v62  ;;  %v5575_v39 = vadd.f32 1.0, %v7890_v0  ;;  %v7892_v5 = vpop.eup %7891 }
 0x63f   :  { %7895 = vtanh.f32 %v5562_v12  ;;  %v5585_v20 = vadd.f32 1.0, %v7892_v5 }
 0x640   :  { %7897 = vrcp.f32 %v5575_v39 }
 0x641   :  { %7899 = vrcp.f32 %v5585_v20 }
 0x64b   :  { %v7894_v1 = vpop.eup %7893 }
 0x64c   :  { %v7896_v50 = vpop.eup %7895 }
 0x64d   :  { %v7898_v26 = vpop.eup %7897  ;;  %v5589_v44 = vmul.f32 %v7896_v50, %v7894_v1 }
 0x64e   :  { %v5588_v37 = vmul.f32 %v7898_v26, %v5307_v43  ;;  %v7900_v49 = vpop.eup %7899 }
 0x650   :  { %v9509_v6 = vadd.f32 %v5589_v44, %v5588_v37 }
 0x652   :  { %7901 = vtanh.f32 %v9509_v6  ;;  %v5716_v12 = vrot.slane %v9509_v6, 6 }
 0x65f   :  { %v7902_v18 = vpop.eup %7901 }
 0x660   :  { %v5592_v25 = vmul.f32 %v7902_v18, %v7900_v49 }
 0x662   :  { %v5595_v9 = vpack.c.bf16 %v5592_v25, %v5592_v25 }
 0x664   :  { %5629 = vmatmul.mubr.bf16.vlgmr.msra.gmra.mxu0 %v5595_v9  ;;  %5670 = vmatmul.mubr.bf16.vlgmr.msra.gmra.mxu1 %v5595_v9 }
 0x665   :  { %7559 = vmatpush3.msra.mxu0 %v144_v55  ;;  %7590 = vmatprep.mubr.msk.f32.mxu0 %vm7987_vm9, %v9500_v29 }
 0x666   :  { %7560 = vmatprep.subr.mxu0 %v9500_v29 }
 0x667   :  { %7561 = vmatpush3.msra.mxu0 %v143_v56 }
 0x668   :  { %7562 = vmatprep.subr.mxu0 %v9500_v29 }
 0x669   :  { %7563 = vmatpush3.msra.mxu0 %v142_v3 }
 0x66a   :  { %7564 = vmatprep.subr.mxu0 %v9500_v29 }
 0x66b   :  { %7565 = vmatpush3.msra.mxu0 %v141_v33 }
 0x66c   :  { %7566 = vmatprep.subr.mxu0 %v9500_v29 }
 0x66d   :  { %7567 = vmatpush3.msra.mxu0 %v140_v22 }
 0x66e   :  { %7568 = vmatprep.subr.mxu0 %v9500_v29 }
 0x66f   :  { %7569 = vmatpush3.msra.mxu0 %v139_v15 }
 0x670   :  { %7570 = vmatprep.subr.mxu0 %v9500_v29 }
 0x671   :  { %7571 = vmatpush3.msra.mxu0 %v138_v7 }
 0x672   :  { %7572 = vmatprep.subr.mxu0 %v9500_v29 }
 0x673   :  { %7573 = vmatpush3.msra.mxu0 %v137_v54 }
 0x674   :  { %7574 = vmatprep.subr.mxu0 %v9500_v29 }
 0x675   :  { %7575 = vmatpush3.msra.mxu0 %v136_v60 }
 0x676   :  { %7576 = vmatprep.subr.mxu0 %v9500_v29 }
 0x677   :  { %7577 = vmatpush3.msra.mxu0 %v135_v57 }
 0x678   :  { %7578 = vmatprep.subr.mxu0 %v9500_v29 }
 0x679   :  { %7579 = vmatpush3.msra.mxu0 %v134_v23 }
 0x67a   :  { %7580 = vmatprep.subr.mxu0 %v9500_v29 }
 0x67b   :  { %7581 = vmatpush3.msra.mxu0 %v133_v38 }
 0x67c   :  { %7582 = vmatprep.subr.mxu0 %v9500_v29 }
 0x67d   :  { %7583 = vmatpush3.msra.mxu0 %v132_v51 }
 0x67e   :  { %7584 = vmatprep.subr.mxu0 %v9500_v29 }
 0x67f   :  { %7585 = vmatpush3.msra.mxu0 %v131_v16 }
 0x680   :  { %7586 = vmatprep.subr.mxu0 %v9500_v29 }
 0x681   :  { %7587 = vmatpush3.msra.mxu0 %v130_v35 }
 0x682   :  { %7588 = vmatprep.subr.mxu0 %v9500_v29  ;;  %v5594_v29 = vld [vmem:[#allocation4 + $0x8] sm:$0xcc] }
 0x683   :  { %7589 = vmatpush3.msra.mxu0 %v129_v41 }
 0x724   :  { %v5630_v21 = vpop.f32.mrf.mxu0  ;;  %v5671_v19 = vpop.f32.mrf.mxu1 }
 0x726   :  { %v5632_v13 = vpop.f32.mrf.mxu0  ;;  %v5673_v27 = vpop.f32.mrf.mxu1 }
 0x727   :  { %v5682_v30 = vcombine.low %v5630_v21, %v5632_v13  ;;  %v5683_v53 = vcombine.low %v5671_v19, %v5673_v27 }
 0x728   :  { %v5634_v40 = vpop.f32.mrf.mxu0  ;;  %v5675_v10 = vpop.f32.mrf.mxu1 }
 0x729   :  { %v5684_v34 = vrot.slane %v5682_v30, 6  ;;  %v5685_v14 = vrot.slane %v5683_v53, 6 }
 0x72a   :  { %v5635_v48 = vpop.f32.mrf.mxu0  ;;  %v5676_v28 = vpop.f32.mrf.mxu1 }
 0x72b   :  { %v5688_v42 = vadd.f32 %v5684_v34, %v5593_v52  ;;  %v5689_v58 = vadd.f32 %v5685_v14, %v5594_v29 }
 0x72d   :  { %v6510_v11 = vmul.f32 -1.442695, %v5688_v42  ;;  %v5697_v36 = vrot.slane %v5688_v42, 4  ;;  %v5707_v4 = vrot.slane %v5689_v58, 4 }
 0x72f   :  { %7903 = vpow2.f32 %v6510_v11  ;;  %v6511_v31 = vmul.f32 -1.442695, %v5697_v36  ;;  %v6512_v46 = vmul.f32 -1.442695, %v5707_v4 }
 0x731   :  { %7905 = vpow2.f32 %v6511_v31 }
 0x732   :  { %7907 = vpow2.f32 %v6512_v46 }
 0x73c   :  { %v7904_v61 = vpop.eup %7903 }
 0x73d   :  { %v5693_v47 = vadd.f32 1.0, %v7904_v61 }
 0x73e   :  { %v7906_v17 = vpop.eup %7905 }
 0x73f   :  { %7909 = vrcp.f32 %v5693_v47  ;;  %v5702_v2 = vadd.f32 1.0, %v7906_v17  ;;  %v7908_v8 = vpop.eup %7907 }
 0x740   :  { %7911 = vtanh.f32 %v5689_v58  ;;  %v5712_v59 = vadd.f32 1.0, %v7908_v8 }
 0x741   :  { %7913 = vrcp.f32 %v5702_v2 }
 0x742   :  { %7915 = vrcp.f32 %v5712_v59 }
 0x74c   :  { %v7910_v32 = vpop.eup %7909 }
 0x74d   :  { %v7912_v63 = vpop.eup %7911 }
 0x74e   :  { %v7914_v45 = vpop.eup %7913  ;;  %v5719_v62 = vmul.f32 %v7912_v63, %v7910_v32 }
 0x74f   :  { %v5718_v24 = vmul.f32 %v7914_v45, %v5716_v12  ;;  %v7916_v39 = vpop.eup %7915 }
 0x751   :  { %v5720_v0 = vadd.f32 %v5719_v62, %v5718_v24 }
 0x753   :  { %7917 = vtanh.f32 %v5720_v0  ;;  %5804 = vst [vmem:[#allocation9 - $0x2] sm:$0xc] %v5720_v0 }
 0x760   :  { %v7918_v5 = vpop.eup %7917 }
 0x761   :  { %v5722_v1 = vmul.f32 %v7918_v5, %v7916_v39 }
 0x763   :  { %v5730_v43 = vrot.slane %v5722_v1, 2  ;;  %5803 = vst [vmem:[#allocation7 - $0x2] sm:$0xc] %v5722_v1 }
 0x765   :  { %7591 = vmatmul.mubr.f32.vlgmr.msra.gmra.mxu0 %v5730_v43 }
 0x766   :  { %7932 = shalt.err (!%p7929_p4)
}
 0x767   :  { %5824 = dma.vmem_to_hbm [thread:$0]  %s5822_s0, 32, %s9606_s17, [#allocation8]  }
 0x768   :  { %s7989_s4 = smov [#allocation9]  }
 0x769   :  { %s5831_s22 = sshll.u32 %s7989_s4, 4  ;;  %s5832_s22 = int_to_ptr.vmem [resolvable:$true] %s5831_s22 }
 0x76a   :  { %s7941_s23 = scalar_lea.vmem %s5832_s22, 32  ;;  %p7946_p6 = scmp.lt.s32.totalorder %s5832_s22, %s5832_s22 }
 0x76b   :  { %p7942_p5 = scmp.ne.s32.totalorder %s5832_s22, %s7941_s23  ;;  %p7947_p7 = scmp.lt.s32.totalorder %s7941_s23, %s7941_s23 }
 0x76d   :  { %p7948_p8 = por %p7947_p7, %p7946_p6 }
 0x76f   :  { %p7949_p9 = pnand %p7948_p8, %p7942_p5 }
 0x771   :  { %7952 = shalt.err (!%p7949_p9)
}
 0x772   :  { %5834 = dma.vmem_to_hbm [thread:$0]  %s5832_s22, 32, %s9607_s18, [#allocation8]   ;;  %v6513_v50 = vld [vmem:[%s9602_s13] ss:$0 sm:$0xff] }
 0x773   :  { %s7990_s26 = smov [#allocation5]  }
 0x774   :  { %s5811_s17 = sshll.u32 %s7990_s26, 4  ;;  %s5812_s17 = int_to_ptr.vmem [resolvable:$true] %s5811_s17 }
 0x775   :  { %s7961_s5 = scalar_lea.vmem %s5812_s17, 32  ;;  %p7966_p11 = scmp.lt.s32.totalorder %s5812_s17, %s5812_s17 }
 0x776   :  { %p7962_p10 = scmp.ne.s32.totalorder %s5812_s17, %s7961_s5  ;;  %p7967_p12 = scmp.lt.s32.totalorder %s7961_s5, %s7961_s5 }
 0x778   :  { %p7968_p13 = por %p7967_p12, %p7966_p11 }
 0x77a   :  { %p7969_p0 = pnand %p7968_p13, %p7962_p10 }
 0x825   :  { %v5798_v26 = vpop.f32.mrf.mxu0 }
 0x826   :  { %v5799_v20 = vadd.f32 %v6513_v50, %v5798_v26 }
 0x827   :  { %v7592_v37 = vpop.f32.mrf.mxu0 }
 0x828   :  { %5802 = vst [vmem:[#allocation5] sm:$0x3] %v5799_v20 }
 0x829   :  { %7972 = shalt.err (!%p7969_p0)
}
 0x82a   :  { %5814 = dma.vmem_to_hbm [thread:$0]  %s5812_s17, 32, %s9605_s16, [#allocation6]  }
 0x82b   :  { %7981 = dma.done.wait [#allocation6], 32  }
 0x82c   :  { %7982 = vsyncadd [#allocation6], 4294967264 }
 0x82d   :  { %7983 = dma.done.wait [#allocation8], 64  }
 0x82e   :  { %7984 = vsyncadd [#allocation8], 4294967232 }
 0x82f   :  { %5844 = vsyncpa [#allocation6], 1 }
 0x830   :  { %5845 = vsyncpa [#allocation8], 1 }

</bundles_post_ra>
